<compile_context>
chip_gen: v7x
topology: tpu7x:2x2x1
jax: 0.10.0
libtpu: 0.0.40
codegen_flags: <defaults>
</compile_context>

<pallas_src>
import jax
import jax.numpy as jnp
from jax.experimental import pallas as pl
from jax.experimental.pallas import tpu as pltpu

PAD = 3   # (kernel_size - 1) // 2
KS = 7    # kernel_size


def spatial_gate_kernel(w_ref, b_ref, x_ref, o_ref, cs_ref):
    """One batch element per grid step.

    w_ref  : SMEM (2*7*7,) f32      -- conv weight with BN scale folded in
    b_ref  : SMEM (1,)     f32      -- folded BN bias
    x_ref  : VMEM (1, C, H, W)      -- UNPADDED input block (NCHW)
    o_ref  : VMEM (1, C, H, W)
    cs_ref : VMEM (2, 7, H+6, W) f32 scratch:
             cs_ref[ci, kw, r, c] == zero-padded-pool[ci][r, c + kw]
    """
    _, C, H, W = x_ref.shape

    # ---- read the input block once; reused by pooling and gating ----------
    xs = x_ref[0].astype(jnp.float32)                 # (C, H, W)

    # ---- ChannelPool: elementwise max / mean across channel slabs (VPU) ---
    ch_max = jnp.max(xs, axis=0)                      # (H, W)
    ch_mean = jnp.sum(xs, axis=0) * (1.0 / C)         # (H, W)
    pooled = (ch_max, ch_mean)

    # ---- stage column-shifted, zero-padded pooled maps into VMEM scratch --
    # Only <=14 cross-lane (column-shift) ops happen here; everything the 98
    # conv taps read afterwards is a plain sublane-offset ref load.
    cs_ref[...] = jnp.zeros_like(cs_ref)
    for ci in range(2):
        pm = pooled[ci]
        for kw in range(KS):
            dw = kw - PAD
            src_lo = max(dw, 0)
            dst_lo = max(-dw, 0)
            width = W - abs(dw)
            cs_ref[ci, kw, PAD:PAD + H, dst_lo:dst_lo + width] = (
                pm[:, src_lo:src_lo + width])

    # ---- 7x7 conv (2 -> 1 ch, stride 1, pad 3) + folded BN bias ------------
    # 4 partial accumulators break the 98-deep serial add chain (VALU ILP).
    accs = [jnp.zeros((H, W), jnp.float32) for _ in range(4)]
    t = 0
    for ci in range(2):
        for kw in range(KS):
            for kh in range(KS):
                wv = w_ref[ci * KS * KS + kh * KS + kw]     # scalar SMEM read
                accs[t % 4] = accs[t % 4] + wv * cs_ref[ci, kw, kh:kh + H, :]
                t += 1
    conv = (accs[0] + accs[1]) + (accs[2] + accs[3])
    scale = jax.nn.sigmoid(conv + b_ref[0])           # (H, W)

    # ---- gating: single broadcast multiply + single store ------------------
    o_ref[0] = (xs * scale[None, :, :]).astype(o_ref.dtype)


def spatial_gate(x, conv_w, bn_gamma, bn_beta, bn_mean, bn_var, eps=1e-5):
    """x: (N, C, H, W), conv_w: (1, 2, 7, 7). Inference-mode BN is folded."""
    N, C, H, W = x.shape

    # Fold BatchNorm (inference) into the conv weight and a scalar bias.
    s = bn_gamma / jnp.sqrt(bn_var + eps)                           # (1,)
    w_folded = (conv_w[0] * s[0]).astype(jnp.float32).reshape(-1)   # (2*7*7,)
    b_folded = (bn_beta - bn_mean * s).astype(jnp.float32)          # (1,)

    return pl.pallas_call(
        spatial_gate_kernel,
        out_shape=jax.ShapeDtypeStruct((N, C, H, W), x.dtype),
        grid_spec=pltpu.PrefetchScalarGridSpec(
            num_scalar_prefetch=0,
            grid=(N,),
            in_specs=[
                pl.BlockSpec(memory_space=pltpu.MemorySpace.SMEM),   # folded weight
                pl.BlockSpec(memory_space=pltpu.MemorySpace.SMEM),   # folded bias
                pl.BlockSpec((1, C, H, W), lambda n: (n, 0, 0, 0)),  # unpadded x
            ],
            out_specs=pl.BlockSpec((1, C, H, W), lambda n: (n, 0, 0, 0)),
            scratch_shapes=[
                pltpu.VMEM((2, KS, H + 2 * PAD, W), jnp.float32),    # shifted pools
            ],
        ),
        compiler_params=pltpu.CompilerParams(
            dimension_semantics=("parallel",),
            vmem_limit_bytes=32 * 1024 * 1024,
        ),
    )(w_folded, b_folded, x)


def spatial_gate_reference(x, conv_w, bn_gamma, bn_beta, bn_mean, bn_var, eps=1e-5):
    """Pure-JAX reference (mirrors the PyTorch module in eval mode)."""
    ch_max = jnp.max(x, axis=1, keepdims=True)
    ch_mean = jnp.mean(x, axis=1, keepdims=True)
    pooled = jnp.concatenate([ch_max, ch_mean], axis=1)             # (N, 2, H, W)
    conv = jax.lax.conv_general_dilated(
        pooled, conv_w, window_strides=(1, 1),
        padding=[(PAD, PAD), (PAD, PAD)],
        dimension_numbers=("NCHW", "OIHW", "NCHW"))                 # (N, 1, H, W)
    bn = (conv - bn_mean) / jnp.sqrt(bn_var + eps) * bn_gamma + bn_beta
    return x * jax.nn.sigmoid(bn)


if __name__ == "__main__":
    key = jax.random.PRNGKey(0)
    kx, kw = jax.random.split(key)

    N, C, H, W = 2, 4, 16, 16
    x = jax.random.normal(kx, (N, C, H, W), dtype=jnp.float32)

    # Deterministic synthetic parameters (shapes from the module's __init__).
    # Conv2d(2, 1, 7, bias=False): weight (1, 2, 7, 7)
    conv_w = 0.1 * jax.random.normal(kw, (1, 2, KS, KS), dtype=jnp.float32)
    # BatchNorm2d(1) default init / fresh running stats (eval-mode semantics).
    bn_gamma = jnp.ones((1,), jnp.float32)
    bn_beta = jnp.zeros((1,), jnp.float32)
    bn_mean = jnp.zeros((1,), jnp.float32)
    bn_var = jnp.ones((1,), jnp.float32)

    out = spatial_gate(x, conv_w, bn_gamma, bn_beta, bn_mean, bn_var)
    out = jax.block_until_ready(out)

    ref = spatial_gate_reference(x, conv_w, bn_gamma, bn_beta, bn_mean, bn_var)
    ref = jax.block_until_ready(ref)

    assert out.shape == (N, C, H, W) and out.dtype == x.dtype
    import numpy as np
    np.testing.assert_allclose(np.asarray(out), np.asarray(ref),
                               rtol=1e-5, atol=1e-5)
    print("KERNEL_OK")
</pallas_src>

<mosaic_0001>
module attributes {stable_mosaic.version = 11 : i64} {
  func.func @spatial_gate_kernel(%arg0: i32, %arg1: memref<98xf32, #tpu.memory_space<smem>>, %arg2: memref<1xf32, #tpu.memory_space<smem>>, %arg3: memref<1x4x16x16xf32, #tpu.memory_space<vmem>>, %arg4: memref<1x4x16x16xf32, #tpu.memory_space<vmem>>, %arg5: memref<2x7x22x16xf32, #tpu.memory_space<vmem>>) attributes {dimension_semantics = [#tpu.dimension_semantics<parallel>], iteration_bounds = array<i64: 2>, scalar_prefetch = 0 : i64, scratch_operands = 1 : i64, tpu.core_type = #tpu.core_type<tc>, window_params = [{transform_indices = @transform_0, window_bounds = array<i64: 98>}, {transform_indices = @transform_1, window_bounds = array<i64: 1>}, {transform_indices = @transform_2, window_bounds = array<i64: 1, 4, 16, 16>}, {transform_indices = @transform_3, window_bounds = array<i64: 1, 4, 16, 16>}]} {
    %c0 = arith.constant 0 : index
    %c0_0 = arith.constant 0 : index
    %c0_1 = arith.constant 0 : index
    %c0_2 = arith.constant 0 : index
    %0 = vector.load %arg3[%c0, %c0_0, %c0_1, %c0_2] : memref<1x4x16x16xf32, #tpu.memory_space<vmem>>, vector<1x4x16x16xf32>
    %1 = vector.shape_cast %0 : vector<1x4x16x16xf32> to vector<4x16x16xf32>
    %cst = arith.constant dense<0xFF800000> : vector<16x16xf32>
    %2 = vector.multi_reduction <maximumf>, %1, %cst [0] : vector<4x16x16xf32> to vector<16x16xf32>
    %cst_3 = arith.constant dense<0.000000e+00> : vector<16x16xf32>
    %3 = vector.multi_reduction <add>, %1, %cst_3 [0] : vector<4x16x16xf32> to vector<16x16xf32>
    %cst_4 = arith.constant 2.500000e-01 : f32
    %4 = vector.broadcast %cst_4 : f32 to vector<16x16xf32>
    %5 = arith.mulf %3, %4 : vector<16x16xf32>
    %cst_5 = arith.constant 0.000000e+00 : f32
    %6 = vector.broadcast %cst_5 : f32 to vector<2x7x22x16xf32>
    %c0_6 = arith.constant 0 : index
    %c0_7 = arith.constant 0 : index
    %c0_8 = arith.constant 0 : index
    %c0_9 = arith.constant 0 : index
    %7 = vector.load %arg5[%c0_6, %c0_7, %c0_8, %c0_9] : memref<2x7x22x16xf32, #tpu.memory_space<vmem>>, vector<2x7x22x16xf32>
    tpu.vector_store %arg5[%c0_6, %c0_7, %c0_8, %c0_9], %6 {strides = array<i32>} : memref<2x7x22x16xf32, #tpu.memory_space<vmem>>, vector<2x7x22x16xf32>,
    %8 = vector.extract_strided_slice %2 {offsets = [0, 0], sizes = [16, 13], strides = [1, 1]} : vector<16x16xf32> to vector<16x13xf32>
    %c0_10 = arith.constant 0 : index
    %c0_11 = arith.constant 0 : index
    %c3 = arith.constant 3 : index
    %c3_12 = arith.constant 3 : index
    %9 = vector.load %arg5[%c0_10, %c0_11, %c3, %c3_12] : memref<2x7x22x16xf32, #tpu.memory_space<vmem>>, vector<1x1x16x13xf32>
    %10 = vector.shape_cast %9 : vector<1x1x16x13xf32> to vector<16x13xf32>
    %11 = vector.shape_cast %8 : vector<16x13xf32> to vector<1x1x16x13xf32>
    tpu.vector_store %arg5[%c0_10, %c0_11, %c3, %c3_12], %11 {strides = array<i32>} : memref<2x7x22x16xf32, #tpu.memory_space<vmem>>, vector<1x1x16x13xf32>,
    %12 = vector.extract_strided_slice %2 {offsets = [0, 0], sizes = [16, 14], strides = [1, 1]} : vector<16x16xf32> to vector<16x14xf32>
    %c0_13 = arith.constant 0 : index
    %c1 = arith.constant 1 : index
    %c3_14 = arith.constant 3 : index
    %c2 = arith.constant 2 : index
    %13 = vector.load %arg5[%c0_13, %c1, %c3_14, %c2] : memref<2x7x22x16xf32, #tpu.memory_space<vmem>>, vector<1x1x16x14xf32>
    %14 = vector.shape_cast %13 : vector<1x1x16x14xf32> to vector<16x14xf32>
    %15 = vector.shape_cast %12 : vector<16x14xf32> to vector<1x1x16x14xf32>
    tpu.vector_store %arg5[%c0_13, %c1, %c3_14, %c2], %15 {strides = array<i32>} : memref<2x7x22x16xf32, #tpu.memory_space<vmem>>, vector<1x1x16x14xf32>,
    %16 = vector.extract_strided_slice %2 {offsets = [0, 0], sizes = [16, 15], strides = [1, 1]} : vector<16x16xf32> to vector<16x15xf32>
    %c0_15 = arith.constant 0 : index
    %c2_16 = arith.constant 2 : index
    %c3_17 = arith.constant 3 : index
    %c1_18 = arith.constant 1 : index
    %17 = vector.load %arg5[%c0_15, %c2_16, %c3_17, %c1_18] : memref<2x7x22x16xf32, #tpu.memory_space<vmem>>, vector<1x1x16x15xf32>
    %18 = vector.shape_cast %17 : vector<1x1x16x15xf32> to vector<16x15xf32>
    %19 = vector.shape_cast %16 : vector<16x15xf32> to vector<1x1x16x15xf32>
    tpu.vector_store %arg5[%c0_15, %c2_16, %c3_17, %c1_18], %19 {strides = array<i32>} : memref<2x7x22x16xf32, #tpu.memory_space<vmem>>, vector<1x1x16x15xf32>,
    %c0_19 = arith.constant 0 : index
    %c3_20 = arith.constant 3 : index
    %c3_21 = arith.constant 3 : index
    %c0_22 = arith.constant 0 : index
    %20 = vector.load %arg5[%c0_19, %c3_20, %c3_21, %c0_22] : memref<2x7x22x16xf32, #tpu.memory_space<vmem>>, vector<1x1x16x16xf32>
    %21 = vector.shape_cast %20 : vector<1x1x16x16xf32> to vector<16x16xf32>
    %22 = vector.shape_cast %2 : vector<16x16xf32> to vector<1x1x16x16xf32>
    tpu.vector_store %arg5[%c0_19, %c3_20, %c3_21, %c0_22], %22 {strides = array<i32>} : memref<2x7x22x16xf32, #tpu.memory_space<vmem>>, vector<1x1x16x16xf32>,
    %23 = vector.extract_strided_slice %2 {offsets = [0, 1], sizes = [16, 15], strides = [1, 1]} : vector<16x16xf32> to vector<16x15xf32>
    %c0_23 = arith.constant 0 : index
    %c4 = arith.constant 4 : index
    %c3_24 = arith.constant 3 : index
    %c0_25 = arith.constant 0 : index
    %24 = vector.load %arg5[%c0_23, %c4, %c3_24, %c0_25] : memref<2x7x22x16xf32, #tpu.memory_space<vmem>>, vector<1x1x16x15xf32>
    %25 = vector.shape_cast %24 : vector<1x1x16x15xf32> to vector<16x15xf32>
    %26 = vector.shape_cast %23 : vector<16x15xf32> to vector<1x1x16x15xf32>
    tpu.vector_store %arg5[%c0_23, %c4, %c3_24, %c0_25], %26 {strides = array<i32>} : memref<2x7x22x16xf32, #tpu.memory_space<vmem>>, vector<1x1x16x15xf32>,
    %27 = vector.extract_strided_slice %2 {offsets = [0, 2], sizes = [16, 14], strides = [1, 1]} : vector<16x16xf32> to vector<16x14xf32>
    %c0_26 = arith.constant 0 : index
    %c5 = arith.constant 5 : index
    %c3_27 = arith.constant 3 : index
    %c0_28 = arith.constant 0 : index
    %28 = vector.load %arg5[%c0_26, %c5, %c3_27, %c0_28] : memref<2x7x22x16xf32, #tpu.memory_space<vmem>>, vector<1x1x16x14xf32>
    %29 = vector.shape_cast %28 : vector<1x1x16x14xf32> to vector<16x14xf32>
    %30 = vector.shape_cast %27 : vector<16x14xf32> to vector<1x1x16x14xf32>
    tpu.vector_store %arg5[%c0_26, %c5, %c3_27, %c0_28], %30 {strides = array<i32>} : memref<2x7x22x16xf32, #tpu.memory_space<vmem>>, vector<1x1x16x14xf32>,
    %31 = vector.extract_strided_slice %2 {offsets = [0, 3], sizes = [16, 13], strides = [1, 1]} : vector<16x16xf32> to vector<16x13xf32>
    %c0_29 = arith.constant 0 : index
    %c6 = arith.constant 6 : index
    %c3_30 = arith.constant 3 : index
    %c0_31 = arith.constant 0 : index
    %32 = vector.load %arg5[%c0_29, %c6, %c3_30, %c0_31] : memref<2x7x22x16xf32, #tpu.memory_space<vmem>>, vector<1x1x16x13xf32>
    %33 = vector.shape_cast %32 : vector<1x1x16x13xf32> to vector<16x13xf32>
    %34 = vector.shape_cast %31 : vector<16x13xf32> to vector<1x1x16x13xf32>
    tpu.vector_store %arg5[%c0_29, %c6, %c3_30, %c0_31], %34 {strides = array<i32>} : memref<2x7x22x16xf32, #tpu.memory_space<vmem>>, vector<1x1x16x13xf32>,
    %35 = vector.extract_strided_slice %5 {offsets = [0, 0], sizes = [16, 13], strides = [1, 1]} : vector<16x16xf32> to vector<16x13xf32>
    %c1_32 = arith.constant 1 : index
    %c0_33 = arith.constant 0 : index
    %c3_34 = arith.constant 3 : index
    %c3_35 = arith.constant 3 : index
    %36 = vector.load %arg5[%c1_32, %c0_33, %c3_34, %c3_35] : memref<2x7x22x16xf32, #tpu.memory_space<vmem>>, vector<1x1x16x13xf32>
    %37 = vector.shape_cast %36 : vector<1x1x16x13xf32> to vector<16x13xf32>
    %38 = vector.shape_cast %35 : vector<16x13xf32> to vector<1x1x16x13xf32>
    tpu.vector_store %arg5[%c1_32, %c0_33, %c3_34, %c3_35], %38 {strides = array<i32>} : memref<2x7x22x16xf32, #tpu.memory_space<vmem>>, vector<1x1x16x13xf32>,
    %39 = vector.extract_strided_slice %5 {offsets = [0, 0], sizes = [16, 14], strides = [1, 1]} : vector<16x16xf32> to vector<16x14xf32>
    %c1_36 = arith.constant 1 : index
    %c1_37 = arith.constant 1 : index
    %c3_38 = arith.constant 3 : index
    %c2_39 = arith.constant 2 : index
    %40 = vector.load %arg5[%c1_36, %c1_37, %c3_38, %c2_39] : memref<2x7x22x16xf32, #tpu.memory_space<vmem>>, vector<1x1x16x14xf32>
    %41 = vector.shape_cast %40 : vector<1x1x16x14xf32> to vector<16x14xf32>
    %42 = vector.shape_cast %39 : vector<16x14xf32> to vector<1x1x16x14xf32>
    tpu.vector_store %arg5[%c1_36, %c1_37, %c3_38, %c2_39], %42 {strides = array<i32>} : memref<2x7x22x16xf32, #tpu.memory_space<vmem>>, vector<1x1x16x14xf32>,
    %43 = vector.extract_strided_slice %5 {offsets = [0, 0], sizes = [16, 15], strides = [1, 1]} : vector<16x16xf32> to vector<16x15xf32>
    %c1_40 = arith.constant 1 : index
    %c2_41 = arith.constant 2 : index
    %c3_42 = arith.constant 3 : index
    %c1_43 = arith.constant 1 : index
    %44 = vector.load %arg5[%c1_40, %c2_41, %c3_42, %c1_43] : memref<2x7x22x16xf32, #tpu.memory_space<vmem>>, vector<1x1x16x15xf32>
    %45 = vector.shape_cast %44 : vector<1x1x16x15xf32> to vector<16x15xf32>
    %46 = vector.shape_cast %43 : vector<16x15xf32> to vector<1x1x16x15xf32>
    tpu.vector_store %arg5[%c1_40, %c2_41, %c3_42, %c1_43], %46 {strides = array<i32>} : memref<2x7x22x16xf32, #tpu.memory_space<vmem>>, vector<1x1x16x15xf32>,
    %c1_44 = arith.constant 1 : index
    %c3_45 = arith.constant 3 : index
    %c3_46 = arith.constant 3 : index
    %c0_47 = arith.constant 0 : index
    %47 = vector.load %arg5[%c1_44, %c3_45, %c3_46, %c0_47] : memref<2x7x22x16xf32, #tpu.memory_space<vmem>>, vector<1x1x16x16xf32>
    %48 = vector.shape_cast %47 : vector<1x1x16x16xf32> to vector<16x16xf32>
    %49 = vector.shape_cast %5 : vector<16x16xf32> to vector<1x1x16x16xf32>
    tpu.vector_store %arg5[%c1_44, %c3_45, %c3_46, %c0_47], %49 {strides = array<i32>} : memref<2x7x22x16xf32, #tpu.memory_space<vmem>>, vector<1x1x16x16xf32>,
    %50 = vector.extract_strided_slice %5 {offsets = [0, 1], sizes = [16, 15], strides = [1, 1]} : vector<16x16xf32> to vector<16x15xf32>
    %c1_48 = arith.constant 1 : index
    %c4_49 = arith.constant 4 : index
    %c3_50 = arith.constant 3 : index
    %c0_51 = arith.constant 0 : index
    %51 = vector.load %arg5[%c1_48, %c4_49, %c3_50, %c0_51] : memref<2x7x22x16xf32, #tpu.memory_space<vmem>>, vector<1x1x16x15xf32>
    %52 = vector.shape_cast %51 : vector<1x1x16x15xf32> to vector<16x15xf32>
    %53 = vector.shape_cast %50 : vector<16x15xf32> to vector<1x1x16x15xf32>
    tpu.vector_store %arg5[%c1_48, %c4_49, %c3_50, %c0_51], %53 {strides = array<i32>} : memref<2x7x22x16xf32, #tpu.memory_space<vmem>>, vector<1x1x16x15xf32>,
    %54 = vector.extract_strided_slice %5 {offsets = [0, 2], sizes = [16, 14], strides = [1, 1]} : vector<16x16xf32> to vector<16x14xf32>
    %c1_52 = arith.constant 1 : index
    %c5_53 = arith.constant 5 : index
    %c3_54 = arith.constant 3 : index
    %c0_55 = arith.constant 0 : index
    %55 = vector.load %arg5[%c1_52, %c5_53, %c3_54, %c0_55] : memref<2x7x22x16xf32, #tpu.memory_space<vmem>>, vector<1x1x16x14xf32>
    %56 = vector.shape_cast %55 : vector<1x1x16x14xf32> to vector<16x14xf32>
    %57 = vector.shape_cast %54 : vector<16x14xf32> to vector<1x1x16x14xf32>
    tpu.vector_store %arg5[%c1_52, %c5_53, %c3_54, %c0_55], %57 {strides = array<i32>} : memref<2x7x22x16xf32, #tpu.memory_space<vmem>>, vector<1x1x16x14xf32>,
    %58 = vector.extract_strided_slice %5 {offsets = [0, 3], sizes = [16, 13], strides = [1, 1]} : vector<16x16xf32> to vector<16x13xf32>
    %c1_56 = arith.constant 1 : index
    %c6_57 = arith.constant 6 : index
    %c3_58 = arith.constant 3 : index
    %c0_59 = arith.constant 0 : index
    %59 = vector.load %arg5[%c1_56, %c6_57, %c3_58, %c0_59] : memref<2x7x22x16xf32, #tpu.memory_space<vmem>>, vector<1x1x16x13xf32>
    %60 = vector.shape_cast %59 : vector<1x1x16x13xf32> to vector<16x13xf32>
    %61 = vector.shape_cast %58 : vector<16x13xf32> to vector<1x1x16x13xf32>
    tpu.vector_store %arg5[%c1_56, %c6_57, %c3_58, %c0_59], %61 {strides = array<i32>} : memref<2x7x22x16xf32, #tpu.memory_space<vmem>>, vector<1x1x16x13xf32>,
    %cst_60 = arith.constant 0.000000e+00 : f32
    %62 = vector.broadcast %cst_60 : f32 to vector<16x16xf32>
    %cst_61 = arith.constant 0.000000e+00 : f32
    %63 = vector.broadcast %cst_61 : f32 to vector<16x16xf32>
    %cst_62 = arith.constant 0.000000e+00 : f32
    %64 = vector.broadcast %cst_62 : f32 to vector<16x16xf32>
    %cst_63 = arith.constant 0.000000e+00 : f32
    %65 = vector.broadcast %cst_63 : f32 to vector<16x16xf32>
    %c0_64 = arith.constant 0 : index
    %66 = memref.load %arg1[%c0_64] : memref<98xf32, #tpu.memory_space<smem>>
    %c0_65 = arith.constant 0 : index
    %c0_66 = arith.constant 0 : index
    %c0_67 = arith.constant 0 : index
    %c0_68 = arith.constant 0 : index
    %67 = vector.load %arg5[%c0_65, %c0_66, %c0_67, %c0_68] : memref<2x7x22x16xf32, #tpu.memory_space<vmem>>, vector<1x1x16x16xf32>
    %68 = vector.shape_cast %67 : vector<1x1x16x16xf32> to vector<16x16xf32>
    %69 = vector.broadcast %66 : f32 to vector<16x16xf32>
    %70 = arith.mulf %69, %68 : vector<16x16xf32>
    %71 = arith.addf %62, %70 : vector<16x16xf32>
    %c7 = arith.constant 7 : index
    %72 = memref.load %arg1[%c7] : memref<98xf32, #tpu.memory_space<smem>>
    %c0_69 = arith.constant 0 : index
    %c0_70 = arith.constant 0 : index
    %c1_71 = arith.constant 1 : index
    %c0_72 = arith.constant 0 : index
    %73 = vector.load %arg5[%c0_69, %c0_70, %c1_71, %c0_72] : memref<2x7x22x16xf32, #tpu.memory_space<vmem>>, vector<1x1x16x16xf32>
    %74 = vector.shape_cast %73 : vector<1x1x16x16xf32> to vector<16x16xf32>
    %75 = vector.broadcast %72 : f32 to vector<16x16xf32>
    %76 = arith.mulf %75, %74 : vector<16x16xf32>
    %77 = arith.addf %63, %76 : vector<16x16xf32>
    %c14 = arith.constant 14 : index
    %78 = memref.load %arg1[%c14] : memref<98xf32, #tpu.memory_space<smem>>
    %c0_73 = arith.constant 0 : index
    %c0_74 = arith.constant 0 : index
    %c2_75 = arith.constant 2 : index
    %c0_76 = arith.constant 0 : index
    %79 = vector.load %arg5[%c0_73, %c0_74, %c2_75, %c0_76] : memref<2x7x22x16xf32, #tpu.memory_space<vmem>>, vector<1x1x16x16xf32>
    %80 = vector.shape_cast %79 : vector<1x1x16x16xf32> to vector<16x16xf32>
    %81 = vector.broadcast %78 : f32 to vector<16x16xf32>
    %82 = arith.mulf %81, %80 : vector<16x16xf32>
    %83 = arith.addf %64, %82 : vector<16x16xf32>
    %c21 = arith.constant 21 : index
    %84 = memref.load %arg1[%c21] : memref<98xf32, #tpu.memory_space<smem>>
    %c0_77 = arith.constant 0 : index
    %c0_78 = arith.constant 0 : index
    %c3_79 = arith.constant 3 : index
    %c0_80 = arith.constant 0 : index
    %85 = vector.load %arg5[%c0_77, %c0_78, %c3_79, %c0_80] : memref<2x7x22x16xf32, #tpu.memory_space<vmem>>, vector<1x1x16x16xf32>
    %86 = vector.shape_cast %85 : vector<1x1x16x16xf32> to vector<16x16xf32>
    %87 = vector.broadcast %84 : f32 to vector<16x16xf32>
    %88 = arith.mulf %87, %86 : vector<16x16xf32>
    %89 = arith.addf %65, %88 : vector<16x16xf32>
    %c28 = arith.constant 28 : index
    %90 = memref.load %arg1[%c28] : memref<98xf32, #tpu.memory_space<smem>>
    %c0_81 = arith.constant 0 : index
    %c0_82 = arith.constant 0 : index
    %c4_83 = arith.constant 4 : index
    %c0_84 = arith.constant 0 : index
    %91 = vector.load %arg5[%c0_81, %c0_82, %c4_83, %c0_84] : memref<2x7x22x16xf32, #tpu.memory_space<vmem>>, vector<1x1x16x16xf32>
    %92 = vector.shape_cast %91 : vector<1x1x16x16xf32> to vector<16x16xf32>
    %93 = vector.broadcast %90 : f32 to vector<16x16xf32>
    %94 = arith.mulf %93, %92 : vector<16x16xf32>
    %95 = arith.addf %71, %94 : vector<16x16xf32>
    %c35 = arith.constant 35 : index
    %96 = memref.load %arg1[%c35] : memref<98xf32, #tpu.memory_space<smem>>
    %c0_85 = arith.constant 0 : index
    %c0_86 = arith.constant 0 : index
    %c5_87 = arith.constant 5 : index
    %c0_88 = arith.constant 0 : index
    %97 = vector.load %arg5[%c0_85, %c0_86, %c5_87, %c0_88] : memref<2x7x22x16xf32, #tpu.memory_space<vmem>>, vector<1x1x16x16xf32>
    %98 = vector.shape_cast %97 : vector<1x1x16x16xf32> to vector<16x16xf32>
    %99 = vector.broadcast %96 : f32 to vector<16x16xf32>
    %100 = arith.mulf %99, %98 : vector<16x16xf32>
    %101 = arith.addf %77, %100 : vector<16x16xf32>
    %c42 = arith.constant 42 : index
    %102 = memref.load %arg1[%c42] : memref<98xf32, #tpu.memory_space<smem>>
    %c0_89 = arith.constant 0 : index
    %c0_90 = arith.constant 0 : index
    %c6_91 = arith.constant 6 : index
    %c0_92 = arith.constant 0 : index
    %103 = vector.load %arg5[%c0_89, %c0_90, %c6_91, %c0_92] : memref<2x7x22x16xf32, #tpu.memory_space<vmem>>, vector<1x1x16x16xf32>
    %104 = vector.shape_cast %103 : vector<1x1x16x16xf32> to vector<16x16xf32>
    %105 = vector.broadcast %102 : f32 to vector<16x16xf32>
    %106 = arith.mulf %105, %104 : vector<16x16xf32>
    %107 = arith.addf %83, %106 : vector<16x16xf32>
    %c1_93 = arith.constant 1 : index
    %108 = memref.load %arg1[%c1_93] : memref<98xf32, #tpu.memory_space<smem>>
    %c0_94 = arith.constant 0 : index
    %c1_95 = arith.constant 1 : index
    %c0_96 = arith.constant 0 : index
    %c0_97 = arith.constant 0 : index
    %109 = vector.load %arg5[%c0_94, %c1_95, %c0_96, %c0_97] : memref<2x7x22x16xf32, #tpu.memory_space<vmem>>, vector<1x1x16x16xf32>
    %110 = vector.shape_cast %109 : vector<1x1x16x16xf32> to vector<16x16xf32>
    %111 = vector.broadcast %108 : f32 to vector<16x16xf32>
    %112 = arith.mulf %111, %110 : vector<16x16xf32>
    %113 = arith.addf %89, %112 : vector<16x16xf32>
    %c8 = arith.constant 8 : index
    %114 = memref.load %arg1[%c8] : memref<98xf32, #tpu.memory_space<smem>>
    %c0_98 = arith.constant 0 : index
    %c1_99 = arith.constant 1 : index
    %c1_100 = arith.constant 1 : index
    %c0_101 = arith.constant 0 : index
    %115 = vector.load %arg5[%c0_98, %c1_99, %c1_100, %c0_101] : memref<2x7x22x16xf32, #tpu.memory_space<vmem>>, vector<1x1x16x16xf32>
    %116 = vector.shape_cast %115 : vector<1x1x16x16xf32> to vector<16x16xf32>
    %117 = vector.broadcast %114 : f32 to vector<16x16xf32>
    %118 = arith.mulf %117, %116 : vector<16x16xf32>
    %119 = arith.addf %95, %118 : vector<16x16xf32>
    %c15 = arith.constant 15 : index
    %120 = memref.load %arg1[%c15] : memref<98xf32, #tpu.memory_space<smem>>
    %c0_102 = arith.constant 0 : index
    %c1_103 = arith.constant 1 : index
    %c2_104 = arith.constant 2 : index
    %c0_105 = arith.constant 0 : index
    %121 = vector.load %arg5[%c0_102, %c1_103, %c2_104, %c0_105] : memref<2x7x22x16xf32, #tpu.memory_space<vmem>>, vector<1x1x16x16xf32>
    %122 = vector.shape_cast %121 : vector<1x1x16x16xf32> to vector<16x16xf32>
    %123 = vector.broadcast %120 : f32 to vector<16x16xf32>
    %124 = arith.mulf %123, %122 : vector<16x16xf32>
    %125 = arith.addf %101, %124 : vector<16x16xf32>
    %c22 = arith.constant 22 : index
    %126 = memref.load %arg1[%c22] : memref<98xf32, #tpu.memory_space<smem>>
    %c0_106 = arith.constant 0 : index
    %c1_107 = arith.constant 1 : index
    %c3_108 = arith.constant 3 : index
    %c0_109 = arith.constant 0 : index
    %127 = vector.load %arg5[%c0_106, %c1_107, %c3_108, %c0_109] : memref<2x7x22x16xf32, #tpu.memory_space<vmem>>, vector<1x1x16x16xf32>
    %128 = vector.shape_cast %127 : vector<1x1x16x16xf32> to vector<16x16xf32>
    %129 = vector.broadcast %126 : f32 to vector<16x16xf32>
    %130 = arith.mulf %129, %128 : vector<16x16xf32>
    %131 = arith.addf %107, %130 : vector<16x16xf32>
    %c29 = arith.constant 29 : index
    %132 = memref.load %arg1[%c29] : memref<98xf32, #tpu.memory_space<smem>>
    %c0_110 = arith.constant 0 : index
    %c1_111 = arith.constant 1 : index
    %c4_112 = arith.constant 4 : index
    %c0_113 = arith.constant 0 : index
    %133 = vector.load %arg5[%c0_110, %c1_111, %c4_112, %c0_113] : memref<2x7x22x16xf32, #tpu.memory_space<vmem>>, vector<1x1x16x16xf32>
    %134 = vector.shape_cast %133 : vector<1x1x16x16xf32> to vector<16x16xf32>
    %135 = vector.broadcast %132 : f32 to vector<16x16xf32>
    %136 = arith.mulf %135, %134 : vector<16x16xf32>
    %137 = arith.addf %113, %136 : vector<16x16xf32>
    %c36 = arith.constant 36 : index
    %138 = memref.load %arg1[%c36] : memref<98xf32, #tpu.memory_space<smem>>
    %c0_114 = arith.constant 0 : index
    %c1_115 = arith.constant 1 : index
    %c5_116 = arith.constant 5 : index
    %c0_117 = arith.constant 0 : index
    %139 = vector.load %arg5[%c0_114, %c1_115, %c5_116, %c0_117] : memref<2x7x22x16xf32, #tpu.memory_space<vmem>>, vector<1x1x16x16xf32>
    %140 = vector.shape_cast %139 : vector<1x1x16x16xf32> to vector<16x16xf32>
    %141 = vector.broadcast %138 : f32 to vector<16x16xf32>
    %142 = arith.mulf %141, %140 : vector<16x16xf32>
    %143 = arith.addf %119, %142 : vector<16x16xf32>
    %c43 = arith.constant 43 : index
    %144 = memref.load %arg1[%c43] : memref<98xf32, #tpu.memory_space<smem>>
    %c0_118 = arith.constant 0 : index
    %c1_119 = arith.constant 1 : index
    %c6_120 = arith.constant 6 : index
    %c0_121 = arith.constant 0 : index
    %145 = vector.load %arg5[%c0_118, %c1_119, %c6_120, %c0_121] : memref<2x7x22x16xf32, #tpu.memory_space<vmem>>, vector<1x1x16x16xf32>
    %146 = vector.shape_cast %145 : vector<1x1x16x16xf32> to vector<16x16xf32>
    %147 = vector.broadcast %144 : f32 to vector<16x16xf32>
    %148 = arith.mulf %147, %146 : vector<16x16xf32>
    %149 = arith.addf %125, %148 : vector<16x16xf32>
    %c2_122 = arith.constant 2 : index
    %150 = memref.load %arg1[%c2_122] : memref<98xf32, #tpu.memory_space<smem>>
    %c0_123 = arith.constant 0 : index
    %c2_124 = arith.constant 2 : index
    %c0_125 = arith.constant 0 : index
    %c0_126 = arith.constant 0 : index
    %151 = vector.load %arg5[%c0_123, %c2_124, %c0_125, %c0_126] : memref<2x7x22x16xf32, #tpu.memory_space<vmem>>, vector<1x1x16x16xf32>
    %152 = vector.shape_cast %151 : vector<1x1x16x16xf32> to vector<16x16xf32>
    %153 = vector.broadcast %150 : f32 to vector<16x16xf32>
    %154 = arith.mulf %153, %152 : vector<16x16xf32>
    %155 = arith.addf %131, %154 : vector<16x16xf32>
    %c9 = arith.constant 9 : index
    %156 = memref.load %arg1[%c9] : memref<98xf32, #tpu.memory_space<smem>>
    %c0_127 = arith.constant 0 : index
    %c2_128 = arith.constant 2 : index
    %c1_129 = arith.constant 1 : index
    %c0_130 = arith.constant 0 : index
    %157 = vector.load %arg5[%c0_127, %c2_128, %c1_129, %c0_130] : memref<2x7x22x16xf32, #tpu.memory_space<vmem>>, vector<1x1x16x16xf32>
    %158 = vector.shape_cast %157 : vector<1x1x16x16xf32> to vector<16x16xf32>
    %159 = vector.broadcast %156 : f32 to vector<16x16xf32>
    %160 = arith.mulf %159, %158 : vector<16x16xf32>
    %161 = arith.addf %137, %160 : vector<16x16xf32>
    %c16 = arith.constant 16 : index
    %162 = memref.load %arg1[%c16] : memref<98xf32, #tpu.memory_space<smem>>
    %c0_131 = arith.constant 0 : index
    %c2_132 = arith.constant 2 : index
    %c2_133 = arith.constant 2 : index
    %c0_134 = arith.constant 0 : index
    %163 = vector.load %arg5[%c0_131, %c2_132, %c2_133, %c0_134] : memref<2x7x22x16xf32, #tpu.memory_space<vmem>>, vector<1x1x16x16xf32>
    %164 = vector.shape_cast %163 : vector<1x1x16x16xf32> to vector<16x16xf32>
    %165 = vector.broadcast %162 : f32 to vector<16x16xf32>
    %166 = arith.mulf %165, %164 : vector<16x16xf32>
    %167 = arith.addf %143, %166 : vector<16x16xf32>
    %c23 = arith.constant 23 : index
    %168 = memref.load %arg1[%c23] : memref<98xf32, #tpu.memory_space<smem>>
    %c0_135 = arith.constant 0 : index
    %c2_136 = arith.constant 2 : index
    %c3_137 = arith.constant 3 : index
    %c0_138 = arith.constant 0 : index
    %169 = vector.load %arg5[%c0_135, %c2_136, %c3_137, %c0_138] : memref<2x7x22x16xf32, #tpu.memory_space<vmem>>, vector<1x1x16x16xf32>
    %170 = vector.shape_cast %169 : vector<1x1x16x16xf32> to vector<16x16xf32>
    %171 = vector.broadcast %168 : f32 to vector<16x16xf32>
    %172 = arith.mulf %171, %170 : vector<16x16xf32>
    %173 = arith.addf %149, %172 : vector<16x16xf32>
    %c30 = arith.constant 30 : index
    %174 = memref.load %arg1[%c30] : memref<98xf32, #tpu.memory_space<smem>>
    %c0_139 = arith.constant 0 : index
    %c2_140 = arith.constant 2 : index
    %c4_141 = arith.constant 4 : index
    %c0_142 = arith.constant 0 : index
    %175 = vector.load %arg5[%c0_139, %c2_140, %c4_141, %c0_142] : memref<2x7x22x16xf32, #tpu.memory_space<vmem>>, vector<1x1x16x16xf32>
    %176 = vector.shape_cast %175 : vector<1x1x16x16xf32> to vector<16x16xf32>
    %177 = vector.broadcast %174 : f32 to vector<16x16xf32>
    %178 = arith.mulf %177, %176 : vector<16x16xf32>
    %179 = arith.addf %155, %178 : vector<16x16xf32>
    %c37 = arith.constant 37 : index
    %180 = memref.load %arg1[%c37] : memref<98xf32, #tpu.memory_space<smem>>
    %c0_143 = arith.constant 0 : index
    %c2_144 = arith.constant 2 : index
    %c5_145 = arith.constant 5 : index
    %c0_146 = arith.constant 0 : index
    %181 = vector.load %arg5[%c0_143, %c2_144, %c5_145, %c0_146] : memref<2x7x22x16xf32, #tpu.memory_space<vmem>>, vector<1x1x16x16xf32>
    %182 = vector.shape_cast %181 : vector<1x1x16x16xf32> to vector<16x16xf32>
    %183 = vector.broadcast %180 : f32 to vector<16x16xf32>
    %184 = arith.mulf %183, %182 : vector<16x16xf32>
    %185 = arith.addf %161, %184 : vector<16x16xf32>
    %c44 = arith.constant 44 : index
    %186 = memref.load %arg1[%c44] : memref<98xf32, #tpu.memory_space<smem>>
    %c0_147 = arith.constant 0 : index
    %c2_148 = arith.constant 2 : index
    %c6_149 = arith.constant 6 : index
    %c0_150 = arith.constant 0 : index
    %187 = vector.load %arg5[%c0_147, %c2_148, %c6_149, %c0_150] : memref<2x7x22x16xf32, #tpu.memory_space<vmem>>, vector<1x1x16x16xf32>
    %188 = vector.shape_cast %187 : vector<1x1x16x16xf32> to vector<16x16xf32>
    %189 = vector.broadcast %186 : f32 to vector<16x16xf32>
    %190 = arith.mulf %189, %188 : vector<16x16xf32>
    %191 = arith.addf %167, %190 : vector<16x16xf32>
    %c3_151 = arith.constant 3 : index
    %192 = memref.load %arg1[%c3_151] : memref<98xf32, #tpu.memory_space<smem>>
    %c0_152 = arith.constant 0 : index
    %c3_153 = arith.constant 3 : index
    %c0_154 = arith.constant 0 : index
    %c0_155 = arith.constant 0 : index
    %193 = vector.load %arg5[%c0_152, %c3_153, %c0_154, %c0_155] : memref<2x7x22x16xf32, #tpu.memory_space<vmem>>, vector<1x1x16x16xf32>
    %194 = vector.shape_cast %193 : vector<1x1x16x16xf32> to vector<16x16xf32>
    %195 = vector.broadcast %192 : f32 to vector<16x16xf32>
    %196 = arith.mulf %195, %194 : vector<16x16xf32>
    %197 = arith.addf %173, %196 : vector<16x16xf32>
    %c10 = arith.constant 10 : index
    %198 = memref.load %arg1[%c10] : memref<98xf32, #tpu.memory_space<smem>>
    %c0_156 = arith.constant 0 : index
    %c3_157 = arith.constant 3 : index
    %c1_158 = arith.constant 1 : index
    %c0_159 = arith.constant 0 : index
    %199 = vector.load %arg5[%c0_156, %c3_157, %c1_158, %c0_159] : memref<2x7x22x16xf32, #tpu.memory_space<vmem>>, vector<1x1x16x16xf32>
    %200 = vector.shape_cast %199 : vector<1x1x16x16xf32> to vector<16x16xf32>
    %201 = vector.broadcast %198 : f32 to vector<16x16xf32>
    %202 = arith.mulf %201, %200 : vector<16x16xf32>
    %203 = arith.addf %179, %202 : vector<16x16xf32>
    %c17 = arith.constant 17 : index
    %204 = memref.load %arg1[%c17] : memref<98xf32, #tpu.memory_space<smem>>
    %c0_160 = arith.constant 0 : index
    %c3_161 = arith.constant 3 : index
    %c2_162 = arith.constant 2 : index
    %c0_163 = arith.constant 0 : index
    %205 = vector.load %arg5[%c0_160, %c3_161, %c2_162, %c0_163] : memref<2x7x22x16xf32, #tpu.memory_space<vmem>>, vector<1x1x16x16xf32>
    %206 = vector.shape_cast %205 : vector<1x1x16x16xf32> to vector<16x16xf32>
    %207 = vector.broadcast %204 : f32 to vector<16x16xf32>
    %208 = arith.mulf %207, %206 : vector<16x16xf32>
    %209 = arith.addf %185, %208 : vector<16x16xf32>
    %c24 = arith.constant 24 : index
    %210 = memref.load %arg1[%c24] : memref<98xf32, #tpu.memory_space<smem>>
    %c0_164 = arith.constant 0 : index
    %c3_165 = arith.constant 3 : index
    %c3_166 = arith.constant 3 : index
    %c0_167 = arith.constant 0 : index
    %211 = vector.load %arg5[%c0_164, %c3_165, %c3_166, %c0_167] : memref<2x7x22x16xf32, #tpu.memory_space<vmem>>, vector<1x1x16x16xf32>
    %212 = vector.shape_cast %211 : vector<1x1x16x16xf32> to vector<16x16xf32>
    %213 = vector.broadcast %210 : f32 to vector<16x16xf32>
    %214 = arith.mulf %213, %212 : vector<16x16xf32>
    %215 = arith.addf %191, %214 : vector<16x16xf32>
    %c31 = arith.constant 31 : index
    %216 = memref.load %arg1[%c31] : memref<98xf32, #tpu.memory_space<smem>>
    %c0_168 = arith.constant 0 : index
    %c3_169 = arith.constant 3 : index
    %c4_170 = arith.constant 4 : index
    %c0_171 = arith.constant 0 : index
    %217 = vector.load %arg5[%c0_168, %c3_169, %c4_170, %c0_171] : memref<2x7x22x16xf32, #tpu.memory_space<vmem>>, vector<1x1x16x16xf32>
    %218 = vector.shape_cast %217 : vector<1x1x16x16xf32> to vector<16x16xf32>
    %219 = vector.broadcast %216 : f32 to vector<16x16xf32>
    %220 = arith.mulf %219, %218 : vector<16x16xf32>
    %221 = arith.addf %197, %220 : vector<16x16xf32>
    %c38 = arith.constant 38 : index
    %222 = memref.load %arg1[%c38] : memref<98xf32, #tpu.memory_space<smem>>
    %c0_172 = arith.constant 0 : index
    %c3_173 = arith.constant 3 : index
    %c5_174 = arith.constant 5 : index
    %c0_175 = arith.constant 0 : index
    %223 = vector.load %arg5[%c0_172, %c3_173, %c5_174, %c0_175] : memref<2x7x22x16xf32, #tpu.memory_space<vmem>>, vector<1x1x16x16xf32>
    %224 = vector.shape_cast %223 : vector<1x1x16x16xf32> to vector<16x16xf32>
    %225 = vector.broadcast %222 : f32 to vector<16x16xf32>
    %226 = arith.mulf %225, %224 : vector<16x16xf32>
    %227 = arith.addf %203, %226 : vector<16x16xf32>
    %c45 = arith.constant 45 : index
    %228 = memref.load %arg1[%c45] : memref<98xf32, #tpu.memory_space<smem>>
    %c0_176 = arith.constant 0 : index
    %c3_177 = arith.constant 3 : index
    %c6_178 = arith.constant 6 : index
    %c0_179 = arith.constant 0 : index
    %229 = vector.load %arg5[%c0_176, %c3_177, %c6_178, %c0_179] : memref<2x7x22x16xf32, #tpu.memory_space<vmem>>, vector<1x1x16x16xf32>
    %230 = vector.shape_cast %229 : vector<1x1x16x16xf32> to vector<16x16xf32>
    %231 = vector.broadcast %228 : f32 to vector<16x16xf32>
    %232 = arith.mulf %231, %230 : vector<16x16xf32>
    %233 = arith.addf %209, %232 : vector<16x16xf32>
    %c4_180 = arith.constant 4 : index
    %234 = memref.load %arg1[%c4_180] : memref<98xf32, #tpu.memory_space<smem>>
    %c0_181 = arith.constant 0 : index
    %c4_182 = arith.constant 4 : index
    %c0_183 = arith.constant 0 : index
    %c0_184 = arith.constant 0 : index
    %235 = vector.load %arg5[%c0_181, %c4_182, %c0_183, %c0_184] : memref<2x7x22x16xf32, #tpu.memory_space<vmem>>, vector<1x1x16x16xf32>
    %236 = vector.shape_cast %235 : vector<1x1x16x16xf32> to vector<16x16xf32>
    %237 = vector.broadcast %234 : f32 to vector<16x16xf32>
    %238 = arith.mulf %237, %236 : vector<16x16xf32>
    %239 = arith.addf %215, %238 : vector<16x16xf32>
    %c11 = arith.constant 11 : index
    %240 = memref.load %arg1[%c11] : memref<98xf32, #tpu.memory_space<smem>>
    %c0_185 = arith.constant 0 : index
    %c4_186 = arith.constant 4 : index
    %c1_187 = arith.constant 1 : index
    %c0_188 = arith.constant 0 : index
    %241 = vector.load %arg5[%c0_185, %c4_186, %c1_187, %c0_188] : memref<2x7x22x16xf32, #tpu.memory_space<vmem>>, vector<1x1x16x16xf32>
    %242 = vector.shape_cast %241 : vector<1x1x16x16xf32> to vector<16x16xf32>
    %243 = vector.broadcast %240 : f32 to vector<16x16xf32>
    %244 = arith.mulf %243, %242 : vector<16x16xf32>
    %245 = arith.addf %221, %244 : vector<16x16xf32>
    %c18 = arith.constant 18 : index
    %246 = memref.load %arg1[%c18] : memref<98xf32, #tpu.memory_space<smem>>
    %c0_189 = arith.constant 0 : index
    %c4_190 = arith.constant 4 : index
    %c2_191 = arith.constant 2 : index
    %c0_192 = arith.constant 0 : index
    %247 = vector.load %arg5[%c0_189, %c4_190, %c2_191, %c0_192] : memref<2x7x22x16xf32, #tpu.memory_space<vmem>>, vector<1x1x16x16xf32>
    %248 = vector.shape_cast %247 : vector<1x1x16x16xf32> to vector<16x16xf32>
    %249 = vector.broadcast %246 : f32 to vector<16x16xf32>
    %250 = arith.mulf %249, %248 : vector<16x16xf32>
    %251 = arith.addf %227, %250 : vector<16x16xf32>
    %c25 = arith.constant 25 : index
    %252 = memref.load %arg1[%c25] : memref<98xf32, #tpu.memory_space<smem>>
    %c0_193 = arith.constant 0 : index
    %c4_194 = arith.constant 4 : index
    %c3_195 = arith.constant 3 : index
    %c0_196 = arith.constant 0 : index
    %253 = vector.load %arg5[%c0_193, %c4_194, %c3_195, %c0_196] : memref<2x7x22x16xf32, #tpu.memory_space<vmem>>, vector<1x1x16x16xf32>
    %254 = vector.shape_cast %253 : vector<1x1x16x16xf32> to vector<16x16xf32>
    %255 = vector.broadcast %252 : f32 to vector<16x16xf32>
    %256 = arith.mulf %255, %254 : vector<16x16xf32>
    %257 = arith.addf %233, %256 : vector<16x16xf32>
    %c32 = arith.constant 32 : index
    %258 = memref.load %arg1[%c32] : memref<98xf32, #tpu.memory_space<smem>>
    %c0_197 = arith.constant 0 : index
    %c4_198 = arith.constant 4 : index
    %c4_199 = arith.constant 4 : index
    %c0_200 = arith.constant 0 : index
    %259 = vector.load %arg5[%c0_197, %c4_198, %c4_199, %c0_200] : memref<2x7x22x16xf32, #tpu.memory_space<vmem>>, vector<1x1x16x16xf32>
    %260 = vector.shape_cast %259 : vector<1x1x16x16xf32> to vector<16x16xf32>
    %261 = vector.broadcast %258 : f32 to vector<16x16xf32>
    %262 = arith.mulf %261, %260 : vector<16x16xf32>
    %263 = arith.addf %239, %262 : vector<16x16xf32>
    %c39 = arith.constant 39 : index
    %264 = memref.load %arg1[%c39] : memref<98xf32, #tpu.memory_space<smem>>
    %c0_201 = arith.constant 0 : index
    %c4_202 = arith.constant 4 : index
    %c5_203 = arith.constant 5 : index
    %c0_204 = arith.constant 0 : index
    %265 = vector.load %arg5[%c0_201, %c4_202, %c5_203, %c0_204] : memref<2x7x22x16xf32, #tpu.memory_space<vmem>>, vector<1x1x16x16xf32>
    %266 = vector.shape_cast %265 : vector<1x1x16x16xf32> to vector<16x16xf32>
    %267 = vector.broadcast %264 : f32 to vector<16x16xf32>
    %268 = arith.mulf %267, %266 : vector<16x16xf32>
    %269 = arith.addf %245, %268 : vector<16x16xf32>
    %c46 = arith.constant 46 : index
    %270 = memref.load %arg1[%c46] : memref<98xf32, #tpu.memory_space<smem>>
    %c0_205 = arith.constant 0 : index
    %c4_206 = arith.constant 4 : index
    %c6_207 = arith.constant 6 : index
    %c0_208 = arith.constant 0 : index
    %271 = vector.load %arg5[%c0_205, %c4_206, %c6_207, %c0_208] : memref<2x7x22x16xf32, #tpu.memory_space<vmem>>, vector<1x1x16x16xf32>
    %272 = vector.shape_cast %271 : vector<1x1x16x16xf32> to vector<16x16xf32>
    %273 = vector.broadcast %270 : f32 to vector<16x16xf32>
    %274 = arith.mulf %273, %272 : vector<16x16xf32>
    %275 = arith.addf %251, %274 : vector<16x16xf32>
    %c5_209 = arith.constant 5 : index
    %276 = memref.load %arg1[%c5_209] : memref<98xf32, #tpu.memory_space<smem>>
    %c0_210 = arith.constant 0 : index
    %c5_211 = arith.constant 5 : index
    %c0_212 = arith.constant 0 : index
    %c0_213 = arith.constant 0 : index
    %277 = vector.load %arg5[%c0_210, %c5_211, %c0_212, %c0_213] : memref<2x7x22x16xf32, #tpu.memory_space<vmem>>, vector<1x1x16x16xf32>
    %278 = vector.shape_cast %277 : vector<1x1x16x16xf32> to vector<16x16xf32>
    %279 = vector.broadcast %276 : f32 to vector<16x16xf32>
    %280 = arith.mulf %279, %278 : vector<16x16xf32>
    %281 = arith.addf %257, %280 : vector<16x16xf32>
    %c12 = arith.constant 12 : index
    %282 = memref.load %arg1[%c12] : memref<98xf32, #tpu.memory_space<smem>>
    %c0_214 = arith.constant 0 : index
    %c5_215 = arith.constant 5 : index
    %c1_216 = arith.constant 1 : index
    %c0_217 = arith.constant 0 : index
    %283 = vector.load %arg5[%c0_214, %c5_215, %c1_216, %c0_217] : memref<2x7x22x16xf32, #tpu.memory_space<vmem>>, vector<1x1x16x16xf32>
    %284 = vector.shape_cast %283 : vector<1x1x16x16xf32> to vector<16x16xf32>
    %285 = vector.broadcast %282 : f32 to vector<16x16xf32>
    %286 = arith.mulf %285, %284 : vector<16x16xf32>
    %287 = arith.addf %263, %286 : vector<16x16xf32>
    %c19 = arith.constant 19 : index
    %288 = memref.load %arg1[%c19] : memref<98xf32, #tpu.memory_space<smem>>
    %c0_218 = arith.constant 0 : index
    %c5_219 = arith.constant 5 : index
    %c2_220 = arith.constant 2 : index
    %c0_221 = arith.constant 0 : index
    %289 = vector.load %arg5[%c0_218, %c5_219, %c2_220, %c0_221] : memref<2x7x22x16xf32, #tpu.memory_space<vmem>>, vector<1x1x16x16xf32>
    %290 = vector.shape_cast %289 : vector<1x1x16x16xf32> to vector<16x16xf32>
    %291 = vector.broadcast %288 : f32 to vector<16x16xf32>
    %292 = arith.mulf %291, %290 : vector<16x16xf32>
    %293 = arith.addf %269, %292 : vector<16x16xf32>
    %c26 = arith.constant 26 : index
    %294 = memref.load %arg1[%c26] : memref<98xf32, #tpu.memory_space<smem>>
    %c0_222 = arith.constant 0 : index
    %c5_223 = arith.constant 5 : index
    %c3_224 = arith.constant 3 : index
    %c0_225 = arith.constant 0 : index
    %295 = vector.load %arg5[%c0_222, %c5_223, %c3_224, %c0_225] : memref<2x7x22x16xf32, #tpu.memory_space<vmem>>, vector<1x1x16x16xf32>
    %296 = vector.shape_cast %295 : vector<1x1x16x16xf32> to vector<16x16xf32>
    %297 = vector.broadcast %294 : f32 to vector<16x16xf32>
    %298 = arith.mulf %297, %296 : vector<16x16xf32>
    %299 = arith.addf %275, %298 : vector<16x16xf32>
    %c33 = arith.constant 33 : index
    %300 = memref.load %arg1[%c33] : memref<98xf32, #tpu.memory_space<smem>>
    %c0_226 = arith.constant 0 : index
    %c5_227 = arith.constant 5 : index
    %c4_228 = arith.constant 4 : index
    %c0_229 = arith.constant 0 : index
    %301 = vector.load %arg5[%c0_226, %c5_227, %c4_228, %c0_229] : memref<2x7x22x16xf32, #tpu.memory_space<vmem>>, vector<1x1x16x16xf32>
    %302 = vector.shape_cast %301 : vector<1x1x16x16xf32> to vector<16x16xf32>
    %303 = vector.broadcast %300 : f32 to vector<16x16xf32>
    %304 = arith.mulf %303, %302 : vector<16x16xf32>
    %305 = arith.addf %281, %304 : vector<16x16xf32>
    %c40 = arith.constant 40 : index
    %306 = memref.load %arg1[%c40] : memref<98xf32, #tpu.memory_space<smem>>
    %c0_230 = arith.constant 0 : index
    %c5_231 = arith.constant 5 : index
    %c5_232 = arith.constant 5 : index
    %c0_233 = arith.constant 0 : index
    %307 = vector.load %arg5[%c0_230, %c5_231, %c5_232, %c0_233] : memref<2x7x22x16xf32, #tpu.memory_space<vmem>>, vector<1x1x16x16xf32>
    %308 = vector.shape_cast %307 : vector<1x1x16x16xf32> to vector<16x16xf32>
    %309 = vector.broadcast %306 : f32 to vector<16x16xf32>
    %310 = arith.mulf %309, %308 : vector<16x16xf32>
    %311 = arith.addf %287, %310 : vector<16x16xf32>
    %c47 = arith.constant 47 : index
    %312 = memref.load %arg1[%c47] : memref<98xf32, #tpu.memory_space<smem>>
    %c0_234 = arith.constant 0 : index
    %c5_235 = arith.constant 5 : index
    %c6_236 = arith.constant 6 : index
    %c0_237 = arith.constant 0 : index
    %313 = vector.load %arg5[%c0_234, %c5_235, %c6_236, %c0_237] : memref<2x7x22x16xf32, #tpu.memory_space<vmem>>, vector<1x1x16x16xf32>
    %314 = vector.shape_cast %313 : vector<1x1x16x16xf32> to vector<16x16xf32>
    %315 = vector.broadcast %312 : f32 to vector<16x16xf32>
    %316 = arith.mulf %315, %314 : vector<16x16xf32>
    %317 = arith.addf %293, %316 : vector<16x16xf32>
    %c6_238 = arith.constant 6 : index
    %318 = memref.load %arg1[%c6_238] : memref<98xf32, #tpu.memory_space<smem>>
    %c0_239 = arith.constant 0 : index
    %c6_240 = arith.constant 6 : index
    %c0_241 = arith.constant 0 : index
    %c0_242 = arith.constant 0 : index
    %319 = vector.load %arg5[%c0_239, %c6_240, %c0_241, %c0_242] : memref<2x7x22x16xf32, #tpu.memory_space<vmem>>, vector<1x1x16x16xf32>
    %320 = vector.shape_cast %319 : vector<1x1x16x16xf32> to vector<16x16xf32>
    %321 = vector.broadcast %318 : f32 to vector<16x16xf32>
    %322 = arith.mulf %321, %320 : vector<16x16xf32>
    %323 = arith.addf %299, %322 : vector<16x16xf32>
    %c13 = arith.constant 13 : index
    %324 = memref.load %arg1[%c13] : memref<98xf32, #tpu.memory_space<smem>>
    %c0_243 = arith.constant 0 : index
    %c6_244 = arith.constant 6 : index
    %c1_245 = arith.constant 1 : index
    %c0_246 = arith.constant 0 : index
    %325 = vector.load %arg5[%c0_243, %c6_244, %c1_245, %c0_246] : memref<2x7x22x16xf32, #tpu.memory_space<vmem>>, vector<1x1x16x16xf32>
    %326 = vector.shape_cast %325 : vector<1x1x16x16xf32> to vector<16x16xf32>
    %327 = vector.broadcast %324 : f32 to vector<16x16xf32>
    %328 = arith.mulf %327, %326 : vector<16x16xf32>
    %329 = arith.addf %305, %328 : vector<16x16xf32>
    %c20 = arith.constant 20 : index
    %330 = memref.load %arg1[%c20] : memref<98xf32, #tpu.memory_space<smem>>
    %c0_247 = arith.constant 0 : index
    %c6_248 = arith.constant 6 : index
    %c2_249 = arith.constant 2 : index
    %c0_250 = arith.constant 0 : index
    %331 = vector.load %arg5[%c0_247, %c6_248, %c2_249, %c0_250] : memref<2x7x22x16xf32, #tpu.memory_space<vmem>>, vector<1x1x16x16xf32>
    %332 = vector.shape_cast %331 : vector<1x1x16x16xf32> to vector<16x16xf32>
    %333 = vector.broadcast %330 : f32 to vector<16x16xf32>
    %334 = arith.mulf %333, %332 : vector<16x16xf32>
    %335 = arith.addf %311, %334 : vector<16x16xf32>
    %c27 = arith.constant 27 : index
    %336 = memref.load %arg1[%c27] : memref<98xf32, #tpu.memory_space<smem>>
    %c0_251 = arith.constant 0 : index
    %c6_252 = arith.constant 6 : index
    %c3_253 = arith.constant 3 : index
    %c0_254 = arith.constant 0 : index
    %337 = vector.load %arg5[%c0_251, %c6_252, %c3_253, %c0_254] : memref<2x7x22x16xf32, #tpu.memory_space<vmem>>, vector<1x1x16x16xf32>
    %338 = vector.shape_cast %337 : vector<1x1x16x16xf32> to vector<16x16xf32>
    %339 = vector.broadcast %336 : f32 to vector<16x16xf32>
    %340 = arith.mulf %339, %338 : vector<16x16xf32>
    %341 = arith.addf %317, %340 : vector<16x16xf32>
    %c34 = arith.constant 34 : index
    %342 = memref.load %arg1[%c34] : memref<98xf32, #tpu.memory_space<smem>>
    %c0_255 = arith.constant 0 : index
    %c6_256 = arith.constant 6 : index
    %c4_257 = arith.constant 4 : index
    %c0_258 = arith.constant 0 : index
    %343 = vector.load %arg5[%c0_255, %c6_256, %c4_257, %c0_258] : memref<2x7x22x16xf32, #tpu.memory_space<vmem>>, vector<1x1x16x16xf32>
    %344 = vector.shape_cast %343 : vector<1x1x16x16xf32> to vector<16x16xf32>
    %345 = vector.broadcast %342 : f32 to vector<16x16xf32>
    %346 = arith.mulf %345, %344 : vector<16x16xf32>
    %347 = arith.addf %323, %346 : vector<16x16xf32>
    %c41 = arith.constant 41 : index
    %348 = memref.load %arg1[%c41] : memref<98xf32, #tpu.memory_space<smem>>
    %c0_259 = arith.constant 0 : index
    %c6_260 = arith.constant 6 : index
    %c5_261 = arith.constant 5 : index
    %c0_262 = arith.constant 0 : index
    %349 = vector.load %arg5[%c0_259, %c6_260, %c5_261, %c0_262] : memref<2x7x22x16xf32, #tpu.memory_space<vmem>>, vector<1x1x16x16xf32>
    %350 = vector.shape_cast %349 : vector<1x1x16x16xf32> to vector<16x16xf32>
    %351 = vector.broadcast %348 : f32 to vector<16x16xf32>
    %352 = arith.mulf %351, %350 : vector<16x16xf32>
    %353 = arith.addf %329, %352 : vector<16x16xf32>
    %c48 = arith.constant 48 : index
    %354 = memref.load %arg1[%c48] : memref<98xf32, #tpu.memory_space<smem>>
    %c0_263 = arith.constant 0 : index
    %c6_264 = arith.constant 6 : index
    %c6_265 = arith.constant 6 : index
    %c0_266 = arith.constant 0 : index
    %355 = vector.load %arg5[%c0_263, %c6_264, %c6_265, %c0_266] : memref<2x7x22x16xf32, #tpu.memory_space<vmem>>, vector<1x1x16x16xf32>
    %356 = vector.shape_cast %355 : vector<1x1x16x16xf32> to vector<16x16xf32>
    %357 = vector.broadcast %354 : f32 to vector<16x16xf32>
    %358 = arith.mulf %357, %356 : vector<16x16xf32>
    %359 = arith.addf %335, %358 : vector<16x16xf32>
    %c49 = arith.constant 49 : index
    %360 = memref.load %arg1[%c49] : memref<98xf32, #tpu.memory_space<smem>>
    %c1_267 = arith.constant 1 : index
    %c0_268 = arith.constant 0 : index
    %c0_269 = arith.constant 0 : index
    %c0_270 = arith.constant 0 : index
    %361 = vector.load %arg5[%c1_267, %c0_268, %c0_269, %c0_270] : memref<2x7x22x16xf32, #tpu.memory_space<vmem>>, vector<1x1x16x16xf32>
    %362 = vector.shape_cast %361 : vector<1x1x16x16xf32> to vector<16x16xf32>
    %363 = vector.broadcast %360 : f32 to vector<16x16xf32>
    %364 = arith.mulf %363, %362 : vector<16x16xf32>
    %365 = arith.addf %341, %364 : vector<16x16xf32>
    %c56 = arith.constant 56 : index
    %366 = memref.load %arg1[%c56] : memref<98xf32, #tpu.memory_space<smem>>
    %c1_271 = arith.constant 1 : index
    %c0_272 = arith.constant 0 : index
    %c1_273 = arith.constant 1 : index
    %c0_274 = arith.constant 0 : index
    %367 = vector.load %arg5[%c1_271, %c0_272, %c1_273, %c0_274] : memref<2x7x22x16xf32, #tpu.memory_space<vmem>>, vector<1x1x16x16xf32>
    %368 = vector.shape_cast %367 : vector<1x1x16x16xf32> to vector<16x16xf32>
    %369 = vector.broadcast %366 : f32 to vector<16x16xf32>
    %370 = arith.mulf %369, %368 : vector<16x16xf32>
    %371 = arith.addf %347, %370 : vector<16x16xf32>
    %c63 = arith.constant 63 : index
    %372 = memref.load %arg1[%c63] : memref<98xf32, #tpu.memory_space<smem>>
    %c1_275 = arith.constant 1 : index
    %c0_276 = arith.constant 0 : index
    %c2_277 = arith.constant 2 : index
    %c0_278 = arith.constant 0 : index
    %373 = vector.load %arg5[%c1_275, %c0_276, %c2_277, %c0_278] : memref<2x7x22x16xf32, #tpu.memory_space<vmem>>, vector<1x1x16x16xf32>
    %374 = vector.shape_cast %373 : vector<1x1x16x16xf32> to vector<16x16xf32>
    %375 = vector.broadcast %372 : f32 to vector<16x16xf32>
    %376 = arith.mulf %375, %374 : vector<16x16xf32>
    %377 = arith.addf %353, %376 : vector<16x16xf32>
    %c70 = arith.constant 70 : index
    %378 = memref.load %arg1[%c70] : memref<98xf32, #tpu.memory_space<smem>>
    %c1_279 = arith.constant 1 : index
    %c0_280 = arith.constant 0 : index
    %c3_281 = arith.constant 3 : index
    %c0_282 = arith.constant 0 : index
    %379 = vector.load %arg5[%c1_279, %c0_280, %c3_281, %c0_282] : memref<2x7x22x16xf32, #tpu.memory_space<vmem>>, vector<1x1x16x16xf32>
    %380 = vector.shape_cast %379 : vector<1x1x16x16xf32> to vector<16x16xf32>
    %381 = vector.broadcast %378 : f32 to vector<16x16xf32>
    %382 = arith.mulf %381, %380 : vector<16x16xf32>
    %383 = arith.addf %359, %382 : vector<16x16xf32>
    %c77 = arith.constant 77 : index
    %384 = memref.load %arg1[%c77] : memref<98xf32, #tpu.memory_space<smem>>
    %c1_283 = arith.constant 1 : index
    %c0_284 = arith.constant 0 : index
    %c4_285 = arith.constant 4 : index
    %c0_286 = arith.constant 0 : index
    %385 = vector.load %arg5[%c1_283, %c0_284, %c4_285, %c0_286] : memref<2x7x22x16xf32, #tpu.memory_space<vmem>>, vector<1x1x16x16xf32>
    %386 = vector.shape_cast %385 : vector<1x1x16x16xf32> to vector<16x16xf32>
    %387 = vector.broadcast %384 : f32 to vector<16x16xf32>
    %388 = arith.mulf %387, %386 : vector<16x16xf32>
    %389 = arith.addf %365, %388 : vector<16x16xf32>
    %c84 = arith.constant 84 : index
    %390 = memref.load %arg1[%c84] : memref<98xf32, #tpu.memory_space<smem>>
    %c1_287 = arith.constant 1 : index
    %c0_288 = arith.constant 0 : index
    %c5_289 = arith.constant 5 : index
    %c0_290 = arith.constant 0 : index
    %391 = vector.load %arg5[%c1_287, %c0_288, %c5_289, %c0_290] : memref<2x7x22x16xf32, #tpu.memory_space<vmem>>, vector<1x1x16x16xf32>
    %392 = vector.shape_cast %391 : vector<1x1x16x16xf32> to vector<16x16xf32>
    %393 = vector.broadcast %390 : f32 to vector<16x16xf32>
    %394 = arith.mulf %393, %392 : vector<16x16xf32>
    %395 = arith.addf %371, %394 : vector<16x16xf32>
    %c91 = arith.constant 91 : index
    %396 = memref.load %arg1[%c91] : memref<98xf32, #tpu.memory_space<smem>>
    %c1_291 = arith.constant 1 : index
    %c0_292 = arith.constant 0 : index
    %c6_293 = arith.constant 6 : index
    %c0_294 = arith.constant 0 : index
    %397 = vector.load %arg5[%c1_291, %c0_292, %c6_293, %c0_294] : memref<2x7x22x16xf32, #tpu.memory_space<vmem>>, vector<1x1x16x16xf32>
    %398 = vector.shape_cast %397 : vector<1x1x16x16xf32> to vector<16x16xf32>
    %399 = vector.broadcast %396 : f32 to vector<16x16xf32>
    %400 = arith.mulf %399, %398 : vector<16x16xf32>
    %401 = arith.addf %377, %400 : vector<16x16xf32>
    %c50 = arith.constant 50 : index
    %402 = memref.load %arg1[%c50] : memref<98xf32, #tpu.memory_space<smem>>
    %c1_295 = arith.constant 1 : index
    %c1_296 = arith.constant 1 : index
    %c0_297 = arith.constant 0 : index
    %c0_298 = arith.constant 0 : index
    %403 = vector.load %arg5[%c1_295, %c1_296, %c0_297, %c0_298] : memref<2x7x22x16xf32, #tpu.memory_space<vmem>>, vector<1x1x16x16xf32>
    %404 = vector.shape_cast %403 : vector<1x1x16x16xf32> to vector<16x16xf32>
    %405 = vector.broadcast %402 : f32 to vector<16x16xf32>
    %406 = arith.mulf %405, %404 : vector<16x16xf32>
    %407 = arith.addf %383, %406 : vector<16x16xf32>
    %c57 = arith.constant 57 : index
    %408 = memref.load %arg1[%c57] : memref<98xf32, #tpu.memory_space<smem>>
    %c1_299 = arith.constant 1 : index
    %c1_300 = arith.constant 1 : index
    %c1_301 = arith.constant 1 : index
    %c0_302 = arith.constant 0 : index
    %409 = vector.load %arg5[%c1_299, %c1_300, %c1_301, %c0_302] : memref<2x7x22x16xf32, #tpu.memory_space<vmem>>, vector<1x1x16x16xf32>
    %410 = vector.shape_cast %409 : vector<1x1x16x16xf32> to vector<16x16xf32>
    %411 = vector.broadcast %408 : f32 to vector<16x16xf32>
    %412 = arith.mulf %411, %410 : vector<16x16xf32>
    %413 = arith.addf %389, %412 : vector<16x16xf32>
    %c64 = arith.constant 64 : index
    %414 = memref.load %arg1[%c64] : memref<98xf32, #tpu.memory_space<smem>>
    %c1_303 = arith.constant 1 : index
    %c1_304 = arith.constant 1 : index
    %c2_305 = arith.constant 2 : index
    %c0_306 = arith.constant 0 : index
    %415 = vector.load %arg5[%c1_303, %c1_304, %c2_305, %c0_306] : memref<2x7x22x16xf32, #tpu.memory_space<vmem>>, vector<1x1x16x16xf32>
    %416 = vector.shape_cast %415 : vector<1x1x16x16xf32> to vector<16x16xf32>
    %417 = vector.broadcast %414 : f32 to vector<16x16xf32>
    %418 = arith.mulf %417, %416 : vector<16x16xf32>
    %419 = arith.addf %395, %418 : vector<16x16xf32>
    %c71 = arith.constant 71 : index
    %420 = memref.load %arg1[%c71] : memref<98xf32, #tpu.memory_space<smem>>
    %c1_307 = arith.constant 1 : index
    %c1_308 = arith.constant 1 : index
    %c3_309 = arith.constant 3 : index
    %c0_310 = arith.constant 0 : index
    %421 = vector.load %arg5[%c1_307, %c1_308, %c3_309, %c0_310] : memref<2x7x22x16xf32, #tpu.memory_space<vmem>>, vector<1x1x16x16xf32>
    %422 = vector.shape_cast %421 : vector<1x1x16x16xf32> to vector<16x16xf32>
    %423 = vector.broadcast %420 : f32 to vector<16x16xf32>
    %424 = arith.mulf %423, %422 : vector<16x16xf32>
    %425 = arith.addf %401, %424 : vector<16x16xf32>
    %c78 = arith.constant 78 : index
    %426 = memref.load %arg1[%c78] : memref<98xf32, #tpu.memory_space<smem>>
    %c1_311 = arith.constant 1 : index
    %c1_312 = arith.constant 1 : index
    %c4_313 = arith.constant 4 : index
    %c0_314 = arith.constant 0 : index
    %427 = vector.load %arg5[%c1_311, %c1_312, %c4_313, %c0_314] : memref<2x7x22x16xf32, #tpu.memory_space<vmem>>, vector<1x1x16x16xf32>
    %428 = vector.shape_cast %427 : vector<1x1x16x16xf32> to vector<16x16xf32>
    %429 = vector.broadcast %426 : f32 to vector<16x16xf32>
    %430 = arith.mulf %429, %428 : vector<16x16xf32>
    %431 = arith.addf %407, %430 : vector<16x16xf32>
    %c85 = arith.constant 85 : index
    %432 = memref.load %arg1[%c85] : memref<98xf32, #tpu.memory_space<smem>>
    %c1_315 = arith.constant 1 : index
    %c1_316 = arith.constant 1 : index
    %c5_317 = arith.constant 5 : index
    %c0_318 = arith.constant 0 : index
    %433 = vector.load %arg5[%c1_315, %c1_316, %c5_317, %c0_318] : memref<2x7x22x16xf32, #tpu.memory_space<vmem>>, vector<1x1x16x16xf32>
    %434 = vector.shape_cast %433 : vector<1x1x16x16xf32> to vector<16x16xf32>
    %435 = vector.broadcast %432 : f32 to vector<16x16xf32>
    %436 = arith.mulf %435, %434 : vector<16x16xf32>
    %437 = arith.addf %413, %436 : vector<16x16xf32>
    %c92 = arith.constant 92 : index
    %438 = memref.load %arg1[%c92] : memref<98xf32, #tpu.memory_space<smem>>
    %c1_319 = arith.constant 1 : index
    %c1_320 = arith.constant 1 : index
    %c6_321 = arith.constant 6 : index
    %c0_322 = arith.constant 0 : index
    %439 = vector.load %arg5[%c1_319, %c1_320, %c6_321, %c0_322] : memref<2x7x22x16xf32, #tpu.memory_space<vmem>>, vector<1x1x16x16xf32>
    %440 = vector.shape_cast %439 : vector<1x1x16x16xf32> to vector<16x16xf32>
    %441 = vector.broadcast %438 : f32 to vector<16x16xf32>
    %442 = arith.mulf %441, %440 : vector<16x16xf32>
    %443 = arith.addf %419, %442 : vector<16x16xf32>
    %c51 = arith.constant 51 : index
    %444 = memref.load %arg1[%c51] : memref<98xf32, #tpu.memory_space<smem>>
    %c1_323 = arith.constant 1 : index
    %c2_324 = arith.constant 2 : index
    %c0_325 = arith.constant 0 : index
    %c0_326 = arith.constant 0 : index
    %445 = vector.load %arg5[%c1_323, %c2_324, %c0_325, %c0_326] : memref<2x7x22x16xf32, #tpu.memory_space<vmem>>, vector<1x1x16x16xf32>
    %446 = vector.shape_cast %445 : vector<1x1x16x16xf32> to vector<16x16xf32>
    %447 = vector.broadcast %444 : f32 to vector<16x16xf32>
    %448 = arith.mulf %447, %446 : vector<16x16xf32>
    %449 = arith.addf %425, %448 : vector<16x16xf32>
    %c58 = arith.constant 58 : index
    %450 = memref.load %arg1[%c58] : memref<98xf32, #tpu.memory_space<smem>>
    %c1_327 = arith.constant 1 : index
    %c2_328 = arith.constant 2 : index
    %c1_329 = arith.constant 1 : index
    %c0_330 = arith.constant 0 : index
    %451 = vector.load %arg5[%c1_327, %c2_328, %c1_329, %c0_330] : memref<2x7x22x16xf32, #tpu.memory_space<vmem>>, vector<1x1x16x16xf32>
    %452 = vector.shape_cast %451 : vector<1x1x16x16xf32> to vector<16x16xf32>
    %453 = vector.broadcast %450 : f32 to vector<16x16xf32>
    %454 = arith.mulf %453, %452 : vector<16x16xf32>
    %455 = arith.addf %431, %454 : vector<16x16xf32>
    %c65 = arith.constant 65 : index
    %456 = memref.load %arg1[%c65] : memref<98xf32, #tpu.memory_space<smem>>
    %c1_331 = arith.constant 1 : index
    %c2_332 = arith.constant 2 : index
    %c2_333 = arith.constant 2 : index
    %c0_334 = arith.constant 0 : index
    %457 = vector.load %arg5[%c1_331, %c2_332, %c2_333, %c0_334] : memref<2x7x22x16xf32, #tpu.memory_space<vmem>>, vector<1x1x16x16xf32>
    %458 = vector.shape_cast %457 : vector<1x1x16x16xf32> to vector<16x16xf32>
    %459 = vector.broadcast %456 : f32 to vector<16x16xf32>
    %460 = arith.mulf %459, %458 : vector<16x16xf32>
    %461 = arith.addf %437, %460 : vector<16x16xf32>
    %c72 = arith.constant 72 : index
    %462 = memref.load %arg1[%c72] : memref<98xf32, #tpu.memory_space<smem>>
    %c1_335 = arith.constant 1 : index
    %c2_336 = arith.constant 2 : index
    %c3_337 = arith.constant 3 : index
    %c0_338 = arith.constant 0 : index
    %463 = vector.load %arg5[%c1_335, %c2_336, %c3_337, %c0_338] : memref<2x7x22x16xf32, #tpu.memory_space<vmem>>, vector<1x1x16x16xf32>
    %464 = vector.shape_cast %463 : vector<1x1x16x16xf32> to vector<16x16xf32>
    %465 = vector.broadcast %462 : f32 to vector<16x16xf32>
    %466 = arith.mulf %465, %464 : vector<16x16xf32>
    %467 = arith.addf %443, %466 : vector<16x16xf32>
    %c79 = arith.constant 79 : index
    %468 = memref.load %arg1[%c79] : memref<98xf32, #tpu.memory_space<smem>>
    %c1_339 = arith.constant 1 : index
    %c2_340 = arith.constant 2 : index
    %c4_341 = arith.constant 4 : index
    %c0_342 = arith.constant 0 : index
    %469 = vector.load %arg5[%c1_339, %c2_340, %c4_341, %c0_342] : memref<2x7x22x16xf32, #tpu.memory_space<vmem>>, vector<1x1x16x16xf32>
    %470 = vector.shape_cast %469 : vector<1x1x16x16xf32> to vector<16x16xf32>
    %471 = vector.broadcast %468 : f32 to vector<16x16xf32>
    %472 = arith.mulf %471, %470 : vector<16x16xf32>
    %473 = arith.addf %449, %472 : vector<16x16xf32>
    %c86 = arith.constant 86 : index
    %474 = memref.load %arg1[%c86] : memref<98xf32, #tpu.memory_space<smem>>
    %c1_343 = arith.constant 1 : index
    %c2_344 = arith.constant 2 : index
    %c5_345 = arith.constant 5 : index
    %c0_346 = arith.constant 0 : index
    %475 = vector.load %arg5[%c1_343, %c2_344, %c5_345, %c0_346] : memref<2x7x22x16xf32, #tpu.memory_space<vmem>>, vector<1x1x16x16xf32>
    %476 = vector.shape_cast %475 : vector<1x1x16x16xf32> to vector<16x16xf32>
    %477 = vector.broadcast %474 : f32 to vector<16x16xf32>
    %478 = arith.mulf %477, %476 : vector<16x16xf32>
    %479 = arith.addf %455, %478 : vector<16x16xf32>
    %c93 = arith.constant 93 : index
    %480 = memref.load %arg1[%c93] : memref<98xf32, #tpu.memory_space<smem>>
    %c1_347 = arith.constant 1 : index
    %c2_348 = arith.constant 2 : index
    %c6_349 = arith.constant 6 : index
    %c0_350 = arith.constant 0 : index
    %481 = vector.load %arg5[%c1_347, %c2_348, %c6_349, %c0_350] : memref<2x7x22x16xf32, #tpu.memory_space<vmem>>, vector<1x1x16x16xf32>
    %482 = vector.shape_cast %481 : vector<1x1x16x16xf32> to vector<16x16xf32>
    %483 = vector.broadcast %480 : f32 to vector<16x16xf32>
    %484 = arith.mulf %483, %482 : vector<16x16xf32>
    %485 = arith.addf %461, %484 : vector<16x16xf32>
    %c52 = arith.constant 52 : index
    %486 = memref.load %arg1[%c52] : memref<98xf32, #tpu.memory_space<smem>>
    %c1_351 = arith.constant 1 : index
    %c3_352 = arith.constant 3 : index
    %c0_353 = arith.constant 0 : index
    %c0_354 = arith.constant 0 : index
    %487 = vector.load %arg5[%c1_351, %c3_352, %c0_353, %c0_354] : memref<2x7x22x16xf32, #tpu.memory_space<vmem>>, vector<1x1x16x16xf32>
    %488 = vector.shape_cast %487 : vector<1x1x16x16xf32> to vector<16x16xf32>
    %489 = vector.broadcast %486 : f32 to vector<16x16xf32>
    %490 = arith.mulf %489, %488 : vector<16x16xf32>
    %491 = arith.addf %467, %490 : vector<16x16xf32>
    %c59 = arith.constant 59 : index
    %492 = memref.load %arg1[%c59] : memref<98xf32, #tpu.memory_space<smem>>
    %c1_355 = arith.constant 1 : index
    %c3_356 = arith.constant 3 : index
    %c1_357 = arith.constant 1 : index
    %c0_358 = arith.constant 0 : index
    %493 = vector.load %arg5[%c1_355, %c3_356, %c1_357, %c0_358] : memref<2x7x22x16xf32, #tpu.memory_space<vmem>>, vector<1x1x16x16xf32>
    %494 = vector.shape_cast %493 : vector<1x1x16x16xf32> to vector<16x16xf32>
    %495 = vector.broadcast %492 : f32 to vector<16x16xf32>
    %496 = arith.mulf %495, %494 : vector<16x16xf32>
    %497 = arith.addf %473, %496 : vector<16x16xf32>
    %c66 = arith.constant 66 : index
    %498 = memref.load %arg1[%c66] : memref<98xf32, #tpu.memory_space<smem>>
    %c1_359 = arith.constant 1 : index
    %c3_360 = arith.constant 3 : index
    %c2_361 = arith.constant 2 : index
    %c0_362 = arith.constant 0 : index
    %499 = vector.load %arg5[%c1_359, %c3_360, %c2_361, %c0_362] : memref<2x7x22x16xf32, #tpu.memory_space<vmem>>, vector<1x1x16x16xf32>
    %500 = vector.shape_cast %499 : vector<1x1x16x16xf32> to vector<16x16xf32>
    %501 = vector.broadcast %498 : f32 to vector<16x16xf32>
    %502 = arith.mulf %501, %500 : vector<16x16xf32>
    %503 = arith.addf %479, %502 : vector<16x16xf32>
    %c73 = arith.constant 73 : index
    %504 = memref.load %arg1[%c73] : memref<98xf32, #tpu.memory_space<smem>>
    %c1_363 = arith.constant 1 : index
    %c3_364 = arith.constant 3 : index
    %c3_365 = arith.constant 3 : index
    %c0_366 = arith.constant 0 : index
    %505 = vector.load %arg5[%c1_363, %c3_364, %c3_365, %c0_366] : memref<2x7x22x16xf32, #tpu.memory_space<vmem>>, vector<1x1x16x16xf32>
    %506 = vector.shape_cast %505 : vector<1x1x16x16xf32> to vector<16x16xf32>
    %507 = vector.broadcast %504 : f32 to vector<16x16xf32>
    %508 = arith.mulf %507, %506 : vector<16x16xf32>
    %509 = arith.addf %485, %508 : vector<16x16xf32>
    %c80 = arith.constant 80 : index
    %510 = memref.load %arg1[%c80] : memref<98xf32, #tpu.memory_space<smem>>
    %c1_367 = arith.constant 1 : index
    %c3_368 = arith.constant 3 : index
    %c4_369 = arith.constant 4 : index
    %c0_370 = arith.constant 0 : index
    %511 = vector.load %arg5[%c1_367, %c3_368, %c4_369, %c0_370] : memref<2x7x22x16xf32, #tpu.memory_space<vmem>>, vector<1x1x16x16xf32>
    %512 = vector.shape_cast %511 : vector<1x1x16x16xf32> to vector<16x16xf32>
    %513 = vector.broadcast %510 : f32 to vector<16x16xf32>
    %514 = arith.mulf %513, %512 : vector<16x16xf32>
    %515 = arith.addf %491, %514 : vector<16x16xf32>
    %c87 = arith.constant 87 : index
    %516 = memref.load %arg1[%c87] : memref<98xf32, #tpu.memory_space<smem>>
    %c1_371 = arith.constant 1 : index
    %c3_372 = arith.constant 3 : index
    %c5_373 = arith.constant 5 : index
    %c0_374 = arith.constant 0 : index
    %517 = vector.load %arg5[%c1_371, %c3_372, %c5_373, %c0_374] : memref<2x7x22x16xf32, #tpu.memory_space<vmem>>, vector<1x1x16x16xf32>
    %518 = vector.shape_cast %517 : vector<1x1x16x16xf32> to vector<16x16xf32>
    %519 = vector.broadcast %516 : f32 to vector<16x16xf32>
    %520 = arith.mulf %519, %518 : vector<16x16xf32>
    %521 = arith.addf %497, %520 : vector<16x16xf32>
    %c94 = arith.constant 94 : index
    %522 = memref.load %arg1[%c94] : memref<98xf32, #tpu.memory_space<smem>>
    %c1_375 = arith.constant 1 : index
    %c3_376 = arith.constant 3 : index
    %c6_377 = arith.constant 6 : index
    %c0_378 = arith.constant 0 : index
    %523 = vector.load %arg5[%c1_375, %c3_376, %c6_377, %c0_378] : memref<2x7x22x16xf32, #tpu.memory_space<vmem>>, vector<1x1x16x16xf32>
    %524 = vector.shape_cast %523 : vector<1x1x16x16xf32> to vector<16x16xf32>
    %525 = vector.broadcast %522 : f32 to vector<16x16xf32>
    %526 = arith.mulf %525, %524 : vector<16x16xf32>
    %527 = arith.addf %503, %526 : vector<16x16xf32>
    %c53 = arith.constant 53 : index
    %528 = memref.load %arg1[%c53] : memref<98xf32, #tpu.memory_space<smem>>
    %c1_379 = arith.constant 1 : index
    %c4_380 = arith.constant 4 : index
    %c0_381 = arith.constant 0 : index
    %c0_382 = arith.constant 0 : index
    %529 = vector.load %arg5[%c1_379, %c4_380, %c0_381, %c0_382] : memref<2x7x22x16xf32, #tpu.memory_space<vmem>>, vector<1x1x16x16xf32>
    %530 = vector.shape_cast %529 : vector<1x1x16x16xf32> to vector<16x16xf32>
    %531 = vector.broadcast %528 : f32 to vector<16x16xf32>
    %532 = arith.mulf %531, %530 : vector<16x16xf32>
    %533 = arith.addf %509, %532 : vector<16x16xf32>
    %c60 = arith.constant 60 : index
    %534 = memref.load %arg1[%c60] : memref<98xf32, #tpu.memory_space<smem>>
    %c1_383 = arith.constant 1 : index
    %c4_384 = arith.constant 4 : index
    %c1_385 = arith.constant 1 : index
    %c0_386 = arith.constant 0 : index
    %535 = vector.load %arg5[%c1_383, %c4_384, %c1_385, %c0_386] : memref<2x7x22x16xf32, #tpu.memory_space<vmem>>, vector<1x1x16x16xf32>
    %536 = vector.shape_cast %535 : vector<1x1x16x16xf32> to vector<16x16xf32>
    %537 = vector.broadcast %534 : f32 to vector<16x16xf32>
    %538 = arith.mulf %537, %536 : vector<16x16xf32>
    %539 = arith.addf %515, %538 : vector<16x16xf32>
    %c67 = arith.constant 67 : index
    %540 = memref.load %arg1[%c67] : memref<98xf32, #tpu.memory_space<smem>>
    %c1_387 = arith.constant 1 : index
    %c4_388 = arith.constant 4 : index
    %c2_389 = arith.constant 2 : index
    %c0_390 = arith.constant 0 : index
    %541 = vector.load %arg5[%c1_387, %c4_388, %c2_389, %c0_390] : memref<2x7x22x16xf32, #tpu.memory_space<vmem>>, vector<1x1x16x16xf32>
    %542 = vector.shape_cast %541 : vector<1x1x16x16xf32> to vector<16x16xf32>
    %543 = vector.broadcast %540 : f32 to vector<16x16xf32>
    %544 = arith.mulf %543, %542 : vector<16x16xf32>
    %545 = arith.addf %521, %544 : vector<16x16xf32>
    %c74 = arith.constant 74 : index
    %546 = memref.load %arg1[%c74] : memref<98xf32, #tpu.memory_space<smem>>
    %c1_391 = arith.constant 1 : index
    %c4_392 = arith.constant 4 : index
    %c3_393 = arith.constant 3 : index
    %c0_394 = arith.constant 0 : index
    %547 = vector.load %arg5[%c1_391, %c4_392, %c3_393, %c0_394] : memref<2x7x22x16xf32, #tpu.memory_space<vmem>>, vector<1x1x16x16xf32>
    %548 = vector.shape_cast %547 : vector<1x1x16x16xf32> to vector<16x16xf32>
    %549 = vector.broadcast %546 : f32 to vector<16x16xf32>
    %550 = arith.mulf %549, %548 : vector<16x16xf32>
    %551 = arith.addf %527, %550 : vector<16x16xf32>
    %c81 = arith.constant 81 : index
    %552 = memref.load %arg1[%c81] : memref<98xf32, #tpu.memory_space<smem>>
    %c1_395 = arith.constant 1 : index
    %c4_396 = arith.constant 4 : index
    %c4_397 = arith.constant 4 : index
    %c0_398 = arith.constant 0 : index
    %553 = vector.load %arg5[%c1_395, %c4_396, %c4_397, %c0_398] : memref<2x7x22x16xf32, #tpu.memory_space<vmem>>, vector<1x1x16x16xf32>
    %554 = vector.shape_cast %553 : vector<1x1x16x16xf32> to vector<16x16xf32>
    %555 = vector.broadcast %552 : f32 to vector<16x16xf32>
    %556 = arith.mulf %555, %554 : vector<16x16xf32>
    %557 = arith.addf %533, %556 : vector<16x16xf32>
    %c88 = arith.constant 88 : index
    %558 = memref.load %arg1[%c88] : memref<98xf32, #tpu.memory_space<smem>>
    %c1_399 = arith.constant 1 : index
    %c4_400 = arith.constant 4 : index
    %c5_401 = arith.constant 5 : index
    %c0_402 = arith.constant 0 : index
    %559 = vector.load %arg5[%c1_399, %c4_400, %c5_401, %c0_402] : memref<2x7x22x16xf32, #tpu.memory_space<vmem>>, vector<1x1x16x16xf32>
    %560 = vector.shape_cast %559 : vector<1x1x16x16xf32> to vector<16x16xf32>
    %561 = vector.broadcast %558 : f32 to vector<16x16xf32>
    %562 = arith.mulf %561, %560 : vector<16x16xf32>
    %563 = arith.addf %539, %562 : vector<16x16xf32>
    %c95 = arith.constant 95 : index
    %564 = memref.load %arg1[%c95] : memref<98xf32, #tpu.memory_space<smem>>
    %c1_403 = arith.constant 1 : index
    %c4_404 = arith.constant 4 : index
    %c6_405 = arith.constant 6 : index
    %c0_406 = arith.constant 0 : index
    %565 = vector.load %arg5[%c1_403, %c4_404, %c6_405, %c0_406] : memref<2x7x22x16xf32, #tpu.memory_space<vmem>>, vector<1x1x16x16xf32>
    %566 = vector.shape_cast %565 : vector<1x1x16x16xf32> to vector<16x16xf32>
    %567 = vector.broadcast %564 : f32 to vector<16x16xf32>
    %568 = arith.mulf %567, %566 : vector<16x16xf32>
    %569 = arith.addf %545, %568 : vector<16x16xf32>
    %c54 = arith.constant 54 : index
    %570 = memref.load %arg1[%c54] : memref<98xf32, #tpu.memory_space<smem>>
    %c1_407 = arith.constant 1 : index
    %c5_408 = arith.constant 5 : index
    %c0_409 = arith.constant 0 : index
    %c0_410 = arith.constant 0 : index
    %571 = vector.load %arg5[%c1_407, %c5_408, %c0_409, %c0_410] : memref<2x7x22x16xf32, #tpu.memory_space<vmem>>, vector<1x1x16x16xf32>
    %572 = vector.shape_cast %571 : vector<1x1x16x16xf32> to vector<16x16xf32>
    %573 = vector.broadcast %570 : f32 to vector<16x16xf32>
    %574 = arith.mulf %573, %572 : vector<16x16xf32>
    %575 = arith.addf %551, %574 : vector<16x16xf32>
    %c61 = arith.constant 61 : index
    %576 = memref.load %arg1[%c61] : memref<98xf32, #tpu.memory_space<smem>>
    %c1_411 = arith.constant 1 : index
    %c5_412 = arith.constant 5 : index
    %c1_413 = arith.constant 1 : index
    %c0_414 = arith.constant 0 : index
    %577 = vector.load %arg5[%c1_411, %c5_412, %c1_413, %c0_414] : memref<2x7x22x16xf32, #tpu.memory_space<vmem>>, vector<1x1x16x16xf32>
    %578 = vector.shape_cast %577 : vector<1x1x16x16xf32> to vector<16x16xf32>
    %579 = vector.broadcast %576 : f32 to vector<16x16xf32>
    %580 = arith.mulf %579, %578 : vector<16x16xf32>
    %581 = arith.addf %557, %580 : vector<16x16xf32>
    %c68 = arith.constant 68 : index
    %582 = memref.load %arg1[%c68] : memref<98xf32, #tpu.memory_space<smem>>
    %c1_415 = arith.constant 1 : index
    %c5_416 = arith.constant 5 : index
    %c2_417 = arith.constant 2 : index
    %c0_418 = arith.constant 0 : index
    %583 = vector.load %arg5[%c1_415, %c5_416, %c2_417, %c0_418] : memref<2x7x22x16xf32, #tpu.memory_space<vmem>>, vector<1x1x16x16xf32>
    %584 = vector.shape_cast %583 : vector<1x1x16x16xf32> to vector<16x16xf32>
    %585 = vector.broadcast %582 : f32 to vector<16x16xf32>
    %586 = arith.mulf %585, %584 : vector<16x16xf32>
    %587 = arith.addf %563, %586 : vector<16x16xf32>
    %c75 = arith.constant 75 : index
    %588 = memref.load %arg1[%c75] : memref<98xf32, #tpu.memory_space<smem>>
    %c1_419 = arith.constant 1 : index
    %c5_420 = arith.constant 5 : index
    %c3_421 = arith.constant 3 : index
    %c0_422 = arith.constant 0 : index
    %589 = vector.load %arg5[%c1_419, %c5_420, %c3_421, %c0_422] : memref<2x7x22x16xf32, #tpu.memory_space<vmem>>, vector<1x1x16x16xf32>
    %590 = vector.shape_cast %589 : vector<1x1x16x16xf32> to vector<16x16xf32>
    %591 = vector.broadcast %588 : f32 to vector<16x16xf32>
    %592 = arith.mulf %591, %590 : vector<16x16xf32>
    %593 = arith.addf %569, %592 : vector<16x16xf32>
    %c82 = arith.constant 82 : index
    %594 = memref.load %arg1[%c82] : memref<98xf32, #tpu.memory_space<smem>>
    %c1_423 = arith.constant 1 : index
    %c5_424 = arith.constant 5 : index
    %c4_425 = arith.constant 4 : index
    %c0_426 = arith.constant 0 : index
    %595 = vector.load %arg5[%c1_423, %c5_424, %c4_425, %c0_426] : memref<2x7x22x16xf32, #tpu.memory_space<vmem>>, vector<1x1x16x16xf32>
    %596 = vector.shape_cast %595 : vector<1x1x16x16xf32> to vector<16x16xf32>
    %597 = vector.broadcast %594 : f32 to vector<16x16xf32>
    %598 = arith.mulf %597, %596 : vector<16x16xf32>
    %599 = arith.addf %575, %598 : vector<16x16xf32>
    %c89 = arith.constant 89 : index
    %600 = memref.load %arg1[%c89] : memref<98xf32, #tpu.memory_space<smem>>
    %c1_427 = arith.constant 1 : index
    %c5_428 = arith.constant 5 : index
    %c5_429 = arith.constant 5 : index
    %c0_430 = arith.constant 0 : index
    %601 = vector.load %arg5[%c1_427, %c5_428, %c5_429, %c0_430] : memref<2x7x22x16xf32, #tpu.memory_space<vmem>>, vector<1x1x16x16xf32>
    %602 = vector.shape_cast %601 : vector<1x1x16x16xf32> to vector<16x16xf32>
    %603 = vector.broadcast %600 : f32 to vector<16x16xf32>
    %604 = arith.mulf %603, %602 : vector<16x16xf32>
    %605 = arith.addf %581, %604 : vector<16x16xf32>
    %c96 = arith.constant 96 : index
    %606 = memref.load %arg1[%c96] : memref<98xf32, #tpu.memory_space<smem>>
    %c1_431 = arith.constant 1 : index
    %c5_432 = arith.constant 5 : index
    %c6_433 = arith.constant 6 : index
    %c0_434 = arith.constant 0 : index
    %607 = vector.load %arg5[%c1_431, %c5_432, %c6_433, %c0_434] : memref<2x7x22x16xf32, #tpu.memory_space<vmem>>, vector<1x1x16x16xf32>
    %608 = vector.shape_cast %607 : vector<1x1x16x16xf32> to vector<16x16xf32>
    %609 = vector.broadcast %606 : f32 to vector<16x16xf32>
    %610 = arith.mulf %609, %608 : vector<16x16xf32>
    %611 = arith.addf %587, %610 : vector<16x16xf32>
    %c55 = arith.constant 55 : index
    %612 = memref.load %arg1[%c55] : memref<98xf32, #tpu.memory_space<smem>>
    %c1_435 = arith.constant 1 : index
    %c6_436 = arith.constant 6 : index
    %c0_437 = arith.constant 0 : index
    %c0_438 = arith.constant 0 : index
    %613 = vector.load %arg5[%c1_435, %c6_436, %c0_437, %c0_438] : memref<2x7x22x16xf32, #tpu.memory_space<vmem>>, vector<1x1x16x16xf32>
    %614 = vector.shape_cast %613 : vector<1x1x16x16xf32> to vector<16x16xf32>
    %615 = vector.broadcast %612 : f32 to vector<16x16xf32>
    %616 = arith.mulf %615, %614 : vector<16x16xf32>
    %617 = arith.addf %593, %616 : vector<16x16xf32>
    %c62 = arith.constant 62 : index
    %618 = memref.load %arg1[%c62] : memref<98xf32, #tpu.memory_space<smem>>
    %c1_439 = arith.constant 1 : index
    %c6_440 = arith.constant 6 : index
    %c1_441 = arith.constant 1 : index
    %c0_442 = arith.constant 0 : index
    %619 = vector.load %arg5[%c1_439, %c6_440, %c1_441, %c0_442] : memref<2x7x22x16xf32, #tpu.memory_space<vmem>>, vector<1x1x16x16xf32>
    %620 = vector.shape_cast %619 : vector<1x1x16x16xf32> to vector<16x16xf32>
    %621 = vector.broadcast %618 : f32 to vector<16x16xf32>
    %622 = arith.mulf %621, %620 : vector<16x16xf32>
    %623 = arith.addf %599, %622 : vector<16x16xf32>
    %c69 = arith.constant 69 : index
    %624 = memref.load %arg1[%c69] : memref<98xf32, #tpu.memory_space<smem>>
    %c1_443 = arith.constant 1 : index
    %c6_444 = arith.constant 6 : index
    %c2_445 = arith.constant 2 : index
    %c0_446 = arith.constant 0 : index
    %625 = vector.load %arg5[%c1_443, %c6_444, %c2_445, %c0_446] : memref<2x7x22x16xf32, #tpu.memory_space<vmem>>, vector<1x1x16x16xf32>
    %626 = vector.shape_cast %625 : vector<1x1x16x16xf32> to vector<16x16xf32>
    %627 = vector.broadcast %624 : f32 to vector<16x16xf32>
    %628 = arith.mulf %627, %626 : vector<16x16xf32>
    %629 = arith.addf %605, %628 : vector<16x16xf32>
    %c76 = arith.constant 76 : index
    %630 = memref.load %arg1[%c76] : memref<98xf32, #tpu.memory_space<smem>>
    %c1_447 = arith.constant 1 : index
    %c6_448 = arith.constant 6 : index
    %c3_449 = arith.constant 3 : index
    %c0_450 = arith.constant 0 : index
    %631 = vector.load %arg5[%c1_447, %c6_448, %c3_449, %c0_450] : memref<2x7x22x16xf32, #tpu.memory_space<vmem>>, vector<1x1x16x16xf32>
    %632 = vector.shape_cast %631 : vector<1x1x16x16xf32> to vector<16x16xf32>
    %633 = vector.broadcast %630 : f32 to vector<16x16xf32>
    %634 = arith.mulf %633, %632 : vector<16x16xf32>
    %635 = arith.addf %611, %634 : vector<16x16xf32>
    %c83 = arith.constant 83 : index
    %636 = memref.load %arg1[%c83] : memref<98xf32, #tpu.memory_space<smem>>
    %c1_451 = arith.constant 1 : index
    %c6_452 = arith.constant 6 : index
    %c4_453 = arith.constant 4 : index
    %c0_454 = arith.constant 0 : index
    %637 = vector.load %arg5[%c1_451, %c6_452, %c4_453, %c0_454] : memref<2x7x22x16xf32, #tpu.memory_space<vmem>>, vector<1x1x16x16xf32>
    %638 = vector.shape_cast %637 : vector<1x1x16x16xf32> to vector<16x16xf32>
    %639 = vector.broadcast %636 : f32 to vector<16x16xf32>
    %640 = arith.mulf %639, %638 : vector<16x16xf32>
    %641 = arith.addf %617, %640 : vector<16x16xf32>
    %c90 = arith.constant 90 : index
    %642 = memref.load %arg1[%c90] : memref<98xf32, #tpu.memory_space<smem>>
    %c1_455 = arith.constant 1 : index
    %c6_456 = arith.constant 6 : index
    %c5_457 = arith.constant 5 : index
    %c0_458 = arith.constant 0 : index
    %643 = vector.load %arg5[%c1_455, %c6_456, %c5_457, %c0_458] : memref<2x7x22x16xf32, #tpu.memory_space<vmem>>, vector<1x1x16x16xf32>
    %644 = vector.shape_cast %643 : vector<1x1x16x16xf32> to vector<16x16xf32>
    %645 = vector.broadcast %642 : f32 to vector<16x16xf32>
    %646 = arith.mulf %645, %644 : vector<16x16xf32>
    %647 = arith.addf %623, %646 : vector<16x16xf32>
    %c97 = arith.constant 97 : index
    %648 = memref.load %arg1[%c97] : memref<98xf32, #tpu.memory_space<smem>>
    %c1_459 = arith.constant 1 : index
    %c6_460 = arith.constant 6 : index
    %c6_461 = arith.constant 6 : index
    %c0_462 = arith.constant 0 : index
    %649 = vector.load %arg5[%c1_459, %c6_460, %c6_461, %c0_462] : memref<2x7x22x16xf32, #tpu.memory_space<vmem>>, vector<1x1x16x16xf32>
    %650 = vector.shape_cast %649 : vector<1x1x16x16xf32> to vector<16x16xf32>
    %651 = vector.broadcast %648 : f32 to vector<16x16xf32>
    %652 = arith.mulf %651, %650 : vector<16x16xf32>
    %653 = arith.addf %629, %652 : vector<16x16xf32>
    %654 = arith.addf %647, %653 : vector<16x16xf32>
    %655 = arith.addf %635, %641 : vector<16x16xf32>
    %656 = arith.addf %654, %655 : vector<16x16xf32>
    %c0_463 = arith.constant 0 : index
    %657 = memref.load %arg2[%c0_463] : memref<1xf32, #tpu.memory_space<smem>>
    %658 = vector.broadcast %657 : f32 to vector<16x16xf32>
    %659 = arith.addf %656, %658 : vector<16x16xf32>
    %660 = arith.negf %659 : vector<16x16xf32>
    %661 = math.exp %660 : vector<16x16xf32>
    %cst_464 = arith.constant 1.000000e+00 : f32
    %662 = vector.broadcast %cst_464 : f32 to vector<16x16xf32>
    %663 = arith.addf %662, %661 : vector<16x16xf32>
    %664 = arith.divf %662, %663 : vector<16x16xf32>
    %665 = vector.shape_cast %664 : vector<16x16xf32> to vector<1x16x16xf32>
    %666 = vector.broadcast %665 : vector<1x16x16xf32> to vector<4x16x16xf32>
    %667 = arith.mulf %1, %666 : vector<4x16x16xf32>
    %c0_465 = arith.constant 0 : index
    %c0_466 = arith.constant 0 : index
    %c0_467 = arith.constant 0 : index
    %c0_468 = arith.constant 0 : index
    %668 = vector.load %arg4[%c0_465, %c0_466, %c0_467, %c0_468] : memref<1x4x16x16xf32, #tpu.memory_space<vmem>>, vector<1x4x16x16xf32>
    %669 = vector.shape_cast %668 : vector<1x4x16x16xf32> to vector<4x16x16xf32>
    %670 = vector.shape_cast %667 : vector<4x16x16xf32> to vector<1x4x16x16xf32>
    tpu.vector_store %arg4[%c0_465, %c0_466, %c0_467, %c0_468], %670 {strides = array<i32>} : memref<1x4x16x16xf32, #tpu.memory_space<vmem>>, vector<1x4x16x16xf32>,
    return
  }
  func.func @transform_0(%arg0: i32) -> i32 {
    %c0_i32 = arith.constant 0 : i32
    %c0_i32_0 = arith.constant 0 : i32
    return %c0_i32 : i32
  }
  func.func @transform_1(%arg0: i32) -> i32 {
    %c0_i32 = arith.constant 0 : i32
    %c0_i32_0 = arith.constant 0 : i32
    return %c0_i32 : i32
  }
  func.func @transform_2(%arg0: i32) -> (i32, i32, i32, i32) {
    %c0_i32 = arith.constant 0 : i32
    %c0_i32_0 = arith.constant 0 : i32
    %c0_i32_1 = arith.constant 0 : i32
    %c0_i32_2 = arith.constant 0 : i32
    return %arg0, %c0_i32, %c0_i32_0, %c0_i32_1 : i32, i32, i32, i32
  }
  func.func @transform_3(%arg0: i32) -> (i32, i32, i32, i32) {
    %c0_i32 = arith.constant 0 : i32
    %c0_i32_0 = arith.constant 0 : i32
    %c0_i32_1 = arith.constant 0 : i32
    %c0_i32_2 = arith.constant 0 : i32
    return %arg0, %c0_i32, %c0_i32_0, %c0_i32_1 : i32, i32, i32, i32
  }
}

</mosaic_0001>

<bundles_post_ra>
// kernel: tpu_custom_call.1
= control target key start
LH: loop header
LB: loop body
LE: loop exit
PB: predicated region body
PF: predicated region fallthrough
CT: control target
= control target key end

     0   :  { %s2754_s0 = inlined_call_operand.vmem [shape: f32[98], index: 0, kind: input, shape index: {}]   ;;  %s2755_s1 = inlined_call_operand.<no memory space> [shape: f32[1], index: 1, kind: input, shape index: {}]   ;;  %s2756_s2 = inlined_call_operand.hbm [shape: f32[2,4,16,16], index: 2, kind: input, shape index: {}]   ;;  %s2757_s3 = inlined_call_operand.hbm [shape: f32[2,4,16,16], index: 3, kind: output, shape index: {}]  }
   0x1   :  { %2890 = sst [smem:[#allocation96_spill]] %s2754_s0 }
   0x2   :  { %2891 = sst [smem:[#allocation97_spill]] %s2756_s2 }
   0x3   :  { %2892 = sst [smem:[#allocation98_spill]] %s2757_s3 }
   0x4   :  { %8 = sst [smem:[#allocation3]] %s2755_s1 }
   0x5   :  { %9 = vsyncpa [#allocation7], 0 }
   0x6   :  { %10 = vsyncpa [#allocation5], 0 }
   0x7   :  { %12 = vsyncpa [#allocation5 + $0x1], 0 }
   0x8   :  { %13 = vsyncpa [#allocation6], 0 }
   0x9   :  { %15 = vsyncpa [#allocation6 + $0x1], 0  ;;  %s1685_s14 = smov 0   ;;  %s1687_s15 = smov 0  }
   0xa   :  { %s1689_s16 = smov 0   ;;  %s1691_s17 = smov 0  }
   0xb LB: > { %2893 = sst [smem:[#allocation13_spill]] %s1634_s14  ;;  %s1706_s1 = sadd.s32 4294967295, %s1646_s17   ;;  %s1646_s17 = sphi %s1691_s17, %s3259_s17   ;;  %s1642_s16 = sphi %s1689_s16, %s3262_s16   ;;  %s1638_s15 = sphi %s1687_s15, %s3261_s15   ;;  %s1634_s14 = sphi %s1685_s14, %s3260_s14  }
   0xc   : > { %2894 = sst [smem:[#allocation14_spill]] %s1638_s15  ;;  %s1330_s18 = sadd.s32 4294967294, %s1646_s17  }
   0xd   : > { %2895 = sst [smem:[#allocation15_spill]] %s1642_s16  ;;  %s1710_s19 = sadd.s32 1, %s1646_s17  }
   0xe   : > { %2896 = sst [smem:[#allocation16_spill]] %s1646_s17  ;;  %s70_s20 = sadd.s32 1, %s1642_s16 }
   0xf   : > { %2897 = sst [smem:[#allocation17_spill]] %s1706_s1  ;;  %s67_s21 = ssub.s32 %s1646_s17, %s1710_s19 }
  0x10   : > { %2898 = sst [smem:[#allocation18_spill]] %s1710_s19  ;;  %p77_p0 = scmp.ne.s32.totalorder %s1642_s16, %s1638_s15 }
  0x11   : > { %p68_p1 = scmp.eq.s32.totalorder %s67_s21, 0  ;;  %p78_p2 = scmp.eq.s32.totalorder %s1646_s17, 0 }
  0x12   : > { %p83_p3 = scmp.ne.s32.totalorder %s1638_s15, %s1634_s14  ;;  %p2759_p4 = scmp.eq.s32.totalorder %s1706_s1, 0 }
  0x13   : > { %s1722_s22 = scalar_select %p68_p1, %s1642_s16, %s70_s20  }
  0x14   : > { %p1724_p5 = por %p78_p2, %p77_p0  ;;  %p1730_p6 = por %p2759_p4, %p83_p3 }
  0x15   : > { %2899 = sst [smem:[#allocation19_spill]] %s1722_s22  ;;  %p107_p7 = scmp.eq.s32.totalorder %s1706_s1, 1 }
  0x16   : > { %s2901_s24 = scalar_select %p1730_p6, 1, 0 }
  0x17   : > { %p113_p8 = scmp.eq.s32.totalorder %s1330_s18, 1  ;;  %p1331_p9 = scmp.ge.s32.totalorder %s1646_s17, 1 }
  0x18   : > { %p120_p10 = scmp.lt.s32.totalorder %s1646_s17, 3  ;;  %p1737_p11 = por %p107_p7, %p77_p0 }
  0x19   : > { %p1741_p12 = por %p113_p8, %p83_p3  ;;  %s2907_s0 = sld [smem:[#allocation96_spill]] }
  0x1a   : > { %s2902_s25 = scalar_select %p1737_p11, 1, 0 }
  0x1b   : > { %s2904_s26 = scalar_select %p1741_p12, 1, 0 }
  0x1c   : > { %2903 = sst [smem:[#allocation20_spill]] %s2902_s25  ;;  %p1745_p13 = pnand %p1331_p9, %p120_p10 }
  0x1d   : > { %2905 = sst [smem:[#allocation21_spill]] %s2904_s26  ;;  %p1468_p2 = scmp.lt.s32.totalorder %s1646_s17, 2 }
  0x1e   : > { %p1455_p1 = pneg %p1745_p13  ;;  %s147_s5 = sand.u32 1, %s1642_s16  }
  0x1f   : > { %s133_s30 = sshll.u32 %s2907_s0, 4  ;;  %p1765_p3 = pnand %p1468_p2, %p1724_p5  ;;  %s134_s30 = int_to_ptr.vmem [resolvable:$true] %s133_s30 }
  0x20   : > { %p1758_p7 = pnand %p1455_p1, %p2759_p4  ;;  %s1334_s7 = sshll.u32 %s147_s5, 6 }
  0x21   : > { %s1531_s8 = scalar_lea.vmem %s134_s30, 16  ;;  %p1539_p12 = scmp.lt.s32.totalorder %s134_s30, %s134_s30 }
  0x22   : > { %p1532_p8 = scmp.ne.s32.totalorder %s134_s30, %s1531_s8  ;;  %p1533_p9 = pneg %p1758_p7 }
  0x23   : > { %p1540_p11 = scmp.lt.s32.totalorder %s1531_s8, %s1531_s8 }
  0x24   : > { %p1534_p10 = pnand %p1533_p9, %p1532_p8 }
  0x25   : > { %p1541_p1 = por %p1540_p11, %p1539_p12 }
  0x26   : > { %p1535_p0 = pneg %p1534_p10 }
  0x28   : > { %p1542_p4 = pnand %p1541_p1, %p1535_p0 }
  0x2a   : > { %1545 = shalt.err (!%p1542_p4)
}
  0x2b   : > { %s1648_s9 = smov [#allocation4]   ;;  %s1445_s10 = sshll.u32 %s1646_s17, 10 }
  0x2c   : > { %1458 = dma.vmem_to_smem (!%p1758_p7), %s134_s30, 16, %s1648_s9, [#allocation7]  }
  0x2d   : > { %s151_s11 = scalar_lea.vmem [#allocation8], %s1334_s7  ;;  %s2910_s2 = sld [smem:[#allocation97_spill]] }
  0x2e   : > { %s158_s12 = sshll.u32 %s151_s11, 4  ;;  %s1781_s21 = scalar_lea.sflag [#allocation5], %s147_s5  ;;  %s1779_s12 = int_to_ptr.vmem [resolvable:$true] %s158_s12 }
  0x2f   : > { %p1548_p5 = pneg %p1765_p3 }
  0x33   : > { %s1777_s20 = scalar_lea.hbm %s2910_s2, %s1445_s10  ;;  %s1551_s30 = scalar_lea.hbm %s2910_s2, 2048 }
  0x34   : > { %s1546_s23 = scalar_lea.hbm %s1777_s20, 1024  ;;  %p1552_p0 = scmp.lt.u32.totalorder %s1777_s20, %s2910_s2 }
  0x35   : > { %p1547_p4 = scmp.ne.s32.totalorder %s1777_s20, %s1546_s23  ;;  %p1553_p2 = scmp.lt.u32.totalorder %s1551_s30, %s1546_s23 }
  0x36   : > { %p1555_p8 = scmp.lt.u32.totalorder %s1546_s23, %s1777_s20 }
  0x37   : > { %p1549_p11 = pnand %p1548_p5, %p1547_p4  ;;  %p1554_p7 = por %p1553_p2, %p1552_p0 }
  0x39   : > { %p1550_p12 = pneg %p1549_p11  ;;  %p1556_p9 = por %p1555_p8, %p1554_p7 }
  0x3b   : > { %p1557_p10 = pnand %p1556_p9, %p1550_p12 }
  0x3d   : > { %1560 = shalt.err (!%p1557_p10)
}
  0x3e   : > { %s1561_s5 = scalar_lea.vmem %s1779_s12, 1024  ;;  %s1649_s8 = smov [#allocation8]  }
  0x3f   : > { %p1562_p1 = scmp.ne.s32.totalorder %s1779_s12, %s1561_s5  ;;  %s1566_s9 = sshll.u32 %s1649_s8, 4  ;;  %s1567_s9 = int_to_ptr.vmem [resolvable:$false] %s1566_s9 }
  0x40   : > { %s1568_s10 = scalar_lea.vmem %s1567_s9, 2048  ;;  %p1569_p6 = scmp.lt.s32.totalorder %s1779_s12, %s1567_s9 }
  0x41   : > { %p1564_p4 = pnand %p1562_p1, %p1548_p5  ;;  %p1570_p0 = scmp.lt.s32.totalorder %s1568_s10, %s1561_s5 }
  0x43   : > { %p1565_p11 = pneg %p1564_p4  ;;  %p1571_p2 = por %p1570_p0, %p1569_p6 }
  0x45   : > { %p1572_p7 = pnand %p1571_p2, %p1565_p11 }
  0x47   : > { %1575 = shalt.err (!%p1572_p7)
}
  0x48   : > { %s1650_s11 = smov 128   ;;  %s1651_s13 = smov 8  }
  0x49   : > { %1462 = dma.hbm_to_vmem [thread:$0]  (!%p1765_p3), %s1777_s20, 1024, %s1779_s12, %s1781_s21, %s1650_s11, %s1650_s11, %s1651_s13  }
  0x4a   : > { %170 = sbr.rel (%p1745_p13) target bundleno = 409 (0x199), region = 32 }
  0x51   : > { %p2911_p5 = scmp.eq.s32.totalorder %s1706_s1, 0 }
  0x53   : > { %1621 = dma.done.wait (%p2911_p5), [#allocation7], 16   ;;  %p2912_p12 = pmov %p2911_p5 }
  0x54   : > { %s1816_s18 = sand.u32 1, %s1638_s15   ;;  %p2915_p6 = scmp.ne.s32.totalorder %s2901_s24, 0 }
  0x55   : > { %1623 = vsyncadd (%p2912_p12), [#allocation7], 4294967280  ;;  %2913 = sst [smem:[#allocation22_spill]] %s1816_s18  ;;  %s2761_s23 = sshll.u32 %s1816_s18, 6 }
  0x56   : > { %s177_s28 = scalar_lea.sflag [#allocation5], %s1816_s18  ;;  %s1822_s6 = scalar_lea.vmem [#allocation8], %s2761_s23 }
  0x57   : > { %2914 = sst [smem:[#allocation23_spill]] %s1822_s6 }
  0x58   : > { %1625 = dma.done.wait (%p2915_p6), %s177_s28, 1024  }
  0x59   : > { %1627 = vsyncadd (%p2915_p6), %s177_s28, 4294966272 }
  0x5a   : > { %185 = sfence }
  0x5b   : > { %v1829_v0 = vld [vmem:[%s1822_s6] sm:$0xff]  ;;  %v1832_v1 = vld [vmem:[%s1822_s6 + $0x10] sm:$0xff]  ;;  %vm212_vm0 = vcmask 130048   ;;  %v1652_v7 = vmov 0.0   ;;  %v205_v8 = vld [vmem:[%s1822_s6 + $0x8] sm:$0xff]  ;;  %vm245_vm1 = vcmask 128000  }
  0x5c   : > { %v1835_v2 = vld [vmem:[%s1822_s6 + $0x20] sm:$0xff]  ;;  %v1838_v3 = vld [vmem:[%s1822_s6 + $0x30] sm:$0xff]  ;;  %v1842_v4 = vsel %vm212_vm0, %v1829_v0, -inf  ;;  %v214_v5 = vsel %vm212_vm0, %v1832_v1, -inf  ;;  %253 = vst.msk [vmem:[#allocation2 + $0x48] sm:$0xff] %vm212_vm0, %v1652_v7  ;;  %254 = vst.msk [vmem:[#allocation2 + $0x50] sm:$0xff] %vm212_vm0, %v1652_v7 }
  0x5d   : > { %v215_v6 = vsel %vm212_vm0, %v1835_v2, -inf  ;;  %243 = vst.msk [vmem:[#allocation2] sm:$0xff] %vm212_vm0, %v1652_v7  ;;  %244 = vst.msk [vmem:[#allocation2 + $0x8] sm:$0xff] %vm212_vm0, %v1652_v7  ;;  %v217_v10 = vsel %vm212_vm0, %v1838_v3, -inf  ;;  %v207_v11 = vld [vmem:[%s1822_s6 + $0x18] sm:$0xff]  ;;  %v209_v12 = vld [vmem:[%s1822_s6 + $0x28] sm:$0xff] }
  0x5e   : > { %247 = vst.msk [vmem:[#allocation2 + $0x18] sm:$0xff] %vm212_vm0, %v1652_v7  ;;  %248 = vst.msk [vmem:[#allocation2 + $0x20] sm:$0xff] %vm212_vm0, %v1652_v7  ;;  %v216_v9 = vmax.f32 %v1842_v4, %v215_v6  ;;  %v211_v13 = vld [vmem:[%s1822_s6 + $0x38] sm:$0xff]  ;;  %v220_v14 = vsel %vm212_vm0, %v205_v8, -inf  ;;  %v218_v15 = vmax.f32 %v214_v5, %v217_v10  ;;  %v221_v16 = vsel %vm212_vm0, %v207_v11, -inf  ;;  %s1653_s24 = smov 2  }
  0x5f   : > { %250 = vst.msk [vmem:[#allocation2 + $0x30] sm:$0xff] %vm212_vm0, %v1652_v7  ;;  %251 = vst.msk [vmem:[#allocation2 + $0x38] sm:$0xff] %vm212_vm0, %v1652_v7  ;;  %v222_v17 = vsel %vm212_vm0, %v209_v12, -inf  ;;  %v224_v18 = vsel %vm212_vm0, %v211_v13, -inf  ;;  %v234_v21 = vsel %vm212_vm0, %v205_v8, 0.0  ;;  %v235_v22 = vsel %vm212_vm0, %v207_v11, 0.0 }
  0x60   : > { %256 = vst.msk [vmem:[#allocation2 + $0x60] sm:$0xff] %vm212_vm0, %v1652_v7  ;;  %257 = vst.msk [vmem:[#allocation2 + $0x68] sm:$0xff] %vm212_vm0, %v1652_v7  ;;  %v223_v19 = vmax.f32 %v220_v14, %v222_v17  ;;  %v225_v20 = vmax.f32 %v221_v16, %v224_v18  ;;  %v219_v23 = vmax.f32 %v216_v9, %v218_v15  ;;  %v237_v25 = vsel %vm212_vm0, %v209_v12, 0.0  ;;  %s1654_s27 = smov 3   ;;  %s1655_s12 = smov 1  }
  0x61   : > { %259 = vst.msk [vmem:[#allocation2 + $0x78] sm:$0xff] %vm212_vm0, %v1652_v7  ;;  %260 = vst.msk [vmem:[#allocation2 + $0x80] sm:$0xff] %vm212_vm0, %v1652_v7  ;;  %v236_v24 = vadd.f32 %v235_v22, %v234_v21  ;;  %v239_v26 = vsel %vm212_vm0, %v211_v13, 0.0  ;;  %v227_v28 = vsel %vm212_vm0, %v1829_v0, 0.0  ;;  %v228_v29 = vsel %vm212_vm0, %v1832_v1, 0.0  ;;  %s1656_s20 = smov 127  }
  0x62   : > { %262 = vst.msk [vmem:[#allocation2 + $0x90] sm:$0xff] %vm212_vm0, %v1652_v7  ;;  %263 = vst.msk [vmem:[#allocation2 + $0x98] sm:$0xff] %vm212_vm0, %v1652_v7  ;;  %v226_v27 = vmax.f32 %v223_v19, %v225_v20  ;;  %v230_v30 = vsel %vm212_vm0, %v1835_v2, 0.0  ;;  %297 = vrot.lane.b32.xlu1 %v219_v23, %s1653_s24  ;;  %288 = vrot.lane.b32.xlu0 %v219_v23, %s1654_s27  ;;  %v229_v32 = vadd.f32 %v228_v29, %v227_v28  ;;  %s1657_s21 = smov 126   ;;  %s1658_s29 = smov 125   ;;  %vm304_vm2 = vcmask 130064  }
  0x63   : > { %265 = vst.msk [vmem:[#allocation2 + $0xa8] sm:$0xff] %vm212_vm0, %v1652_v7  ;;  %266 = vst.msk [vmem:[#allocation2 + $0xb0] sm:$0xff] %vm212_vm0, %v1652_v7  ;;  %v238_v31 = vadd.f32 %v237_v25, %v236_v24  ;;  %v232_v33 = vsel %vm212_vm0, %v1838_v3, 0.0  ;;  %s1921_s30 = sld [smem:[#allocation4 + $0x1]]  ;;  %s1923_s4 = sld [smem:[#allocation4 + $0x8]]  ;;  %vm294_vm3 = vcmask 130072  }
  0x64   : > { %268 = vst.msk [vmem:[#allocation2 + $0xc0] sm:$0xff] %vm212_vm0, %v1652_v7  ;;  %269 = vst.msk [vmem:[#allocation2 + $0xc8] sm:$0xff] %vm212_vm0, %v1652_v7  ;;  %v231_v35 = vadd.f32 %v230_v30, %v229_v32  ;;  %s1925_s7 = sld [smem:[#allocation4 + $0xf]]  ;;  %s1927_s5 = sld [smem:[#allocation4 + $0x16]]  ;;  %vm314_vm4 = vcmask 130056   ;;  %vm327_vm5 = vcmask 121856  }
  0x65   : > { %271 = vst.msk [vmem:[#allocation2 + $0xd8] sm:$0xff] %vm212_vm0, %v1652_v7  ;;  %272 = vst.msk [vmem:[#allocation2 + $0xe0] sm:$0xff] %vm212_vm0, %v1652_v7  ;;  %v240_v34 = vadd.f32 %v239_v26, %v238_v31  ;;  %s1929_s8 = sld [smem:[#allocation4]]  ;;  %s1931_s9 = sld [smem:[#allocation4 + $0x7]]  ;;  %vm337_vm6 = vcmask 113664   ;;  %vm347_vm7 = vcmask 105472  }
  0x66   : > { %274 = vst.msk [vmem:[#allocation2 + $0xf0] sm:$0xff] %vm212_vm0, %v1652_v7  ;;  %275 = vst.msk [vmem:[#allocation2 + $0xf8] sm:$0xff] %vm212_vm0, %v1652_v7  ;;  %299 = vrot.lane.b32.xlu1 %v226_v27, %s1653_s24  ;;  %290 = vrot.lane.b32.xlu0 %v226_v27, %s1654_s27  ;;  %v233_v37 = vadd.f32 %v232_v33, %v231_v35  ;;  %s1933_s10 = sld [smem:[#allocation4 + $0xe]]  ;;  %s1935_s11 = sld [smem:[#allocation4 + $0x15]] }
  0x67   : > { %277 = vst.msk [vmem:[#allocation2 + $0x108] sm:$0xff] %vm212_vm0, %v1652_v7  ;;  %278 = vst.msk [vmem:[#allocation2 + $0x110] sm:$0xff] %vm212_vm0, %v1652_v7  ;;  %v242_v36 = vmul.f32 0.25, %v240_v34  ;;  %s1937_s13 = sld [smem:[#allocation4 + $0x1d]]  ;;  %s1939_s28 = sld [smem:[#allocation4 + $0x24]] }
  0x68   : > { %280 = vst.msk [vmem:[#allocation2 + $0x120] sm:$0xff] %vm212_vm0, %v1652_v7  ;;  %281 = vst.msk [vmem:[#allocation2 + $0x128] sm:$0xff] %vm212_vm0, %v1652_v7  ;;  %v241_v38 = vmul.f32 0.25, %v233_v37  ;;  %s1953_s23 = sld [smem:[#allocation4 + $0x25]]  ;;  %s1955_s0 = sld [smem:[#allocation4 + $0x2c]] }
  0x69   : > { %283 = vst.msk [vmem:[#allocation2 + $0x138] sm:$0xff] %vm212_vm0, %v1652_v7  ;;  %284 = vst.msk [vmem:[#allocation2 + $0x140] sm:$0xff] %vm212_vm0, %v1652_v7  ;;  %2916 = sst [smem:[#allocation24_spill]] %s1921_s30  ;;  %s1959_s22 = sld [smem:[#allocation4 + $0x2]]  ;;  %v468_v39 = vstv %s1921_s30  ;;  %v476_v40 = vstv %s1923_s4 }
  0x6a   : > { %255 = vst.msk [vmem:[#allocation2 + $0x58] sm:$0x3f] %vm245_vm1, %v1652_v7  ;;  %246 = vst.msk [vmem:[#allocation2 + $0x10] sm:$0x3f] %vm245_vm1, %v1652_v7  ;;  %309 = vrot.lane.b32.xlu1 %v226_v27, %s1655_s12  ;;  %307 = vrot.lane.b32.xlu0 %v219_v23, %s1655_s12  ;;  %2917 = sst [smem:[#allocation25_spill]] %s1923_s4  ;;  %s1957_s2 = sld [smem:[#allocation4 + $0x3]]  ;;  %v484_v41 = vstv %s1925_s7  ;;  %v492_v42 = vstv %s1927_s5 }
  0x6b   : > { %249 = vst.msk [vmem:[#allocation2 + $0x28] sm:$0x3f] %vm245_vm1, %v1652_v7  ;;  %252 = vst.msk [vmem:[#allocation2 + $0x40] sm:$0x3f] %vm245_vm1, %v1652_v7  ;;  %2918 = sst [smem:[#allocation26_spill]] %s1925_s7  ;;  %s1961_s16 = sld [smem:[#allocation4 + $0x9]]  ;;  %v412_v43 = vstv %s1929_s8  ;;  %v420_v44 = vstv %s1931_s9 }
  0x6c   : > { %258 = vst.msk [vmem:[#allocation2 + $0x70] sm:$0x3f] %vm245_vm1, %v1652_v7  ;;  %261 = vst.msk [vmem:[#allocation2 + $0x88] sm:$0x3f] %vm245_vm1, %v1652_v7  ;;  %2919 = sst [smem:[#allocation27_spill]] %s1927_s5  ;;  %s1963_s15 = sld [smem:[#allocation4 + $0x10]]  ;;  %v428_v45 = vstv %s1933_s10  ;;  %v436_v46 = vstv %s1935_s11 }
  0x6d   : > { %264 = vst.msk [vmem:[#allocation2 + $0xa0] sm:$0x3f] %vm245_vm1, %v1652_v7  ;;  %267 = vst.msk [vmem:[#allocation2 + $0xb8] sm:$0x3f] %vm245_vm1, %v1652_v7  ;;  %2920 = sst [smem:[#allocation28_spill]] %s1929_s8  ;;  %s1965_s19 = sld [smem:[#allocation4 + $0xa]]  ;;  %v500_v47 = vstv %s1937_s13  ;;  %v508_v50 = vstv %s1939_s28 }
  0x6e   : > { %270 = vst.msk [vmem:[#allocation2 + $0xd0] sm:$0x3f] %vm245_vm1, %v1652_v7  ;;  %273 = vst.msk [vmem:[#allocation2 + $0xe8] sm:$0x3f] %vm245_vm1, %v1652_v7  ;;  %322 = vrot.lane.b32.xlu1 %v226_v27, %s1656_s20  ;;  %320 = vrot.lane.b32.xlu0 %v219_v23, %s1656_s20  ;;  %2921 = sst [smem:[#allocation29_spill]] %s1931_s9  ;;  %s1967_s17 = sld [smem:[#allocation4 + $0x11]] }
  0x6f   : > { %276 = vst.msk [vmem:[#allocation2 + $0x100] sm:$0x3f] %vm245_vm1, %v1652_v7  ;;  %279 = vst.msk [vmem:[#allocation2 + $0x118] sm:$0x3f] %vm245_vm1, %v1652_v7  ;;  %2922 = sst [smem:[#allocation30_spill]] %s1933_s10  ;;  %s1969_s26 = sld [smem:[#allocation4 + $0x2d]] }
  0x70   : > { %282 = vst.msk [vmem:[#allocation2 + $0x130] sm:$0x3f] %vm245_vm1, %v1652_v7  ;;  %285 = vst.msk [vmem:[#allocation2 + $0x148] sm:$0x3f] %vm245_vm1, %v1652_v7  ;;  %2923 = sst [smem:[#allocation31_spill]] %s1935_s11  ;;  %s1971_s14 = sld [smem:[#allocation4 + $0x19]]  ;;  %v580_v48 = vstv %s1957_s2 }
  0x71   : > { %318 = vst.msk [vmem:[#allocation2 + $0x4b] sm:$0xff] %vm212_vm0, %v219_v23  ;;  %319 = vst.msk [vmem:[#allocation2 + $0x53] sm:$0xff] %vm212_vm0, %v226_v27  ;;  %2924 = sst [smem:[#allocation32_spill]] %s1937_s13  ;;  %s1973_s25 = sld [smem:[#allocation4 + $0x20]] }
  0x72   : > { %381 = vst.msk [vmem:[#allocation2 + $0xfb] sm:$0xff] %vm212_vm0, %v242_v36  ;;  %380 = vst.msk [vmem:[#allocation2 + $0xf3] sm:$0xff] %vm212_vm0, %v241_v38  ;;  %332 = vrot.lane.b32.xlu1 %v226_v27, %s1657_s21  ;;  %330 = vrot.lane.b32.xlu0 %v219_v23, %s1657_s21  ;;  %2925 = sst [smem:[#allocation33_spill]] %s1939_s28  ;;  %s1975_s3 = sld [smem:[#allocation4 + $0x27]] }
  0x73   : > { %2932 = sst [smem:[#allocation40_spill]] %s1953_s23  ;;  %s1977_s6 = sld [smem:[#allocation4 + $0x2e]]  ;;  %v588_v58 = vstv %s1965_s19 }
  0x74   : > { %2933 = sst [smem:[#allocation41_spill]] %s1955_s0  ;;  %s1979_s18 = sld [smem:[#allocation4 + $0x18]]  ;;  %v596_v0 = vstv %s1967_s17 }
  0x75   : > { %2934 = sst [smem:[#allocation42_spill]] %s1959_s22  ;;  %s1981_s1 = sld [smem:[#allocation4 + $0x1f]] }
  0x76   : > { %342 = vrot.lane.b32.xlu1 %v226_v27, %s1658_s29  ;;  %340 = vrot.lane.b32.xlu0 %v219_v23, %s1658_s29  ;;  %2935 = sst [smem:[#allocation43_spill]] %s1961_s16  ;;  %s1987_s22 = sld [smem:[#allocation4 + $0xb]] }
  0x77   : > { %2936 = sst [smem:[#allocation44_spill]] %s1963_s15  ;;  %s1983_s16 = sld [smem:[#allocation4 + $0x26]] }
  0x78   : > { %2937 = sst [smem:[#allocation45_spill]] %s1969_s26  ;;  %s1985_s15 = sld [smem:[#allocation4 + $0x4]]  ;;  %v579_v49 = vld [vmem:[#allocation2 + $0x50] sm:$0xff]  ;;  %v578_v54 = vld [vmem:[#allocation2 + $0x48] sm:$0xff] }
  0x79   : > { %2938 = sst [smem:[#allocation46_spill]] %s1971_s14  ;;  %s1989_s26 = sld [smem:[#allocation4 + $0x12]]  ;;  %v586_v59 = vld [vmem:[#allocation2 + $0x49] sm:$0xff]  ;;  %v2057_v63 = vmul.f32 %v580_v48, %v579_v49  ;;  %v595_v1 = vld [vmem:[#allocation2 + $0x52] sm:$0xff]  ;;  %v2072_v9 = vmul.f32 %v580_v48, %v578_v54  ;;  %v1003_v49 = vld [vmem:[#allocation2 + $0xfc] sm:$0xff] }
  0x7a   : > { %354 = vrot.lane.b32.xlu1 %v242_v36, %s1654_s27  ;;  %352 = vrot.lane.b32.xlu0 %v241_v38, %s1654_s27  ;;  %s1943_s27 = sld [smem:[#allocation4 + $0x1c]]  ;;  %2939 = sst [smem:[#allocation47_spill]] %s1973_s25  ;;  %v594_v60 = vld [vmem:[#allocation2 + $0x4a] sm:$0xff]  ;;  %v627_v6 = vld [vmem:[#allocation2 + $0x56] sm:$0xff]  ;;  %v2074_v10 = vmul.f32 %v588_v58, %v586_v59  ;;  %v604_v11 = vstv %s1979_s18  ;;  %v2085_v17 = vmul.f32 %v596_v0, %v595_v1  ;;  %v1019_v48 = vld [vmem:[#allocation2 + $0xfe] sm:$0xff] }
  0x7b   : > { %2940 = sst [smem:[#allocation48_spill]] %s1975_s3  ;;  %s1991_s14 = sld [smem:[#allocation4 + $0x1a]]  ;;  %v587_v2 = vld [vmem:[#allocation2 + $0x51] sm:$0xff]  ;;  %v2082_v15 = vmul.f32 %v596_v0, %v594_v60 }
  0x7c   : > { %2941 = sst [smem:[#allocation49_spill]] %s1977_s6  ;;  %s1993_s25 = sld [smem:[#allocation4 + $0x21]]  ;;  %v603_v8 = vld [vmem:[#allocation2 + $0x53] sm:$0xff]  ;;  %v602_v14 = vld [vmem:[#allocation2 + $0x4b] sm:$0xff]  ;;  %v2096_v24 = vmul.f32 %v588_v58, %v587_v2 }
  0x7d   : > { %2942 = sst [smem:[#allocation50_spill]] %s1981_s1  ;;  %s1995_s6 = sld [smem:[#allocation4 + $0x28]]  ;;  %v611_v12 = vld [vmem:[#allocation2 + $0x54] sm:$0xff]  ;;  %v610_v20 = vld [vmem:[#allocation2 + $0x4c] sm:$0xff]  ;;  %v2103_v28 = vmul.f32 %v604_v11, %v603_v8  ;;  %v2107_v30 = vmul.f32 %v604_v11, %v602_v14 }
  0x7e   : > { %363 = vrot.lane.b32.xlu1 %v242_v36, %s1653_s24  ;;  %361 = vrot.lane.b32.xlu0 %v241_v38, %s1653_s24  ;;  %s1941_s24 = sld [smem:[#allocation4 + $0x2b]]  ;;  %2943 = sst [smem:[#allocation51_spill]] %s1983_s16  ;;  %v619_v18 = vld [vmem:[#allocation2 + $0x55] sm:$0xff]  ;;  %v618_v25 = vld [vmem:[#allocation2 + $0x4d] sm:$0xff] }
  0x7f   : > { %2944 = sst [smem:[#allocation52_spill]] %s1985_s15  ;;  %s1999_s16 = sld [smem:[#allocation4 + $0x5]]  ;;  %v626_v26 = vld [vmem:[#allocation2 + $0x4e] sm:$0xff]  ;;  %v971_v11 = vld [vmem:[#allocation2 + $0xf8] sm:$0xff] }
  0x80   : > { %2927 = sst [smem:[#allocation35_spill]] %s1943_s27  ;;  %s1997_s3 = sld [smem:[#allocation4 + $0x2f]]  ;;  %v1002_v54 = vld [vmem:[#allocation2 + $0xf4] sm:$0xff] }
  0x81   : > { %2945 = sst [smem:[#allocation53_spill]] %s1987_s22  ;;  %s2001_s15 = sld [smem:[#allocation4 + $0xc]]  ;;  %v1010_v35 = vld [vmem:[#allocation2 + $0xf5] sm:$0xff] }
  0x82   : > { %372 = vrot.lane.b32.xlu1 %v242_v36, %s1655_s12  ;;  %370 = vrot.lane.b32.xlu0 %v241_v38, %s1655_s12  ;;  %s1945_s12 = sld [smem:[#allocation4 + $0x23]]  ;;  %2946 = sst [smem:[#allocation54_spill]] %s1989_s26  ;;  %v1018_v27 = vld [vmem:[#allocation2 + $0xf6] sm:$0xff] }
  0x83   : > { %2947 = sst [smem:[#allocation55_spill]] %s1991_s14  ;;  %s2003_s22 = sld [smem:[#allocation4 + $0x13]] }
  0x84   : > { %2926 = sst [smem:[#allocation34_spill]] %s1941_s24  ;;  %s2005_s1 = sld [smem:[#allocation4 + $0x1b]]  ;;  %v516_v51 = vstv %s1941_s24 }
  0x85   : > { %2948 = sst [smem:[#allocation56_spill]] %s1993_s25  ;;  %s2007_s14 = sld [smem:[#allocation4 + $0x22]] }
  0x86   : > { %384 = vrot.lane.b32.xlu1 %v242_v36, %s1656_s20  ;;  %382 = vrot.lane.b32.xlu0 %v241_v38, %s1656_s20  ;;  %s1947_s20 = sld [smem:[#allocation4 + $0x2a]]  ;;  %2949 = sst [smem:[#allocation57_spill]] %s1995_s6 }
  0x87   : > { %2950 = sst [smem:[#allocation58_spill]] %s1997_s3  ;;  %s2009_s25 = sld [smem:[#allocation4 + $0x29]] }
  0x88   : > { %2928 = sst [smem:[#allocation36_spill]] %s1945_s12  ;;  %s2011_s6 = sld [smem:[#allocation4 + $0x30]] }
  0x89   : > { %2951 = sst [smem:[#allocation59_spill]] %s1999_s16  ;;  %s2015_s16 = sld [smem:[#allocation4 + $0xd]] }
  0x8a   : > { %393 = vrot.lane.b32.xlu1 %v242_v36, %s1657_s21  ;;  %391 = vrot.lane.b32.xlu0 %v241_v38, %s1657_s21  ;;  %s1949_s21 = sld [smem:[#allocation4 + $0x17]]  ;;  %2953 = sst [smem:[#allocation61_spill]] %s2003_s22 }
  0x8b   : > { %2952 = sst [smem:[#allocation60_spill]] %s2001_s15  ;;  %s2013_s3 = sld [smem:[#allocation4 + $0x6]] }
  0x8c   : > { %2929 = sst [smem:[#allocation37_spill]] %s1947_s20  ;;  %s2019_s22 = sld [smem:[#allocation4 + $0x14]] }
  0x8d   : > { %2954 = sst [smem:[#allocation62_spill]] %s2005_s1  ;;  %s2021_s1 = sld [smem:[#allocation4 + $0x46]] }
  0x8e   : > { %402 = vrot.lane.b32.xlu1 %v242_v36, %s1658_s29  ;;  %400 = vrot.lane.b32.xlu0 %v241_v38, %s1658_s29  ;;  %s1951_s29 = sld [smem:[#allocation4 + $0x1e]]  ;;  %2955 = sst [smem:[#allocation63_spill]] %s2007_s14 }
  0x8f   : > { %2956 = sst [smem:[#allocation64_spill]] %s2009_s25  ;;  %s2037_s7 = sld [smem:[#allocation4 + $0x31]] }
  0x90   : > { %2930 = sst [smem:[#allocation38_spill]] %s1949_s21  ;;  %s2035_s4 = sld [smem:[#allocation4 + $0x5b]] }
  0x91   : > { %2957 = sst [smem:[#allocation65_spill]] %s2011_s6  ;;  %s2027_s6 = sld [smem:[#allocation4 + $0x4d]] }
  0x92   : > { %2958 = sst [smem:[#allocation66_spill]] %s2013_s3  ;;  %s2029_s3 = sld [smem:[#allocation4 + $0x54]] }
  0x93   : > { %2959 = sst [smem:[#allocation67_spill]] %s2015_s16  ;;  %s2043_s9 = sld [smem:[#allocation4 + $0x38]] }
  0x94   : > { %2931 = sst [smem:[#allocation39_spill]] %s1951_s29  ;;  %s2045_s10 = sld [smem:[#allocation4 + $0x3f]] }
  0x95   : > { %2960 = sst [smem:[#allocation68_spill]] %s2021_s1  ;;  %s2969_s5 = sld [smem:[#allocation45_spill]] }
  0x96   : > { %2963 = sst [smem:[#allocation71_spill]] %s2037_s7  ;;  %s2051_s28 = sld [smem:[#allocation4 + $0x47]] }
  0x97   : > { %2961 = sst [smem:[#allocation69_spill]] %s2027_s6  ;;  %s2053_s27 = sld [smem:[#allocation4 + $0x4e]] }
  0x98   : > { %2962 = sst [smem:[#allocation70_spill]] %s2029_s3  ;;  %s2971_s20 = sld [smem:[#allocation50_spill]] }
  0x99   : > { %2964 = sst [smem:[#allocation72_spill]] %s2043_s9  ;;  %s2060_s21 = sld [smem:[#allocation4 + $0x55]] }
  0x9a   : > { %2965 = sst [smem:[#allocation73_spill]] %s2045_s10  ;;  %s2975_s12 = sld [smem:[#allocation51_spill]] }
  0x9b   : > { %s2062_s29 = sld [smem:[#allocation4 + $0x5c]]  ;;  %v628_v7 = vstv %s2969_s5  ;;  %s2068_s0 = sld [smem:[#allocation4 + $0x32]] }
  0x9c   : > { %s2070_s23 = sld [smem:[#allocation4 + $0x39]]  ;;  %s2078_s2 = sld [smem:[#allocation4 + $0x40]]  ;;  %v2092_v21 = vmul.f32 %v628_v7, %v627_v6  ;;  %v2126_v37 = vmul.f32 %v628_v7, %v626_v26  ;;  %v978_v7 = vld [vmem:[#allocation2 + $0xf1] sm:$0xff]  ;;  %v995_v6 = vld [vmem:[#allocation2 + $0xfb] sm:$0xff] }
  0x9d   : > { %2970 = sst [smem:[#allocation45_spill]] %s2053_s27  ;;  %s2080_s8 = sld [smem:[#allocation4 + $0x33]]  ;;  %v986_v26 = vld [vmem:[#allocation2 + $0xf2] sm:$0xff] }
  0x9e   : > { %v612_v13 = vstv %s2971_s20  ;;  %s2088_s13 = sld [smem:[#allocation4 + $0x48]]  ;;  %s2090_s18 = sld [smem:[#allocation4 + $0x4f]] }
  0x9f   : > { %2972 = sst [smem:[#allocation50_spill]] %s2060_s21  ;;  %s2098_s19 = sld [smem:[#allocation4 + $0x56]]  ;;  %v2105_v29 = vmul.f32 %v612_v13, %v611_v12  ;;  %v2117_v34 = vmul.f32 %v612_v13, %v610_v20  ;;  %v994_v13 = vld [vmem:[#allocation2 + $0xf3] sm:$0xff] }
  0xa0   : > { %v620_v19 = vstv %s2975_s12  ;;  %s2100_s30 = sld [smem:[#allocation4 + $0x5d]]  ;;  %s2990_s17 = sld [smem:[#allocation56_spill]] }
  0xa1   : > { %2973 = sst [smem:[#allocation74_spill]] %s2062_s29  ;;  %v2113_v31 = vmul.f32 %v620_v19, %v619_v18  ;;  %v2124_v36 = vmul.f32 %v620_v19, %v618_v25  ;;  %s2129_s20 = sld [smem:[#allocation4 + $0x42]]  ;;  %v970_v18 = vld [vmem:[#allocation2 + $0xf0] sm:$0xff]  ;;  %v987_v25 = vld [vmem:[#allocation2 + $0xfa] sm:$0xff] }
  0xa2   : > { %2976 = sst [smem:[#allocation51_spill]] %s2068_s0  ;;  %s2137_s26 = sld [smem:[#allocation4 + $0x50]]  ;;  %v979_v19 = vld [vmem:[#allocation2 + $0xf9] sm:$0xff] }
  0xa3   : > { %2977 = sst [smem:[#allocation75_spill]] %s2070_s23  ;;  %s2121_s23 = sld [smem:[#allocation4 + $0x3b]] }
  0xa4   : > { %2980 = sst [smem:[#allocation76_spill]] %s2078_s2  ;;  %s2145_s12 = sld [smem:[#allocation4 + $0x5e]] }
  0xa5   : > { %2981 = sst [smem:[#allocation77_spill]] %s2080_s8  ;;  %s2109_s8 = sld [smem:[#allocation4 + $0x34]] }
  0xa6   : > { %2983 = sst [smem:[#allocation78_spill]] %s2088_s13  ;;  %s2111_s13 = sld [smem:[#allocation4 + $0x3a]] }
  0xa7   : > { %2984 = sst [smem:[#allocation79_spill]] %s2090_s18  ;;  %s2993_s18 = sld [smem:[#allocation58_spill]]  ;;  %v988_v60 = vstv %s2129_s20 }
  0xa8   : > { %2987 = sst [smem:[#allocation80_spill]] %s2098_s19  ;;  %s2147_s24 = sld [smem:[#allocation4 + $0x4a]]  ;;  %v2226_v58 = vmul.f32 %v988_v60, %v986_v26  ;;  %v2228_v32 = vmul.f32 %v988_v60, %v987_v25 }
  0xa9   : > { %2988 = sst [smem:[#allocation81_spill]] %s2100_s30  ;;  %s2119_s30 = sld [smem:[#allocation4 + $0x41]]  ;;  %v980_v1 = vstv %s2121_s23 }
  0xaa   : > { %s2153_s19 = sld [smem:[#allocation4 + $0x51]]  ;;  %s2155_s15 = sld [smem:[#allocation4 + $0x58]]  ;;  %v2218_v20 = vmul.f32 %v980_v1, %v978_v7  ;;  %v1020_v38 = vstv %s2145_s12  ;;  %3020 = vst [vmem:[#allocation87_spill] sm:$0xff] %v2226_v58 }
  0xab   : > { %2992 = sst [smem:[#allocation56_spill]] %s2109_s8  ;;  %s2131_s8 = sld [smem:[#allocation4 + $0x49]] }
  0xac   : > { %2994 = sst [smem:[#allocation58_spill]] %s2111_s13  ;;  %s2161_s14 = sld [smem:[#allocation4 + $0x5f]] }
  0xad   : > { %s2163_s2 = sld [smem:[#allocation4 + $0x35]]  ;;  %s3005_s13 = sld [smem:[#allocation56_spill]] }
  0xae   : > { %s2169_s25 = sld [smem:[#allocation4 + $0x3c]]  ;;  %s2171_s5 = sld [smem:[#allocation4 + $0x43]] }
  0xaf   : > { %2997 = sst [smem:[#allocation82_spill]] %s2119_s30  ;;  %s2139_s30 = sld [smem:[#allocation4 + $0x57]] }
  0xb0   : > { %s3007_s3 = sld [smem:[#allocation78_spill]]  ;;  %s3008_s6 = sld [smem:[#allocation79_spill]] }
  0xb1   : > { %s2177_s7 = sld [smem:[#allocation4 + $0x4b]]  ;;  %s2179_s9 = sld [smem:[#allocation4 + $0x52]]  ;;  %v996_v2 = vstv %s2131_s8 }
  0xb2   : > { %3001 = sst [smem:[#allocation83_spill]] %s2161_s14  ;;  %s3013_s27 = sld [smem:[#allocation81_spill]]  ;;  %v2232_v7 = vmul.f32 %v996_v2, %v994_v13  ;;  %v2241_v60 = vmul.f32 %v996_v2, %v995_v6  ;;  %v2256_v2 = vmul.f32 %v1020_v38, %v1018_v27 }
  0xb3   : > { %3002 = sst [smem:[#allocation84_spill]] %s2163_s2  ;;  %v972_v8 = vstv %s3005_s13  ;;  %s2185_s21 = sld [smem:[#allocation4 + $0x59]] }
  0xb4   : > { %3006 = sst [smem:[#allocation56_spill]] %s2171_s5  ;;  %s2187_s29 = sld [smem:[#allocation4 + $0x60]]  ;;  %v2207_v59 = vmul.f32 %v972_v8, %v971_v11  ;;  %v2216_v0 = vmul.f32 %v972_v8, %v970_v18  ;;  %v2230_v8 = vmul.f32 %v980_v1, %v979_v19  ;;  %3021 = vst [vmem:[#allocation88_spill] sm:$0xff] %v2232_v7  ;;  %v1011_v18 = vld [vmem:[#allocation2 + $0xfd] sm:$0xff]  ;;  %v2247_v19 = vmul.f32 %v1020_v38, %v1019_v48 }
  0xb5   : > { %s3017_s13 = sld [smem:[#allocation82_spill]]  ;;  %s2193_s16 = sld [smem:[#allocation4 + $0x36]]  ;;  %v1012_v33 = vstv %s2139_s30  ;;  %3028 = vst [vmem:[#allocation95_spill] sm:$0xff] %v2256_v2 }
  0xb6   : > { %s2195_s0 = sld [smem:[#allocation4 + $0x3d]]  ;;  %s2203_s23 = sld [smem:[#allocation4 + $0x44]]  ;;  %3025 = vst [vmem:[#allocation92_spill] sm:$0xff] %v2247_v19  ;;  %v2251_v22 = vmul.f32 %v1012_v33, %v1010_v35 }
  0xb7   : > { %3010 = sst [smem:[#allocation78_spill]] %s2177_s7  ;;  %s2205_s1 = sld [smem:[#allocation4 + $0x37]] }
  0xb8   : > { %3011 = sst [smem:[#allocation79_spill]] %s2179_s9  ;;  %s2212_s10 = sld [smem:[#allocation4 + $0x4c]]  ;;  %3026 = vst [vmem:[#allocation93_spill] sm:$0xff] %v2251_v22 }
  0xb9   : > { %3014 = sst [smem:[#allocation81_spill]] %s2185_s21  ;;  %s2214_s20 = sld [smem:[#allocation4 + $0x53]] }
  0xba   : > { %3015 = sst [smem:[#allocation85_spill]] %s2187_s29  ;;  %s2222_s8 = sld [smem:[#allocation4 + $0x5a]] }
  0xbb   : > { %s2224_s11 = sld [smem:[#allocation4 + $0x61]]  ;;  %s2236_s30 = sld [smem:[#allocation4 + $0x45]] }
  0xbc   : > { %s3040_s2 = sld [smem:[#allocation35_spill]]  ;;  %s3042_s9 = sld [smem:[#allocation37_spill]] }
  0xbd   : > { %3018 = sst [smem:[#allocation82_spill]] %s2205_s1  ;;  %s3041_s1 = sld [smem:[#allocation36_spill]] }
  0xbe   : > { %s3045_s7 = sld [smem:[#allocation38_spill]]  ;;  %s3049_s14 = sld [smem:[#allocation39_spill]] }
  0xbf   : > { %s3053_s21 = sld [smem:[#allocation41_spill]]  ;;  %s3056_s29 = sld [smem:[#allocation42_spill]] }
  0xc0   : > { %s3058_s5 = sld [smem:[#allocation43_spill]]  ;;  %s3067_s12 = sld [smem:[#allocation46_spill]] }
  0xc1   : > { %3019 = sst [smem:[#allocation86_spill]] %s2224_s11  ;;  %s3051_s11 = sld [smem:[#allocation40_spill]] }
  0xc2   : > { %3022 = sst [smem:[#allocation89_spill]] %s2236_s30  ;;  %s3059_s30 = sld [smem:[#allocation44_spill]] }
  0xd4   : > { %v298_v12 = vpop.permute.xlu1 %297  ;;  %v289_v14 = vpop.permute.xlu0 %288 }
  0xd5   : > { %305 = vst.msk [vmem:[#allocation2 + $0x1b] sm:$0xff] %vm304_vm2, %v298_v12 }
  0xd6   : > { %295 = vst.msk [vmem:[#allocation2 + $0x3] sm:$0xff] %vm294_vm3, %v289_v14  ;;  %v1004_v14 = vstv %s2137_s26  ;;  %s2234_s26 = sld [smem:[#allocation4 + $0x3e]] }
  0xd7   : > { %v2243_v1 = vmul.f32 %v1004_v14, %v1002_v54  ;;  %v2245_v13 = vmul.f32 %v1004_v14, %v1003_v49 }
  0xd8   : > { %v300_v11 = vpop.permute.xlu1 %299  ;;  %v291_v12 = vpop.permute.xlu0 %290 }
  0xd9   : > { %306 = vst.msk [vmem:[#allocation2 + $0x23] sm:$0xff] %vm304_vm2, %v300_v11  ;;  %3023 = vst [vmem:[#allocation90_spill] sm:$0xff] %v2243_v1 }
  0xda   : > { %296 = vst.msk [vmem:[#allocation2 + $0xb] sm:$0xff] %vm294_vm3, %v291_v12  ;;  %3024 = vst [vmem:[#allocation91_spill] sm:$0xff] %v2245_v13  ;;  %v2254_v12 = vmul.f32 %v1012_v33, %v1011_v18 }
  0xdc   : > { %3027 = vst [vmem:[#allocation94_spill] sm:$0xff] %v2254_v12  ;;  %v466_v49 = vld [vmem:[#allocation2 + $0x18] sm:$0xff]  ;;  %v310_v14 = vpop.permute.xlu1 %309  ;;  %v308_v48 = vpop.permute.xlu0 %307 }
  0xdd   : > { %v474_v6 = vld [vmem:[#allocation2 + $0x19] sm:$0xff]  ;;  %316 = vst.msk [vmem:[#allocation2 + $0x3b] sm:$0xff] %vm314_vm4, %v310_v14  ;;  %315 = vst.msk [vmem:[#allocation2 + $0x33] sm:$0xff] %vm314_vm4, %v308_v48  ;;  %v469_v35 = vmul.f32 %v468_v39, %v466_v49  ;;  %v418_v54 = vld [vmem:[#allocation2 + $0x1] sm:$0xff] }
  0xde   : > { %v482_v33 = vld [vmem:[#allocation2 + $0x1a] sm:$0xff]  ;;  %v426_v11 = vld [vmem:[#allocation2 + $0x2] sm:$0xff]  ;;  %v2281_v49 = vmul.f32 %v476_v40, %v474_v6 }
  0xdf   : > { %v490_v18 = vld [vmem:[#allocation2 + $0x1b] sm:$0xff]  ;;  %v434_v16 = vld [vmem:[#allocation2 + $0x3] sm:$0xff]  ;;  %v2285_v4 = vmul.f32 %v484_v41, %v482_v33  ;;  %v421_v33 = vmul.f32 %v420_v44, %v418_v54  ;;  %v429_v25 = vmul.f32 %v428_v45, %v426_v11 }
  0xe0   : > { %v410_v27 = vld [vmem:[#allocation2] sm:$0xff]  ;;  %v437_v38 = vmul.f32 %v436_v46, %v434_v16  ;;  %v323_v14 = vpop.permute.xlu1 %322  ;;  %v321_v48 = vpop.permute.xlu0 %320  ;;  %v2291_v26 = vmul.f32 %v492_v42, %v490_v18 }
  0xe1   : > { %v467_v3 = vld [vmem:[#allocation2 + $0x20] sm:$0xff]  ;;  %v413_v6 = vmul.f32 %v412_v43, %v410_v27  ;;  %329 = vst.msk [vmem:[#allocation2 + $0x6b] sm:$0xff] %vm327_vm5, %v323_v14  ;;  %328 = vst.msk [vmem:[#allocation2 + $0x63] sm:$0xff] %vm327_vm5, %v321_v48 }
  0xe2   : > { %v475_v62 = vld [vmem:[#allocation2 + $0x21] sm:$0xff]  ;;  %v471_v18 = vadd.f32 %v469_v35, %v437_v38  ;;  %v470_v27 = vmul.f32 %v468_v39, %v467_v3 }
  0xe3   : > { %v483_v5 = vld [vmem:[#allocation2 + $0x22] sm:$0xff]  ;;  %v478_v54 = vmul.f32 %v476_v40, %v475_v62 }
  0xe4   : > { %v491_v23 = vld [vmem:[#allocation2 + $0x23] sm:$0xff]  ;;  %v486_v53 = vmul.f32 %v484_v41, %v483_v5  ;;  %v333_v5 = vpop.permute.xlu1 %332  ;;  %v547_v22 = vld [vmem:[#allocation2 + $0x3b] sm:$0xff] }
  0xe5   : > { %v498_v57 = vld [vmem:[#allocation2 + $0x1c] sm:$0xff]  ;;  %v499_v56 = vld [vmem:[#allocation2 + $0x24] sm:$0xff]  ;;  %v494_v14 = vmul.f32 %v492_v42, %v491_v23  ;;  %v331_v23 = vpop.permute.xlu0 %330  ;;  %339 = vst.msk [vmem:[#allocation2 + $0x83] sm:$0xff] %vm337_vm6, %v333_v5 }
  0xe6   : > { %v501_v16 = vmul.f32 %v500_v47, %v498_v57  ;;  %v506_v11 = vld [vmem:[#allocation2 + $0x1d] sm:$0xff]  ;;  %v507_v61 = vld [vmem:[#allocation2 + $0x25] sm:$0xff]  ;;  %v502_v48 = vmul.f32 %v500_v47, %v499_v56  ;;  %338 = vst.msk [vmem:[#allocation2 + $0x7b] sm:$0xff] %vm337_vm6, %v331_v23 }
  0xe7   : > { %v514_v55 = vld [vmem:[#allocation2 + $0x1e] sm:$0xff]  ;;  %v2315_v35 = vmul.f32 %v508_v50, %v506_v11  ;;  %v515_v39 = vld [vmem:[#allocation2 + $0x26] sm:$0xff]  ;;  %v510_v57 = vmul.f32 %v508_v50, %v507_v61 }
  0xe8   : > { %v411_v3 = vld [vmem:[#allocation2 + $0x8] sm:$0xff]  ;;  %v517_v62 = vmul.f32 %v516_v51, %v514_v55  ;;  %v2325_v11 = vadd.f32 %v501_v16, %v471_v18  ;;  %v3043_v55 = vstv %s3040_s2  ;;  %v3046_v18 = vstv %s3041_s1  ;;  %v555_v23 = vld [vmem:[#allocation2 + $0x3c] sm:$0xff]  ;;  %s3069_s2 = sld [smem:[#allocation47_spill]]  ;;  %s3071_s1 = sld [smem:[#allocation48_spill]] }
  0xe9   : > { %v419_v40 = vld [vmem:[#allocation2 + $0x9] sm:$0xff]  ;;  %v414_v38 = vmul.f32 %v412_v43, %v411_v3  ;;  %v3044_v2 = vmov %v3043_v55  ;;  %v563_v19 = vld [vmem:[#allocation2 + $0x3d] sm:$0xff] }
  0xea   : > { %v422_v41 = vmul.f32 %v420_v44, %v419_v40  ;;  %v427_v42 = vld [vmem:[#allocation2 + $0xa] sm:$0xff]  ;;  %v518_v40 = vmul.f32 %v516_v51, %v515_v39 }
  0xeb   : > { %v435_v47 = vld [vmem:[#allocation2 + $0xb] sm:$0xff]  ;;  %v430_v52 = vmul.f32 %v428_v45, %v427_v42  ;;  %v3047_v42 = vmov %v3046_v18 }
  0xec   : > { %v442_v56 = vld [vmem:[#allocation2 + $0x4] sm:$0xff]  ;;  %v438_v50 = vmul.f32 %v436_v46, %v435_v47  ;;  %v443_v43 = vld [vmem:[#allocation2 + $0xc] sm:$0xff] }
  0xed   : > { %v445_v61 = vmul.f32 %v3043_v55, %v442_v56  ;;  %v450_v44 = vld [vmem:[#allocation2 + $0x5] sm:$0xff]  ;;  %v451_v3 = vld [vmem:[#allocation2 + $0xd] sm:$0xff]  ;;  %v446_v16 = vmul.f32 %v3044_v2, %v443_v43  ;;  %v3048_v56 = vstv %s3042_s9  ;;  %v3052_v43 = vstv %s3045_s7  ;;  %s3072_s9 = sld [smem:[#allocation49_spill]] }
  0xee   : > { %v453_v45 = vmul.f32 %v3046_v18, %v450_v44  ;;  %v454_v12 = vmul.f32 %v3047_v42, %v451_v3  ;;  %v458_v46 = vld [vmem:[#allocation2 + $0x6] sm:$0xff]  ;;  %v459_v47 = vld [vmem:[#allocation2 + $0xe] sm:$0xff]  ;;  %v3050_v1 = vmov %v3048_v56  ;;  %v472_v7 = vadd.f32 %v470_v27, %v438_v50  ;;  %v571_v18 = vld [vmem:[#allocation2 + $0x3e] sm:$0xff]  ;;  %v343_v3 = vpop.permute.xlu1 %342  ;;  %v341_v42 = vpop.permute.xlu0 %340 }
  0xef   : > { %v447_v13 = vadd.f32 %v445_v61, %v413_v6  ;;  %v461_v55 = vmul.f32 %v3048_v56, %v458_v46  ;;  %v462_v5 = vmul.f32 %v3050_v1, %v459_v47  ;;  %v448_v51 = vadd.f32 %v446_v16, %v414_v38  ;;  %v522_v1 = vld [vmem:[#allocation2 + $0x30] sm:$0xff]  ;;  %349 = vst.msk [vmem:[#allocation2 + $0x9b] sm:$0xff] %vm347_vm7, %v343_v3 }
  0xf0   : > { %v455_v39 = vadd.f32 %v453_v45, %v421_v33  ;;  %v456_v2 = vadd.f32 %v454_v12, %v422_v41  ;;  %v550_v44 = vmul.f32 %v3052_v43, %v547_v22  ;;  %v3054_v46 = vstv %s3049_s14  ;;  %348 = vst.msk [vmem:[#allocation2 + $0x93] sm:$0xff] %vm347_vm7, %v341_v42  ;;  %v523_v41 = vld [vmem:[#allocation2 + $0x38] sm:$0xff] }
  0xf1   : > { %v463_v58 = vadd.f32 %v461_v55, %v429_v25  ;;  %v464_v6 = vadd.f32 %v462_v5, %v430_v52  ;;  %v479_v61 = vadd.f32 %v2281_v49, %v447_v13  ;;  %v558_v56 = vmul.f32 %v3054_v46, %v555_v23  ;;  %v530_v50 = vld [vmem:[#allocation2 + $0x31] sm:$0xff]  ;;  %v531_v52 = vld [vmem:[#allocation2 + $0x39] sm:$0xff] }
  0xf2   : > { %v480_v33 = vadd.f32 %v478_v54, %v448_v51  ;;  %v487_v12 = vadd.f32 %v2285_v4, %v455_v39  ;;  %v488_v27 = vadd.f32 %v486_v53, %v456_v2  ;;  %v3055_v22 = vstv %s3051_s11  ;;  %v538_v47 = vld [vmem:[#allocation2 + $0x32] sm:$0xff]  ;;  %v539_v54 = vld [vmem:[#allocation2 + $0x3a] sm:$0xff]  ;;  %v355_v23 = vpop.permute.xlu1 %354  ;;  %v353_v51 = vpop.permute.xlu0 %352 }
  0xf3   : > { %v566_v38 = vmul.f32 %v3055_v22, %v563_v19  ;;  %v3057_v25 = vstv %s3053_s21  ;;  %v495_v49 = vadd.f32 %v2291_v26, %v463_v58  ;;  %v496_v16 = vadd.f32 %v494_v14, %v464_v6  ;;  %v546_v53 = vld [vmem:[#allocation2 + $0x33] sm:$0xff]  ;;  %360 = vst.msk [vmem:[#allocation2 + $0xb3] sm:$0xff] %vm294_vm3, %v355_v23  ;;  %359 = vst.msk [vmem:[#allocation2 + $0xab] sm:$0xff] %vm294_vm3, %v353_v51  ;;  %v659_v22 = vld [vmem:[#allocation2 + $0x6b] sm:$0xff] }
  0xf4   : > { %v574_v13 = vmul.f32 %v3057_v25, %v571_v18  ;;  %v504_v45 = vadd.f32 %v502_v48, %v472_v7  ;;  %v520_v4 = vadd.f32 %v518_v40, %v488_v27  ;;  %v511_v19 = vadd.f32 %v2315_v35, %v479_v61  ;;  %v554_v6 = vld [vmem:[#allocation2 + $0x34] sm:$0xff]  ;;  %v667_v25 = vld [vmem:[#allocation2 + $0x6c] sm:$0xff] }
  0xf5   : > { %v512_v55 = vadd.f32 %v510_v57, %v480_v33  ;;  %v519_v5 = vadd.f32 %v517_v62, %v487_v12  ;;  %v3060_v39 = vstv %s3056_s29  ;;  %v3062_v58 = vstv %s3058_s5  ;;  %v562_v61 = vld [vmem:[#allocation2 + $0x35] sm:$0xff]  ;;  %s3091_s29 = sld [smem:[#allocation57_spill]]  ;;  %s3095_s5 = sld [smem:[#allocation59_spill]] }
  0xf6   : > { %v525_v2 = vmul.f32 %v3060_v39, %v522_v1  ;;  %v3061_v43 = vmov %v3060_v39  ;;  %v533_v26 = vmul.f32 %v3062_v58, %v530_v50  ;;  %v3063_v7 = vmov %v3062_v58  ;;  %v570_v27 = vld [vmem:[#allocation2 + $0x36] sm:$0xff]  ;;  %v683_v51 = vld [vmem:[#allocation2 + $0x6e] sm:$0xff] }
  0xf7   : > { %v526_v18 = vmul.f32 %v3061_v43, %v523_v41  ;;  %v534_v14 = vmul.f32 %v3063_v7, %v531_v52  ;;  %v552_v48 = vadd.f32 %v550_v44, %v520_v4  ;;  %v3064_v40 = vstv %s3059_s30  ;;  %s3096_s30 = sld [smem:[#allocation60_spill]] }
  0xf8   : > { %v541_v3 = vmul.f32 %v3064_v40, %v538_v47  ;;  %v3065_v35 = vmov %v3064_v40  ;;  %v3066_v62 = vstv %s3045_s7  ;;  %v527_v46 = vadd.f32 %v525_v2, %v495_v49  ;;  %v364_v47 = vpop.permute.xlu1 %363  ;;  %s3078_s7 = sld [smem:[#allocation52_spill]] }
  0xf9   : > { %v542_v57 = vmul.f32 %v3065_v35, %v539_v54  ;;  %v549_v42 = vmul.f32 %v3066_v62, %v546_v53  ;;  %v528_v1 = vadd.f32 %v526_v18, %v496_v16  ;;  %v535_v33 = vadd.f32 %v533_v26, %v2325_v11  ;;  %v362_v54 = vpop.permute.xlu0 %361  ;;  %369 = vst.msk [vmem:[#allocation2 + $0xcb] sm:$0xff] %vm304_vm2, %v364_v47  ;;  %v634_v26 = vld [vmem:[#allocation2 + $0x60] sm:$0xff] }
  0xfa   : > { %v536_v12 = vadd.f32 %v534_v14, %v504_v45  ;;  %v584_v44 = vadd.f32 %v2057_v63, %v552_v48  ;;  %v543_v41 = vadd.f32 %v541_v3, %v511_v19  ;;  %v3068_v53 = vstv %s3049_s14  ;;  %v675_v45 = vld [vmem:[#allocation2 + $0x6d] sm:$0xff]  ;;  %368 = vst.msk [vmem:[#allocation2 + $0xc3] sm:$0xff] %vm304_vm2, %v362_v54  ;;  %s3079_s14 = sld [smem:[#allocation53_spill]] }
  0xfb   : > { %v544_v50 = vadd.f32 %v542_v57, %v512_v55  ;;  %v551_v52 = vadd.f32 %v549_v42, %v519_v5  ;;  %v557_v4 = vmul.f32 %v3068_v53, %v554_v6  ;;  %v560_v49 = vadd.f32 %v558_v56, %v528_v1  ;;  %v650_v1 = vld [vmem:[#allocation2 + $0x62] sm:$0xff] }
  0xfc   : > { %v3070_v16 = vstv %s3051_s11  ;;  %v568_v11 = vadd.f32 %v566_v38, %v536_v12  ;;  %v3073_v63 = vstv %s3053_s21  ;;  %v3074_v39 = vstv %s3067_s12  ;;  %v373_v35 = vpop.permute.xlu1 %372  ;;  %s3081_s11 = sld [smem:[#allocation54_spill]]  ;;  %v658_v12 = vld [vmem:[#allocation2 + $0x63] sm:$0xff]  ;;  %s3089_s21 = sld [smem:[#allocation55_spill]] }
  0xfd   : > { %v565_v23 = vmul.f32 %v3070_v16, %v562_v61  ;;  %v573_v19 = vmul.f32 %v3073_v63, %v570_v27  ;;  %v576_v55 = vadd.f32 %v574_v13, %v544_v50  ;;  %v583_v5 = vadd.f32 %v2072_v9, %v551_v52  ;;  %v635_v9 = vld [vmem:[#allocation2 + $0x68] sm:$0xff]  ;;  %v371_v57 = vpop.permute.xlu0 %370  ;;  %378 = vst.msk [vmem:[#allocation2 + $0xe3] sm:$0xff] %vm314_vm4, %v373_v35  ;;  %v691_v35 = vld [vmem:[#allocation2 + $0x80] sm:$0xff]  ;;  %s3098_s12 = sld [smem:[#allocation61_spill]] }
  0xfe   : > { %v662_v2 = vmul.f32 %v3074_v39, %v659_v22  ;;  %v559_v43 = vadd.f32 %v557_v4, %v527_v46  ;;  %v600_v18 = vadd.f32 %v2085_v17, %v568_v11  ;;  %v3075_v58 = vstv %s3069_s2  ;;  %v642_v61 = vld [vmem:[#allocation2 + $0x61] sm:$0xff]  ;;  %v643_v46 = vld [vmem:[#allocation2 + $0x69] sm:$0xff]  ;;  %377 = vst.msk [vmem:[#allocation2 + $0xdb] sm:$0xff] %vm314_vm4, %v371_v57  ;;  %s3107_s2 = sld [smem:[#allocation62_spill]] }
  0xff   : > { %v567_v56 = vadd.f32 %v565_v23, %v535_v33  ;;  %v2393_v38 = vmul.f32 %v3075_v58, %v667_v25  ;;  %v575_v7 = vadd.f32 %v573_v19, %v543_v41  ;;  %v3076_v14 = vstv %s3071_s1  ;;  %v666_v27 = vld [vmem:[#allocation2 + $0x64] sm:$0xff]  ;;  %s3108_s1 = sld [smem:[#allocation63_spill]] }
 0x100   : > { %v2397_v48 = vmul.f32 %v3076_v14, %v675_v45  ;;  %v3077_v40 = vstv %s3072_s9  ;;  %v608_v13 = vadd.f32 %v2103_v28, %v576_v55  ;;  %v591_v62 = vadd.f32 %v2074_v10, %v559_v43  ;;  %v674_v52 = vld [vmem:[#allocation2 + $0x65] sm:$0xff]  ;;  %v385_v4 = vpop.permute.xlu1 %384 }
 0x101   : > { %v686_v3 = vmul.f32 %v3077_v40, %v683_v51  ;;  %v599_v17 = vadd.f32 %v2082_v15, %v567_v56  ;;  %v632_v42 = vadd.f32 %v2092_v21, %v600_v18  ;;  %v592_v6 = vadd.f32 %v2096_v24, %v560_v49  ;;  %v651_v24 = vld [vmem:[#allocation2 + $0x6a] sm:$0xff]  ;;  %v383_v49 = vpop.permute.xlu0 %382  ;;  %390 = vst.msk [vmem:[#allocation2 + $0x113] sm:$0xff] %vm327_vm5, %v385_v4 }
 0x102   : > { %v607_v28 = vadd.f32 %v2107_v30, %v575_v7  ;;  %v615_v10 = vadd.f32 %v2117_v34, %v583_v5  ;;  %v616_v15 = vadd.f32 %v2105_v29, %v584_v44  ;;  %v3080_v33 = vstv %s3078_s7  ;;  %v715_v19 = vld [vmem:[#allocation2 + $0x83] sm:$0xff]  ;;  %389 = vst.msk [vmem:[#allocation2 + $0x10b] sm:$0xff] %vm327_vm5, %v383_v49  ;;  %s3111_s7 = sld [smem:[#allocation65_spill]] }
 0x103   : > { %v637_v21 = vmul.f32 %v3080_v33, %v634_v26  ;;  %v664_v22 = vadd.f32 %v662_v2, %v632_v42  ;;  %v623_v41 = vadd.f32 %v2124_v36, %v591_v62  ;;  %v624_v50 = vadd.f32 %v2113_v31, %v592_v6  ;;  %v723_v55 = vld [vmem:[#allocation2 + $0x84] sm:$0xff] }
 0x104   : > { %v631_v30 = vadd.f32 %v2126_v37, %v599_v17  ;;  %v3082_v34 = vmov %v3080_v33  ;;  %v3083_v44 = vstv %s3079_s14  ;;  %v3085_v16 = vstv %s3081_s11  ;;  %v682_v37 = vld [vmem:[#allocation2 + $0x66] sm:$0xff]  ;;  %s3114_s14 = sld [smem:[#allocation66_spill]]  ;;  %s3128_s11 = sld [smem:[#allocation69_spill]] }
 0x105   : > { %v638_v25 = vmul.f32 %v3082_v34, %v635_v9  ;;  %v639_v29 = vadd.f32 %v637_v21, %v607_v28  ;;  %v645_v47 = vmul.f32 %v3083_v44, %v642_v61  ;;  %v3084_v54 = vmov %v3083_v44  ;;  %v731_v18 = vld [vmem:[#allocation2 + $0x85] sm:$0xff]  ;;  %v690_v9 = vld [vmem:[#allocation2 + $0x78] sm:$0xff] }
 0x106   : > { %v646_v53 = vmul.f32 %v3084_v54, %v643_v46  ;;  %v653_v23 = vmul.f32 %v3085_v16, %v650_v1  ;;  %v3086_v11 = vmov %v3085_v16  ;;  %v3087_v36 = vmov %v3074_v39  ;;  %v698_v46 = vld [vmem:[#allocation2 + $0x79] sm:$0xff]  ;;  %v699_v1 = vld [vmem:[#allocation2 + $0x81] sm:$0xff] }
 0x107   : > { %v654_v45 = vmul.f32 %v3086_v11, %v651_v24  ;;  %v661_v51 = vmul.f32 %v3087_v36, %v658_v12  ;;  %v3088_v31 = vmov %v3075_v58  ;;  %v640_v5 = vadd.f32 %v638_v25, %v608_v13  ;;  %v739_v58 = vld [vmem:[#allocation2 + $0x86] sm:$0xff]  ;;  %v706_v28 = vld [vmem:[#allocation2 + $0x7a] sm:$0xff] }
 0x108   : > { %v669_v63 = vmul.f32 %v3088_v31, %v666_v27  ;;  %v647_v39 = vadd.f32 %v645_v47, %v615_v10  ;;  %v648_v2 = vadd.f32 %v646_v53, %v616_v15  ;;  %v3090_v43 = vmov %v3076_v14  ;;  %v394_v10 = vpop.permute.xlu1 %393  ;;  %v392_v15 = vpop.permute.xlu0 %391  ;;  %v722_v47 = vld [vmem:[#allocation2 + $0x7c] sm:$0xff] }
 0x109   : > { %v677_v56 = vmul.f32 %v3090_v43, %v674_v52  ;;  %v655_v26 = vadd.f32 %v653_v23, %v623_v41  ;;  %v656_v7 = vadd.f32 %v654_v45, %v624_v50  ;;  %v663_v14 = vadd.f32 %v661_v51, %v631_v30  ;;  %v707_v50 = vld [vmem:[#allocation2 + $0x82] sm:$0xff]  ;;  %399 = vst.msk [vmem:[#allocation2 + $0x12b] sm:$0xff] %vm337_vm6, %v394_v10 }
 0x10a   : > { %v671_v40 = vadd.f32 %v669_v63, %v639_v29  ;;  %v3092_v62 = vstv %s3072_s9  ;;  %v3093_v42 = vstv %s3089_s21  ;;  %v3094_v13 = vstv %s2990_s17  ;;  %v714_v30 = vld [vmem:[#allocation2 + $0x7b] sm:$0xff]  ;;  %398 = vst.msk [vmem:[#allocation2 + $0x123] sm:$0xff] %vm337_vm6, %v392_v15  ;;  %s3109_s9 = sld [smem:[#allocation64_spill]]  ;;  %s3118_s17 = sld [smem:[#allocation67_spill]]  ;;  %v754_v15 = vld [vmem:[#allocation2 + $0x91] sm:$0xff] }
 0x10b   : > { %v679_v57 = vadd.f32 %v677_v56, %v647_v39  ;;  %v685_v17 = vmul.f32 %v3092_v62, %v682_v37  ;;  %v718_v6 = vmul.f32 %v3093_v42, %v715_v19  ;;  %v726_v61 = vmul.f32 %v3094_v13, %v723_v55  ;;  %v730_v11 = vld [vmem:[#allocation2 + $0x7d] sm:$0xff]  ;;  %s3129_s21 = sld [smem:[#allocation70_spill]] }
 0x10c   : > { %v688_v33 = vadd.f32 %v686_v3, %v656_v7  ;;  %v3097_v21 = vstv %s3091_s29  ;;  %v3099_v12 = vstv %s2993_s18  ;;  %v672_v41 = vadd.f32 %v2393_v38, %v640_v5  ;;  %v738_v45 = vld [vmem:[#allocation2 + $0x7e] sm:$0xff]  ;;  %v403_v39 = vpop.permute.xlu1 %402  ;;  %s3127_s18 = sld [smem:[#allocation68_spill]]  ;;  %s3137_s29 = sld [smem:[#allocation72_spill]] }
 0x10d   : > { %v734_v24 = vmul.f32 %v3097_v21, %v731_v18  ;;  %v742_v27 = vmul.f32 %v3099_v12, %v739_v58  ;;  %v687_v52 = vadd.f32 %v685_v17, %v655_v26  ;;  %v680_v34 = vadd.f32 %v2397_v48, %v648_v2  ;;  %v771_v19 = vld [vmem:[#allocation2 + $0x9b] sm:$0xff]  ;;  %v401_v2 = vpop.permute.xlu0 %400  ;;  %408 = vst.msk [vmem:[#allocation2 + $0x143] sm:$0xff] %vm347_vm7, %v403_v39 }
 0x10e   : > { %v3100_v25 = vstv %s3095_s5  ;;  %v720_v54 = vadd.f32 %v718_v6, %v688_v33  ;;  %v3102_v53 = vstv %s3096_s30  ;;  %v3104_v16 = vstv %s3098_s12  ;;  %v779_v55 = vld [vmem:[#allocation2 + $0x9c] sm:$0xff]  ;;  %407 = vst.msk [vmem:[#allocation2 + $0x13b] sm:$0xff] %vm347_vm7, %v401_v2  ;;  %s3138_s5 = sld [smem:[#allocation73_spill]]  ;;  %s3147_s30 = sld [smem:[#allocation45_spill]] }
 0x10f   : > { %v693_v3 = vmul.f32 %v3100_v25, %v690_v9  ;;  %v3101_v29 = vmov %v3100_v25  ;;  %v701_v4 = vmul.f32 %v3102_v53, %v698_v46  ;;  %v3103_v38 = vmov %v3102_v53  ;;  %v787_v5 = vld [vmem:[#allocation2 + $0x9d] sm:$0xff]  ;;  %v770_v25 = vld [vmem:[#allocation2 + $0x93] sm:$0xff]  ;;  %s3148_s12 = sld [smem:[#allocation50_spill]] }
 0x110   : > { %v694_v44 = vmul.f32 %v3101_v29, %v691_v35  ;;  %v702_v49 = vmul.f32 %v3103_v38, %v699_v1  ;;  %v709_v23 = vmul.f32 %v3104_v16, %v706_v28  ;;  %v3105_v31 = vmov %v3104_v16  ;;  %v747_v6 = vld [vmem:[#allocation2 + $0x98] sm:$0xff] }
 0x111   : > { %v695_v36 = vadd.f32 %v693_v3, %v663_v14  ;;  %v710_v63 = vmul.f32 %v3105_v31, %v707_v50  ;;  %v3106_v48 = vmov %v3093_v42  ;;  %v703_v43 = vadd.f32 %v701_v4, %v671_v40  ;;  %v746_v42 = vld [vmem:[#allocation2 + $0x90] sm:$0xff]  ;;  %v755_v33 = vld [vmem:[#allocation2 + $0x99] sm:$0xff] }
 0x112   : > { %v696_v51 = vadd.f32 %v694_v44, %v664_v22  ;;  %v717_v37 = vmul.f32 %v3106_v48, %v714_v30  ;;  %v704_v56 = vadd.f32 %v702_v49, %v672_v41  ;;  %v711_v18 = vadd.f32 %v709_v23, %v679_v57  ;;  %v795_v22 = vld [vmem:[#allocation2 + $0x9e] sm:$0xff]  ;;  %v778_v38 = vld [vmem:[#allocation2 + $0x94] sm:$0xff] }
 0x113   : > { %v3110_v58 = vmov %v3094_v13  ;;  %v712_v7 = vadd.f32 %v710_v63, %v680_v34  ;;  %v3112_v9 = vmov %v3097_v21  ;;  %v3113_v62 = vmov %v3099_v12  ;;  %v762_v21 = vld [vmem:[#allocation2 + $0x92] sm:$0xff]  ;;  %v763_v34 = vld [vmem:[#allocation2 + $0x9a] sm:$0xff] }
 0x114   : > { %v725_v26 = vmul.f32 %v3110_v58, %v722_v47  ;;  %v719_v14 = vadd.f32 %v717_v37, %v687_v52  ;;  %v733_v35 = vmul.f32 %v3112_v9, %v730_v11  ;;  %v741_v17 = vmul.f32 %v3113_v62, %v738_v45  ;;  %v786_v31 = vld [vmem:[#allocation2 + $0x95] sm:$0xff]  ;;  %v802_v62 = vld [vmem:[#allocation2 + $0xa8] sm:$0xff] }
 0x115   : > { %v3115_v13 = vstv %s3107_s2  ;;  %v3116_v46 = vstv %s3108_s1  ;;  %v3117_v28 = vstv %s3109_s9  ;;  %v744_v50 = vadd.f32 %v742_v27, %v712_v7  ;;  %v794_v63 = vld [vmem:[#allocation2 + $0x96] sm:$0xff]  ;;  %s3150_s2 = sld [smem:[#allocation74_spill]]  ;;  %s3153_s1 = sld [smem:[#allocation51_spill]] }
 0x116   : > { %v727_v40 = vadd.f32 %v725_v26, %v695_v36  ;;  %v774_v57 = vmul.f32 %v3115_v13, %v771_v19  ;;  %v782_v1 = vmul.f32 %v3116_v46, %v779_v55  ;;  %v790_v10 = vmul.f32 %v3117_v28, %v787_v5  ;;  %v827_v55 = vld [vmem:[#allocation2 + $0xb3] sm:$0xff]  ;;  %s3157_s9 = sld [smem:[#allocation75_spill]] }
 0x117   : > { %v735_v12 = vadd.f32 %v733_v35, %v703_v43  ;;  %v743_v41 = vadd.f32 %v741_v17, %v711_v18  ;;  %v3119_v30 = vstv %s3111_s7  ;;  %v736_v3 = vadd.f32 %v734_v24, %v704_v56  ;;  %v835_v5 = vld [vmem:[#allocation2 + $0xb4] sm:$0xff]  ;;  %s3158_s7 = sld [smem:[#allocation76_spill]] }
 0x118   : > { %v798_v52 = vmul.f32 %v3119_v30, %v795_v22  ;;  %v728_v29 = vadd.f32 %v726_v61, %v696_v51  ;;  %v3120_v44 = vstv %s3114_s14  ;;  %v776_v49 = vadd.f32 %v774_v57, %v744_v50  ;;  %v843_v39 = vld [vmem:[#allocation2 + $0xb5] sm:$0xff]  ;;  %s3175_s14 = sld [smem:[#allocation58_spill]] }
 0x119   : > { %v749_v47 = vmul.f32 %v3120_v44, %v746_v42  ;;  %v3121_v53 = vmov %v3120_v44  ;;  %v3122_v16 = vstv %s3118_s17  ;;  %v3124_v27 = vstv %s2019_s22  ;;  %v851_v26 = vld [vmem:[#allocation2 + $0xb6] sm:$0xff]  ;;  %s3133_s22 = sld [smem:[#allocation71_spill]] }
 0x11a   : > { %v750_v4 = vmul.f32 %v3121_v53, %v747_v6  ;;  %v757_v23 = vmul.f32 %v3122_v16, %v754_v15  ;;  %v3123_v11 = vmov %v3122_v16  ;;  %v765_v36 = vmul.f32 %v3124_v27, %v762_v21  ;;  %v803_v17 = vld [vmem:[#allocation2 + $0xb0] sm:$0xff]  ;;  %s3211_s17 = sld [smem:[#allocation79_spill]] }
 0x11b   : > { %v758_v45 = vmul.f32 %v3123_v11, %v755_v33  ;;  %v751_v48 = vadd.f32 %v749_v47, %v719_v14  ;;  %v3125_v61 = vmov %v3124_v27  ;;  %v3126_v37 = vmov %v3115_v13  ;;  %v810_v15 = vld [vmem:[#allocation2 + $0xa9] sm:$0xff]  ;;  %v811_v33 = vld [vmem:[#allocation2 + $0xb1] sm:$0xff] }
 0x11c   : > { %v752_v24 = vadd.f32 %v750_v4, %v720_v54  ;;  %v766_v51 = vmul.f32 %v3125_v61, %v763_v34  ;;  %v773_v19 = vmul.f32 %v3126_v37, %v770_v25  ;;  %v759_v2 = vadd.f32 %v757_v23, %v727_v40  ;;  %v818_v21 = vld [vmem:[#allocation2 + $0xaa] sm:$0xff]  ;;  %v819_v25 = vld [vmem:[#allocation2 + $0xb2] sm:$0xff] }
 0x11d   : > { %v760_v43 = vadd.f32 %v758_v45, %v728_v29  ;;  %v767_v56 = vadd.f32 %v765_v36, %v735_v12  ;;  %v3130_v18 = vmov %v3116_v46  ;;  %v3131_v54 = vmov %v3117_v28  ;;  %v834_v16 = vld [vmem:[#allocation2 + $0xac] sm:$0xff] }
 0x11e   : > { %v781_v58 = vmul.f32 %v3130_v18, %v778_v38  ;;  %v768_v22 = vadd.f32 %v766_v51, %v736_v3  ;;  %v775_v7 = vadd.f32 %v773_v19, %v743_v41  ;;  %v789_v14 = vmul.f32 %v3131_v54, %v786_v31  ;;  %v826_v3 = vld [vmem:[#allocation2 + $0xab] sm:$0xff] }
 0x11f   : > { %v3132_v9 = vmov %v3119_v30  ;;  %v3134_v6 = vstv %s3127_s18  ;;  %v3135_v40 = vstv %s3128_s11  ;;  %v3136_v46 = vstv %s3129_s21  ;;  %v883_v19 = vld [vmem:[#allocation2 + $0xcb] sm:$0xff]  ;;  %s3214_s18 = sld [smem:[#allocation85_spill]] }
 0x120   : > { %v797_v35 = vmul.f32 %v3132_v9, %v794_v63  ;;  %v783_v42 = vadd.f32 %v781_v58, %v751_v48  ;;  %v830_v13 = vmul.f32 %v3134_v6, %v827_v55  ;;  %v838_v57 = vmul.f32 %v3135_v40, %v835_v5  ;;  %v842_v63 = vld [vmem:[#allocation2 + $0xad] sm:$0xff]  ;;  %v858_v9 = vld [vmem:[#allocation2 + $0xc0] sm:$0xff] }
 0x121   : > { %v846_v28 = vmul.f32 %v3136_v46, %v843_v39  ;;  %v791_v12 = vadd.f32 %v789_v14, %v759_v2  ;;  %v800_v50 = vadd.f32 %v798_v52, %v768_v22  ;;  %v3139_v30 = vstv %s2035_s4  ;;  %v850_v48 = vld [vmem:[#allocation2 + $0xae] sm:$0xff]  ;;  %s3167_s4 = sld [smem:[#allocation80_spill]] }
 0x122   : > { %v799_v41 = vadd.f32 %v797_v35, %v767_v56  ;;  %v854_v34 = vmul.f32 %v3139_v30, %v851_v26  ;;  %v784_v29 = vadd.f32 %v782_v1, %v752_v24  ;;  %v792_v44 = vadd.f32 %v790_v10, %v760_v43  ;;  %v891_v55 = vld [vmem:[#allocation2 + $0xcc] sm:$0xff] }
 0x123   : > { %v3140_v47 = vstv %s3133_s22  ;;  %v832_v23 = vadd.f32 %v830_v13, %v800_v50  ;;  %v3142_v11 = vstv %s3137_s29  ;;  %v3144_v52 = vstv %s3138_s5  ;;  %v899_v5 = vld [vmem:[#allocation2 + $0xcd] sm:$0xff]  ;;  %s3251_s29 = sld [smem:[#allocation98_spill]] }
 0x124   : > { %v805_v53 = vmul.f32 %v3140_v47, %v802_v62  ;;  %v3141_v4 = vmov %v3140_v47  ;;  %v813_v45 = vmul.f32 %v3142_v11, %v810_v15  ;;  %v3143_v27 = vmov %v3142_v11  ;;  %v907_v58 = vld [vmem:[#allocation2 + $0xce] sm:$0xff]  ;;  %v866_v15 = vld [vmem:[#allocation2 + $0xc1] sm:$0xff] }
 0x125   : > { %v806_v38 = vmul.f32 %v3141_v4, %v803_v17  ;;  %v814_v36 = vmul.f32 %v3143_v27, %v811_v33  ;;  %v821_v31 = vmul.f32 %v3144_v52, %v818_v21  ;;  %v3145_v10 = vmov %v3144_v52  ;;  %v859_v35 = vld [vmem:[#allocation2 + $0xc8] sm:$0xff] }
 0x126   : > { %v807_v61 = vadd.f32 %v805_v53, %v775_v7  ;;  %v822_v24 = vmul.f32 %v3145_v10, %v819_v25  ;;  %v3146_v51 = vmov %v3134_v6  ;;  %v815_v39 = vadd.f32 %v813_v45, %v783_v42  ;;  %v867_v33 = vld [vmem:[#allocation2 + $0xc9] sm:$0xff] }
 0x127   : > { %v808_v1 = vadd.f32 %v806_v38, %v776_v49  ;;  %v829_v37 = vmul.f32 %v3146_v51, %v826_v3  ;;  %v816_v2 = vadd.f32 %v814_v36, %v784_v29  ;;  %v823_v43 = vadd.f32 %v821_v31, %v791_v12  ;;  %v874_v21 = vld [vmem:[#allocation2 + $0xc2] sm:$0xff]  ;;  %v875_v3 = vld [vmem:[#allocation2 + $0xca] sm:$0xff] }
 0x128   : > { %v3149_v56 = vmov %v3135_v40  ;;  %v824_v26 = vadd.f32 %v822_v24, %v792_v44  ;;  %v3151_v49 = vmov %v3136_v46  ;;  %v3152_v54 = vmov %v3139_v30  ;;  %v882_v29 = vld [vmem:[#allocation2 + $0xc3] sm:$0xff] }
 0x129   : > { %v837_v18 = vmul.f32 %v3149_v56, %v834_v16  ;;  %v831_v22 = vadd.f32 %v829_v37, %v799_v41  ;;  %v845_v7 = vmul.f32 %v3151_v49, %v842_v63  ;;  %v853_v14 = vmul.f32 %v3152_v54, %v850_v48  ;;  %v890_v11 = vld [vmem:[#allocation2 + $0xc4] sm:$0xff]  ;;  %v914_v54 = vld [vmem:[#allocation2 + $0xd8] sm:$0xff] }
 0x12a   : > { %v3154_v17 = vstv %s2051_s28  ;;  %v3155_v42 = vstv %s3147_s30  ;;  %v3156_v40 = vstv %s3148_s12  ;;  %v856_v50 = vadd.f32 %v854_v34, %v824_v26  ;;  %v898_v48 = vld [vmem:[#allocation2 + $0xc5] sm:$0xff]  ;;  %s3171_s28 = sld [smem:[#allocation77_spill]]  ;;  %s3252_s30 = sld [smem:[#allocation20_spill]] }
 0x12b   : > { %v839_v62 = vadd.f32 %v837_v18, %v807_v61  ;;  %v886_v6 = vmul.f32 %v3154_v17, %v883_v19  ;;  %v894_v13 = vmul.f32 %v3155_v42, %v891_v55  ;;  %v902_v46 = vmul.f32 %v3156_v40, %v899_v5  ;;  %v906_v61 = vld [vmem:[#allocation2 + $0xc6] sm:$0xff] }
 0x12c   : > { %v847_v12 = vadd.f32 %v845_v7, %v815_v39  ;;  %v855_v41 = vadd.f32 %v853_v14, %v823_v43  ;;  %v3159_v30 = vstv %s3150_s2  ;;  %v840_v44 = vadd.f32 %v838_v57, %v808_v1  ;;  %v939_v37 = vld [vmem:[#allocation2 + $0xe3] sm:$0xff] }
 0x12d   : > { %v910_v25 = vmul.f32 %v3159_v30, %v907_v58  ;;  %v848_v47 = vadd.f32 %v846_v28, %v816_v2  ;;  %v3160_v53 = vstv %s3153_s1  ;;  %v888_v45 = vadd.f32 %v886_v6, %v856_v50  ;;  %v947_v19 = vld [vmem:[#allocation2 + $0xe4] sm:$0xff]  ;;  %s1659_s1 = smov [#allocation9]  }
 0x12e   : > { %v861_v4 = vmul.f32 %v3160_v53, %v858_v9  ;;  %v3161_v38 = vmov %v3160_v53  ;;  %v3162_v27 = vstv %s3157_s9  ;;  %v3164_v34 = vstv %s3158_s7  ;;  %v955_v55 = vld [vmem:[#allocation2 + $0xe5] sm:$0xff]  ;;  %s1580_s9 = sshll.u32 %s1659_s1, 4  ;;  %s1581_s9 = int_to_ptr.vmem [resolvable:$false] %s1580_s9 }
 0x12f   : > { %v862_v16 = vmul.f32 %v3161_v38, %v859_v35  ;;  %v869_v36 = vmul.f32 %v3162_v27, %v866_v15  ;;  %v3163_v52 = vmov %v3162_v27  ;;  %v877_v63 = vmul.f32 %v3164_v34, %v874_v21  ;;  %v963_v18 = vld [vmem:[#allocation2 + $0xe6] sm:$0xff]  ;;  %v922_v15 = vld [vmem:[#allocation2 + $0xd9] sm:$0xff]  ;;  %s1582_s7 = scalar_lea.vmem %s1581_s9, 2048 }
 0x130   : > { %v870_v31 = vmul.f32 %v3163_v52, %v867_v33  ;;  %v863_v10 = vadd.f32 %v861_v4, %v831_v22  ;;  %v3165_v28 = vmov %v3164_v34  ;;  %v3166_v24 = vmov %v3154_v17  ;;  %v915_v14 = vld [vmem:[#allocation2 + $0xe0] sm:$0xff]  ;;  %p3253_p3 = scmp.ne.s32.totalorder %s3252_s30, 0 }
 0x131   : > { %v864_v57 = vadd.f32 %v862_v16, %v832_v23  ;;  %v878_v1 = vmul.f32 %v3165_v28, %v875_v3  ;;  %v885_v51 = vmul.f32 %v3166_v24, %v882_v29  ;;  %v871_v5 = vadd.f32 %v869_v36, %v839_v62  ;;  %v923_v33 = vld [vmem:[#allocation2 + $0xe1] sm:$0xff] }
 0x132   : > { %v872_v39 = vadd.f32 %v870_v31, %v840_v44  ;;  %v879_v2 = vadd.f32 %v877_v63, %v847_v12  ;;  %v3168_v43 = vmov %v3155_v42  ;;  %v3169_v23 = vmov %v3156_v40  ;;  %v930_v21 = vld [vmem:[#allocation2 + $0xda] sm:$0xff]  ;;  %v931_v29 = vld [vmem:[#allocation2 + $0xe2] sm:$0xff] }
 0x133   : > { %v893_v56 = vmul.f32 %v3168_v43, %v890_v11  ;;  %v880_v58 = vadd.f32 %v878_v1, %v848_v47  ;;  %v887_v26 = vadd.f32 %v885_v51, %v855_v41  ;;  %v901_v22 = vmul.f32 %v3169_v23, %v898_v48  ;;  %v938_v44 = vld [vmem:[#allocation2 + $0xdb] sm:$0xff]  ;;  %v1051_v51 = vld [vmem:[#allocation2 + $0x113] sm:$0xff] }
 0x134   : > { %v3170_v49 = vmov %v3159_v30  ;;  %v3172_v35 = vstv %s3007_s3  ;;  %v3173_v62 = vstv %s3008_s6  ;;  %v3174_v42 = vstv %s3167_s4  ;;  %v962_v24 = vld [vmem:[#allocation2 + $0xde] sm:$0xff]  ;;  %s3186_s3 = sld [smem:[#allocation83_spill]]  ;;  %s3192_s6 = sld [smem:[#allocation84_spill]] }
 0x135   : > { %v909_v7 = vmul.f32 %v3170_v49, %v906_v61  ;;  %v895_v9 = vadd.f32 %v893_v56, %v863_v10  ;;  %v942_v17 = vmul.f32 %v3172_v35, %v939_v37  ;;  %v950_v6 = vmul.f32 %v3173_v62, %v947_v19 }
 0x136   : > { %v958_v40 = vmul.f32 %v3174_v42, %v955_v55  ;;  %v903_v12 = vadd.f32 %v901_v22, %v871_v5  ;;  %v912_v50 = vadd.f32 %v910_v25, %v880_v58  ;;  %v3176_v30 = vstv %s3013_s27  ;;  %v946_v25 = vld [vmem:[#allocation2 + $0xdc] sm:$0xff]  ;;  %s3197_s27 = sld [smem:[#allocation56_spill]] }
 0x137   : > { %v911_v41 = vadd.f32 %v909_v7, %v879_v2  ;;  %v966_v3 = vmul.f32 %v3176_v30, %v963_v18  ;;  %v896_v47 = vadd.f32 %v894_v13, %v864_v57  ;;  %v904_v53 = vadd.f32 %v902_v46, %v872_v39  ;;  %v954_v57 = vld [vmem:[#allocation2 + $0xdd] sm:$0xff]  ;;  %v1059_v39 = vld [vmem:[#allocation2 + $0x114] sm:$0xff] }
 0x138   : > { %v3177_v4 = vstv %s3171_s28  ;;  %v944_v27 = vadd.f32 %v942_v17, %v912_v50  ;;  %v3179_v36 = vstv %s3175_s14  ;;  %v3181_v63 = vstv %s3017_s13  ;;  %v1067_v58 = vld [vmem:[#allocation2 + $0x115] sm:$0xff]  ;;  %s3208_s13 = sld [smem:[#allocation78_spill]] }
 0x139   : > { %v917_v38 = vmul.f32 %v3177_v4, %v914_v54  ;;  %v3178_v16 = vmov %v3177_v4  ;;  %v925_v52 = vmul.f32 %v3179_v36, %v922_v15  ;;  %v3180_v31 = vmov %v3179_v36  ;;  %v3194_v4 = vld [vmem:[#allocation92_spill] sm:$0xff] }
 0x13a   : > { %v918_v11 = vmul.f32 %v3178_v16, %v915_v14  ;;  %v926_v34 = vmul.f32 %v3180_v31, %v923_v33  ;;  %v933_v48 = vmul.f32 %v3181_v63, %v930_v21  ;;  %v3182_v28 = vmov %v3181_v63  ;;  %v1075_v14 = vld [vmem:[#allocation2 + $0x116] sm:$0xff]  ;;  %v1042_v36 = vld [vmem:[#allocation2 + $0x10a] sm:$0xff]  ;;  %v3200_v63 = vld [vmem:[#allocation94_spill] sm:$0xff] }
 0x13b   : > { %v919_v61 = vadd.f32 %v917_v38, %v887_v26  ;;  %v934_v1 = vmul.f32 %v3182_v28, %v931_v29  ;;  %v3183_v13 = vmov %v3172_v35  ;;  %v976_v37 = vadd.f32 %v2207_v59, %v944_v27  ;;  %v3195_v38 = vld [vmem:[#allocation88_spill] sm:$0xff]  ;;  %v1058_v28 = vld [vmem:[#allocation2 + $0x10c] sm:$0xff] }
 0x13c   : > { %v920_v10 = vadd.f32 %v918_v11, %v888_v45  ;;  %v941_v46 = vmul.f32 %v3183_v13, %v938_v44  ;;  %v927_v19 = vadd.f32 %v925_v52, %v895_v9  ;;  %v928_v55 = vadd.f32 %v926_v34, %v896_v47  ;;  %v1034_v44 = vld [vmem:[#allocation2 + $0x109] sm:$0xff]  ;;  %v3196_v11 = vld [vmem:[#allocation90_spill] sm:$0xff]  ;;  %v3199_v31 = vld [vmem:[#allocation93_spill] sm:$0xff] }
 0x13d   : > { %v935_v5 = vadd.f32 %v933_v48, %v903_v12  ;;  %v936_v2 = vadd.f32 %v934_v1, %v904_v53  ;;  %v3184_v45 = vmov %v3173_v62  ;;  %v3185_v26 = vmov %v3174_v42  ;;  %v3193_v47 = vld [vmem:[#allocation87_spill] sm:$0xff]  ;;  %v3198_v52 = vld [vmem:[#allocation91_spill] sm:$0xff] }
 0x13e   : > { %v943_v43 = vadd.f32 %v941_v46, %v911_v41  ;;  %v949_v56 = vmul.f32 %v3184_v45, %v946_v25  ;;  %v952_v18 = vadd.f32 %v950_v6, %v920_v10  ;;  %v957_v23 = vmul.f32 %v3185_v26, %v954_v57  ;;  %v1026_v41 = vld [vmem:[#allocation2 + $0x108] sm:$0xff] }
 0x13f   : > { %v960_v22 = vadd.f32 %v958_v40, %v928_v55  ;;  %v3187_v49 = vmov %v3176_v30  ;;  %v3188_v54 = vstv %s2147_s24  ;;  %v968_v35 = vadd.f32 %v966_v3, %v936_v2  ;;  %v1050_v10 = vld [vmem:[#allocation2 + $0x10b] sm:$0xff]  ;;  %s2663_s24 = sld [smem:[#allocation3]] }
 0x140   : > { %v965_v7 = vmul.f32 %v3187_v49, %v962_v24  ;;  %v1054_v59 = vmul.f32 %v3188_v54, %v1051_v51  ;;  %v951_v9 = vadd.f32 %v949_v56, %v919_v61  ;;  %v975_v17 = vadd.f32 %v2216_v0, %v943_v43  ;;  %v1027_v0 = vld [vmem:[#allocation2 + $0x110] sm:$0xff]  ;;  %v3202_v13 = vld [vmem:[#allocation95_spill] sm:$0xff] }
 0x141   : > { %v3189_v62 = vstv %s2153_s19  ;;  %v959_v15 = vadd.f32 %v957_v23, %v927_v19  ;;  %v992_v6 = vadd.f32 %v2228_v32, %v960_v22  ;;  %v3190_v21 = vstv %s2155_s15  ;;  %v1066_v55 = vld [vmem:[#allocation2 + $0x10d] sm:$0xff]  ;;  %s3232_s15 = sld [smem:[#allocation82_spill]]  ;;  %s3248_s19 = sld [smem:[#allocation22_spill]] }
 0x142   : > { %v2588_v42 = vmul.f32 %v3189_v62, %v1059_v39  ;;  %v967_v33 = vadd.f32 %v965_v7, %v935_v5  ;;  %v1070_v12 = vmul.f32 %v3190_v21, %v1067_v58  ;;  %v983_v40 = vadd.f32 %v2218_v20, %v951_v9  ;;  %v1035_v20 = vld [vmem:[#allocation2 + $0x111] sm:$0xff] }
 0x143   : > { %v3191_v50 = vstv %s3186_s3  ;;  %v984_v29 = vadd.f32 %v2230_v8, %v952_v18  ;;  %v1000_v3 = vadd.f32 %v2241_v60, %v968_v35  ;;  %v991_v53 = vadd.f32 %v3193_v47, %v959_v15  ;;  %v1043_v8 = vld [vmem:[#allocation2 + $0x112] sm:$0xff]  ;;  %v1091_v47 = vld [vmem:[#allocation2 + $0x129] sm:$0xff] }
 0x144   : > { %v1078_v30 = vmul.f32 %v3191_v50, %v1075_v14  ;;  %v1024_v32 = vadd.f32 %v3194_v4, %v992_v6  ;;  %v999_v16 = vadd.f32 %v3195_v38, %v967_v33  ;;  %v1007_v27 = vadd.f32 %v3196_v11, %v975_v17  ;;  %v1074_v18 = vld [vmem:[#allocation2 + $0x10e] sm:$0xff]  ;;  %v1082_v6 = vld [vmem:[#allocation2 + $0x120] sm:$0xff] }
 0x145   : > { %v1008_v60 = vadd.f32 %v3198_v52, %v976_v37  ;;  %v1015_v34 = vadd.f32 %v3199_v31, %v983_v40  ;;  %v1016_v48 = vadd.f32 %v3200_v63, %v984_v29  ;;  %v3201_v25 = vstv %s3192_s6  ;;  %v1107_v58 = vld [vmem:[#allocation2 + $0x12b] sm:$0xff] }
 0x146   : > { %v1029_v61 = vmul.f32 %v3201_v25, %v1026_v41  ;;  %v1056_v1 = vadd.f32 %v1054_v59, %v1024_v32  ;;  %v1023_v46 = vadd.f32 %v3202_v13, %v991_v53  ;;  %v3203_v57 = vmov %v3201_v25  ;;  %v1115_v59 = vld [vmem:[#allocation2 + $0x12c] sm:$0xff]  ;;  %v1114_v63 = vld [vmem:[#allocation2 + $0x124] sm:$0xff] }
 0x147   : > { %v1030_v24 = vmul.f32 %v3203_v57, %v1027_v0  ;;  %v3204_v51 = vstv %s2169_s25  ;;  %v3206_v2 = vstv %s3197_s27  ;;  %v3209_v22 = vmov %v3188_v54  ;;  %v1123_v14 = vld [vmem:[#allocation2 + $0x12d] sm:$0xff]  ;;  %s3212_s25 = sld [smem:[#allocation81_spill]]  ;;  %s1232_s12 = scalar_lea.sflag [#allocation6], %s3248_s19 }
 0x148   : > { %v1037_v19 = vmul.f32 %v3204_v51, %v1034_v44  ;;  %v1031_v37 = vadd.f32 %v1029_v61, %v999_v16  ;;  %v3205_v5 = vmov %v3204_v51  ;;  %v1045_v43 = vmul.f32 %v3206_v2, %v1042_v36  ;;  %v1131_v33 = vld [vmem:[#allocation2 + $0x12e] sm:$0xff]  ;;  %v1090_v44 = vld [vmem:[#allocation2 + $0x121] sm:$0xff] }
 0x149   : > { %v1038_v39 = vmul.f32 %v3205_v5, %v1035_v20  ;;  %v3207_v45 = vmov %v3206_v2  ;;  %v1032_v26 = vadd.f32 %v1030_v24, %v1000_v3  ;;  %v1053_v49 = vmul.f32 %v3209_v22, %v1050_v10  ;;  %v1083_v0 = vld [vmem:[#allocation2 + $0x128] sm:$0xff] }
 0x14a   : > { %v1046_v56 = vmul.f32 %v3207_v45, %v1043_v8  ;;  %v1039_v23 = vadd.f32 %v1037_v19, %v1007_v27  ;;  %v3210_v7 = vmov %v3189_v62  ;;  %v1047_v35 = vadd.f32 %v1045_v43, %v1015_v34  ;;  %v1098_v27 = vld [vmem:[#allocation2 + $0x122] sm:$0xff]  ;;  %v1099_v20 = vld [vmem:[#allocation2 + $0x12a] sm:$0xff] }
 0x14b   : > { %v1061_v54 = vmul.f32 %v3210_v7, %v1058_v28  ;;  %v1040_v9 = vadd.f32 %v1038_v39, %v1008_v60  ;;  %v3213_v62 = vmov %v3190_v21  ;;  %v1055_v21 = vadd.f32 %v1053_v49, %v1023_v46  ;;  %v1106_v36 = vld [vmem:[#allocation2 + $0x123] sm:$0xff] }
 0x14c   : > { %v1048_v17 = vadd.f32 %v1046_v56, %v1016_v48  ;;  %v1069_v15 = vmul.f32 %v3213_v62, %v1066_v55  ;;  %v3215_v40 = vmov %v3191_v50  ;;  %v3216_v29 = vstv %s3208_s13  ;;  %v1122_v39 = vld [vmem:[#allocation2 + $0x125] sm:$0xff] }
 0x14d   : > { %v1063_v41 = vadd.f32 %v1061_v54, %v1031_v37  ;;  %v1077_v50 = vmul.f32 %v3215_v40, %v1074_v18  ;;  %v1110_v3 = vmul.f32 %v3216_v29, %v1107_v58  ;;  %v3217_v32 = vstv %s3211_s17  ;;  %v1171_v58 = vld [vmem:[#allocation2 + $0x144] sm:$0xff] }
 0x14e   : > { %v1071_v53 = vadd.f32 %v1069_v15, %v1039_v23  ;;  %v1080_v4 = vadd.f32 %v1078_v30, %v1048_v17  ;;  %v1118_v38 = vmul.f32 %v3217_v32, %v1115_v59  ;;  %v3218_v16 = vstv %s3212_s25  ;;  %v1187_v23 = vld [vmem:[#allocation2 + $0x146] sm:$0xff]  ;;  %v1138_v59 = vld [vmem:[#allocation2 + $0x138] sm:$0xff] }
 0x14f   : > { %v1126_v11 = vmul.f32 %v3218_v16, %v1123_v14  ;;  %v1079_v8 = vadd.f32 %v1077_v50, %v1047_v35  ;;  %v3219_v52 = vstv %s3214_s18  ;;  %v1064_v31 = vadd.f32 %v2588_v42, %v1032_v26  ;;  %v1130_v42 = vld [vmem:[#allocation2 + $0x126] sm:$0xff] }
 0x150   : > { %v1134_v60 = vmul.f32 %v3219_v52, %v1131_v33  ;;  %v1072_v34 = vadd.f32 %v1070_v12, %v1040_v9  ;;  %v1112_v48 = vadd.f32 %v1110_v3, %v1080_v4  ;;  %v3220_v30 = vstv %s2193_s16  ;;  %v1163_v12 = vld [vmem:[#allocation2 + $0x143] sm:$0xff]  ;;  %s3236_s16 = sld [smem:[#allocation89_spill]]  ;;  %v1162_v4 = vld [vmem:[#allocation2 + $0x13b] sm:$0xff] }
 0x151   : > { %v1085_v25 = vmul.f32 %v3220_v30, %v1082_v6  ;;  %v3221_v61 = vmov %v3220_v30  ;;  %v3222_v28 = vstv %s2195_s0  ;;  %v3224_v24 = vstv %s2203_s23  ;;  %v1179_v26 = vld [vmem:[#allocation2 + $0x145] sm:$0xff]  ;;  %s3228_s0 = sld [smem:[#allocation86_spill]]  ;;  %v1146_v6 = vld [vmem:[#allocation2 + $0x139] sm:$0xff]  ;;  %s3249_s23 = sld [smem:[#allocation23_spill]] }
 0x152   : > { %v1086_v10 = vmul.f32 %v3221_v61, %v1083_v0  ;;  %v1093_v13 = vmul.f32 %v3222_v28, %v1090_v44  ;;  %v3223_v46 = vmov %v3222_v28  ;;  %v1101_v51 = vmul.f32 %v3224_v24, %v1098_v27  ;;  %v1139_v33 = vld [vmem:[#allocation2 + $0x140] sm:$0xff] }
 0x153   : > { %v1094_v57 = vmul.f32 %v3223_v46, %v1091_v47  ;;  %v3225_v19 = vmov %v3224_v24  ;;  %v3226_v37 = vmov %v3216_v29  ;;  %v1087_v2 = vadd.f32 %v1085_v25, %v1055_v21  ;;  %v1147_v21 = vld [vmem:[#allocation2 + $0x141] sm:$0xff] }
 0x154   : > { %v1102_v55 = vmul.f32 %v3225_v19, %v1099_v20  ;;  %v1109_v5 = vmul.f32 %v3226_v37, %v1106_v36  ;;  %v1088_v43 = vadd.f32 %v1086_v10, %v1056_v1  ;;  %v1095_v45 = vadd.f32 %v1093_v13, %v1063_v41  ;;  %v1154_v47 = vld [vmem:[#allocation2 + $0x13a] sm:$0xff] }
 0x155   : > { %v3227_v56 = vmov %v3217_v32  ;;  %v1096_v22 = vadd.f32 %v1094_v57, %v1064_v31  ;;  %v1103_v49 = vadd.f32 %v1101_v51, %v1071_v53  ;;  %v3229_v9 = vmov %v3218_v16  ;;  %v1155_v53 = vld [vmem:[#allocation2 + $0x142] sm:$0xff] }
 0x156   : > { %v1117_v18 = vmul.f32 %v3227_v56, %v1114_v63  ;;  %v1104_v7 = vadd.f32 %v1102_v55, %v1072_v34  ;;  %v1111_v54 = vadd.f32 %v1109_v5, %v1079_v8  ;;  %v1125_v35 = vmul.f32 %v3229_v9, %v1122_v39  ;;  %v1170_v36 = vld [vmem:[#allocation2 + $0x13c] sm:$0xff] }
 0x157   : > { %v3230_v17 = vmov %v3219_v52  ;;  %v3231_v1 = vstv %s2212_s10  ;;  %v3233_v40 = vstv %s2214_s20  ;;  %v3234_v29 = vstv %s2222_s8  ;;  %v1178_v57 = vld [vmem:[#allocation2 + $0x13d] sm:$0xff]  ;;  %s3247_s10 = sld [smem:[#allocation17_spill]]  ;;  %s3250_s8 = sshll.u32 %s3248_s19, 6 }
 0x158   : > { %v1119_v14 = vadd.f32 %v1117_v18, %v1087_v2  ;;  %v1133_v62 = vmul.f32 %v3230_v17, %v1130_v42  ;;  %v1166_v15 = vmul.f32 %v3231_v1, %v1163_v12  ;;  %v1136_v41 = vadd.f32 %v1134_v60, %v1104_v7  ;;  %v1186_v24 = vld [vmem:[#allocation2 + $0x13e] sm:$0xff] }
 0x159   : > { %v1174_v50 = vmul.f32 %v3233_v40, %v1171_v58  ;;  %v1182_v3 = vmul.f32 %v3234_v29, %v1179_v26  ;;  %v3235_v0 = vstv %s3228_s0  ;;  %v1127_v32 = vadd.f32 %v1125_v35, %v1095_v45 }
 0x15a   : > { %v1190_v44 = vmul.f32 %v3235_v0, %v1187_v23  ;;  %v1135_v16 = vadd.f32 %v1133_v62, %v1103_v49  ;;  %v1120_v27 = vadd.f32 %v1118_v38, %v1088_v43  ;;  %v1128_v20 = vadd.f32 %v1126_v11, %v1096_v22 }
 0x15b   : > { %v1168_v8 = vadd.f32 %v1166_v15, %v1136_v41  ;;  %v3237_v52 = vstv %s3232_s15  ;;  %v3239_v63 = vstv %s2234_s26  ;;  %v3241_v10 = vstv %s3236_s16  ;;  %s203_s26 = scalar_lea.vmem [#allocation9], %s3250_s8 }
 0x15c   : > { %v1141_v60 = vmul.f32 %v3237_v52, %v1138_v59  ;;  %v3238_v31 = vmov %v3237_v52  ;;  %v1149_v30 = vmul.f32 %v3239_v63, %v1146_v6  ;;  %v3240_v25 = vmov %v3239_v63  ;;  %s1245_s11 = sshll.u32 %s203_s26, 4  ;;  %v1529_v52 = vld [vmem:[%s3249_s23 + $0x20] sm:$0xff]  ;;  %s2698_s11 = int_to_ptr.vmem [resolvable:$true] %s1245_s11 }
 0x15d   : > { %v1142_v34 = vmul.f32 %v3238_v31, %v1139_v33  ;;  %v1150_v61 = vmul.f32 %v3240_v25, %v1147_v21  ;;  %v1157_v28 = vmul.f32 %v3241_v10, %v1154_v47  ;;  %v3242_v13 = vmov %v3241_v10  ;;  %s1446_s20 = sshll.u32 %s3247_s10, 10  ;;  %v1530_v31 = vld [vmem:[%s3249_s23 + $0x30] sm:$0xff]  ;;  %s1576_s2 = scalar_lea.vmem %s2698_s11, 1024 }
 0x15e   : > { %v1158_v38 = vmul.f32 %v3242_v13, %v1155_v53  ;;  %v3243_v11 = vmov %v3231_v1  ;;  %v1143_v51 = vadd.f32 %v1141_v60, %v1111_v54  ;;  %v1151_v55 = vadd.f32 %v1149_v30, %v1119_v14  ;;  %v1525_v53 = vld [vmem:[%s3249_s23 + $0x28] sm:$0xff]  ;;  %s2696_s5 = scalar_lea.hbm %s3251_s29, %s1446_s20  ;;  %p1577_p13 = scmp.ne.s32.totalorder %s2698_s11, %s1576_s2 }
 0x15f   : > { %v1165_v46 = vmul.f32 %v3243_v11, %v1162_v4  ;;  %v1144_v19 = vadd.f32 %v1142_v34, %v1112_v48  ;;  %v3244_v37 = vmov %v3233_v40  ;;  %v1152_v39 = vadd.f32 %v1150_v61, %v1120_v27  ;;  %v1527_v27 = vld [vmem:[%s3249_s23] sm:$0xff]  ;;  %p1583_p10 = scmp.lt.s32.totalorder %s2698_s11, %s1581_s9  ;;  %p1584_p1 = scmp.lt.s32.totalorder %s1582_s7, %s1576_s2 }
 0x160   : > { %v1173_v5 = vmul.f32 %v3244_v37, %v1170_v36  ;;  %v1159_v42 = vadd.f32 %v1157_v28, %v1127_v32  ;;  %v1160_v12 = vadd.f32 %v1158_v38, %v1128_v20  ;;  %v3245_v56 = vmov %v3234_v29  ;;  %v1526_v32 = vld [vmem:[%s3249_s23 + $0x38] sm:$0xff]  ;;  %v1528_v36 = vld [vmem:[%s3249_s23 + $0x10] sm:$0xff]  ;;  %p1578_p8 = pnand %p1577_p13, %p3253_p3 }
 0x161   : > { %v1167_v2 = vadd.f32 %v1165_v46, %v1135_v16  ;;  %v1176_v45 = vadd.f32 %v1174_v50, %v1144_v19  ;;  %v1181_v18 = vmul.f32 %v3245_v56, %v1178_v57  ;;  %v3246_v58 = vmov %v3235_v0  ;;  %p1585_p4 = por %p1584_p1, %p1583_p10 }
 0x162   : > { %v1175_v43 = vadd.f32 %v1173_v5, %v1143_v51  ;;  %v1189_v26 = vmul.f32 %v3246_v58, %v1186_v24  ;;  %v1184_v23 = vadd.f32 %v1182_v3, %v1152_v39  ;;  %v1192_v22 = vadd.f32 %v1190_v44, %v1160_v12  ;;  %v1523_v3 = vld [vmem:[%s3249_s23 + $0x8] sm:$0xff]  ;;  %v1524_v44 = vld [vmem:[%s3249_s23 + $0x18] sm:$0xff]  ;;  %p1579_p9 = pneg %p1578_p8 }
 0x163   : > { %v1183_v49 = vadd.f32 %v1181_v18, %v1151_v55  ;;  %v1196_v48 = vadd.f32 %v1176_v45, %v1168_v8  ;;  %v1200_v59 = vstv %s2663_s24 }
 0x164   : > { %v1191_v7 = vadd.f32 %v1189_v26, %v1159_v42  ;;  %v1194_v54 = vadd.f32 %v1192_v22, %v1184_v23  ;;  %v1195_v9 = vadd.f32 %v1175_v43, %v1167_v2  ;;  %p1586_p11 = pnand %p1585_p4, %p1579_p9 }
 0x166   : > { %v1193_v14 = vadd.f32 %v1191_v7, %v1183_v49  ;;  %v1198_v35 = vadd.f32 %v1196_v48, %v1194_v54 }
 0x168   : > { %v1197_v17 = vadd.f32 %v1195_v9, %v1193_v14  ;;  %v1202_v62 = vadd.f32 %v1200_v59, %v1198_v35 }
 0x16a   : > { %v1201_v1 = vadd.f32 %v1200_v59, %v1197_v17  ;;  %v1439_v15 = vmul.f32 -1.442695, %v1202_v62 }
 0x16c   : > { %v1438_v33 = vmul.f32 -1.442695, %v1201_v1  ;;  %1515 = vpow2.f32 %v1439_v15 }
 0x16e   : > { %1517 = vpow2.f32 %v1438_v33 }
 0x176   : > { %v1516_v6 = vpop.eup %1515 }
 0x177   : > { %v1210_v41 = vadd.f32 1.0, %v1516_v6 }
 0x178   : > { %v1518_v21 = vpop.eup %1517 }
 0x179   : > { %v1209_v40 = vadd.f32 1.0, %v1518_v21  ;;  %1519 = vrcp.f32 %v1210_v41 }
 0x17b   : > { %1521 = vrcp.f32 %v1209_v40 }
 0x183   : > { %v1520_v50 = vpop.eup %1519 }
 0x184   : > { %v1216_v0 = vmul.f32 %v1523_v3, %v1520_v50  ;;  %v1218_v47 = vmul.f32 %v1524_v44, %v1520_v50  ;;  %v1220_v4 = vmul.f32 %v1525_v53, %v1520_v50  ;;  %v1222_v16 = vmul.f32 %v1526_v32, %v1520_v50 }
 0x185   : > { %v1522_v29 = vpop.eup %1521 }
 0x186   : > { %v1215_v20 = vmul.f32 %v1527_v27, %v1522_v29  ;;  %v1217_v8 = vmul.f32 %v1528_v36, %v1522_v29  ;;  %v1219_v60 = vmul.f32 %v1529_v52, %v1522_v29  ;;  %v1221_v34 = vmul.f32 %v1530_v31, %v1522_v29  ;;  %1224 = vst.msk [vmem:[%s203_s26 + $0x8] sm:$0xff] %vm212_vm0, %v1216_v0 }
 0x187   : > { %1226 = vst.msk [vmem:[%s203_s26 + $0x18] sm:$0xff] %vm212_vm0, %v1218_v47  ;;  %1228 = vst.msk [vmem:[%s203_s26 + $0x28] sm:$0xff] %vm212_vm0, %v1220_v4 }
 0x188   : > { %1230 = vst.msk [vmem:[%s203_s26 + $0x38] sm:$0xff] %vm212_vm0, %v1222_v16  ;;  %1223 = vst.msk [vmem:[%s203_s26] sm:$0xff] %vm212_vm0, %v1215_v20 }
 0x189   : > { %1225 = vst.msk [vmem:[%s203_s26 + $0x10] sm:$0xff] %vm212_vm0, %v1217_v8  ;;  %1227 = vst.msk [vmem:[%s203_s26 + $0x20] sm:$0xff] %vm212_vm0, %v1219_v60 }
 0x18a   : > { %1229 = vst.msk [vmem:[%s203_s26 + $0x30] sm:$0xff] %vm212_vm0, %v1221_v34 }
 0x18b   : > { %1589 = shalt.err (!%p1586_p11)
}
 0x18c   : > { %s1590_s4 = scalar_lea.hbm %s2696_s5, 1024  ;;  %s1594_s3 = scalar_lea.hbm %s3251_s29, 2048 }
 0x18d   : > { %p1591_p0 = scmp.ne.s32.totalorder %s2696_s5, %s1590_s4  ;;  %p1595_p5 = scmp.lt.u32.totalorder %s2696_s5, %s3251_s29 }
 0x18e   : > { %p1596_p12 = scmp.lt.u32.totalorder %s1594_s3, %s1590_s4  ;;  %p1598_p13 = scmp.lt.u32.totalorder %s1590_s4, %s2696_s5 }
 0x18f   : > { %p1592_p2 = pnand %p1591_p0, %p3253_p3 }
 0x190   : > { %p1597_p6 = por %p1596_p12, %p1595_p5 }
 0x191   : > { %p1593_p7 = pneg %p1592_p2 }
 0x192   : > { %p1599_p8 = por %p1598_p13, %p1597_p6 }
 0x194   : > { %p1600_p9 = pnand %p1599_p8, %p1593_p7 }
 0x196   : > { %1603 = shalt.err (!%p1600_p9)
}
 0x197   : > { %s1660_s13 = smov 128   ;;  %s1661_s17 = smov 8  }
 0x198   : > { %1453 = dma.vmem_to_hbm [thread:$0]  (%p3253_p3), %s2698_s11, 1024, %s2696_s5, %s1232_s12, %s1660_s13, %s1660_s13, %s1661_s17  }
 0x199 PF: > { %s3254_s25 = sld [smem:[#allocation13_spill]]  ;;  %s3255_s18 = sld [smem:[#allocation21_spill]] }
 0x19a   : > { %s3256_s0 = sld [smem:[#allocation16_spill]] }
 0x19f   : > { %s1260_s15 = sand.u32 1, %s3254_s25   ;;  %p3257_p10 = scmp.ne.s32.totalorder %s3255_s18, 0 }
 0x1a0   : > { %p3258_p1 = scmp.ge.s32.totalorder %s3256_s0, 2  ;;  %s1261_s16 = scalar_lea.sflag [#allocation6], %s1260_s15 }
 0x1a2   : > { %p1464_p4 = pnand %p3258_p1, %p3257_p10 }
 0x1a4   : > { %1629 = dma.done.wait (!%p1464_p4), %s1261_s16, 1024  }
 0x1a5   : > { %1631 = vsyncadd (!%p1464_p4), %s1261_s16, 4294966272  ;;  %s3259_s17 = sld [smem:[#allocation18_spill]]  ;;  %s3260_s14 = sld [smem:[#allocation14_spill]] }
 0x1a6   : > { %s3261_s15 = sld [smem:[#allocation15_spill]]  ;;  %s3262_s16 = sld [smem:[#allocation19_spill]] }
 0x1ab   : > { %p18_p11 = scmp.ge.s32.totalorder %s3259_s17, 4  }
 0x1ad   :  { %20 = sbr.rel (!%p18_p11) target bundleno = 11 (0xb), region = 95 }
 0x1b4   :  { %1266 = vsyncpa [#allocation5], 1 }
 0x1b5   :  { %1268 = vsyncpa [#allocation5 + $0x1], 1 }
 0x1b6   :  { %1269 = vsyncpa [#allocation6], 1 }
 0x1b7   :  { %1271 = vsyncpa [#allocation6 + $0x1], 1 }
 0x1b8   :  { %1272 = vsyncpa [#allocation7], 1 }
 0x1b9   :  { %1274 = vsyncpa [#allocation7 + $0x1], 1 }

</bundles_post_ra>
